<compile_context>
chip_gen: v6e
topology: v6e:2x2x1
jax: 0.10.0
libtpu: 0.0.40
codegen_flags: <defaults>
</compile_context>

<pallas_src>
import functools

import jax
import jax.numpy as jnp
from jax.experimental import pallas as pl
from jax.experimental.pallas import tpu as pltpu

EMB = 128
HID = 128
VOCAB = 36294
VOCAB_TILE = 3072                                 # 12 tiles: even count for v7x megacore
N_VOCAB_TILES = pl.cdiv(VOCAB, VOCAB_TILE)        # 12 (last tile ragged, masked by Pallas)


# -----------------------------------------------------------------------------
# Kernel 1: fused GRU step + attention + linear_1 + tanh   (single grid point)
# -----------------------------------------------------------------------------
def _decoder_step_kernel(xh_ref, enc_ref, wg_ref, bg_ref, w1_ref, b1_ref,
                         hnew_ref, cat_ref):
    xh = xh_ref[...]                               # (B, E+H) fp32,  [embedded | h_prev]
    h = xh[:, EMB:EMB + HID]                       # (B, H)

    # --- GRU cell as ONE stacked MXU contraction (K = E+H = 256, N = 4H) ---
    # Stacked-gate columns: [ r : gi_r+gh_r | z : gi_z+gh_z | gi_n | gh_n ]
    # (PyTorch gate order r, z, n ;  n = tanh(gi_n + r * gh_n))
    g = jnp.dot(xh, wg_ref[...], preferred_element_type=jnp.float32) + bg_ref[...]
    r = jax.nn.sigmoid(g[:, 0:HID])
    z = jax.nn.sigmoid(g[:, HID:2 * HID])
    n = jnp.tanh(g[:, 2 * HID:3 * HID] + r * g[:, 3 * HID:4 * HID])
    h_new = (1.0 - z) * n + z * h                  # (B, H)
    hnew_ref[...] = h_new

    # --- attention: scores = rnn_output . encoder_outputs, softmax over seq ---
    enc = enc_ref[...]                                        # (B, S, H)
    scores = jnp.sum(h_new[:, None, :] * enc, axis=-1)        # (B, S)
    scores = scores - jnp.max(scores, axis=-1, keepdims=True)
    p = jnp.exp(scores)
    attn = p / jnp.sum(p, axis=-1, keepdims=True)             # (B, S)
    context = jnp.sum(attn[:, :, None] * enc, axis=1)         # (B, H)

    # --- concat(rnn_output, context) @ W1 + b1, tanh ---
    # W1^T is (2H, H); split to avoid an in-kernel concatenate copy.
    w1a = w1_ref[0:HID, :]
    w1b = w1_ref[HID:2 * HID, :]
    pre = (jnp.dot(h_new, w1a, preferred_element_type=jnp.float32)
           + jnp.dot(context, w1b, preferred_element_type=jnp.float32)
           + b1_ref[...])
    cat_ref[...] = jnp.tanh(pre).astype(cat_ref.dtype)        # bf16 for vocab projection


def _decoder_step(xh, enc, w_gru, b_gru, w1_t, b1):
    B = xh.shape[0]
    vmem = pl.BlockSpec(memory_space=pltpu.MemorySpace.VMEM)  # full array resident in VMEM
    return pl.pallas_call(
        _decoder_step_kernel,
        out_shape=(jax.ShapeDtypeStruct((B, HID), jnp.float32),
                   jax.ShapeDtypeStruct((B, HID), jnp.bfloat16)),
        grid=(),
        in_specs=[vmem] * 6,
        out_specs=(vmem, vmem),
    )(xh, enc, w_gru, b_gru, w1_t, b1)


# -----------------------------------------------------------------------------
# Kernel 2: vocab projection, tiled over the vocab dimension (bf16 weights, f32 acc)
# -----------------------------------------------------------------------------
def _vocab_proj_kernel(x_ref, w_ref, b_ref, out_ref):
    out_ref[...] = (jnp.dot(x_ref[...], w_ref[...],
                            preferred_element_type=jnp.float32)
                    + b_ref[...])


def _vocab_proj(x_bf16, w2_t_bf16, b2):
    B = x_bf16.shape[0]
    return pl.pallas_call(
        _vocab_proj_kernel,
        out_shape=jax.ShapeDtypeStruct((B, VOCAB), jnp.float32),
        grid=(N_VOCAB_TILES,),
        in_specs=[pl.BlockSpec((B, HID), lambda j: (0, 0)),
                  pl.BlockSpec((HID, VOCAB_TILE), lambda j: (0, j)),
                  pl.BlockSpec((1, VOCAB_TILE), lambda j: (0, j))],
        out_specs=pl.BlockSpec((B, VOCAB_TILE), lambda j: (0, j)),
        compiler_params=pltpu.CompilerParams(
            dimension_semantics=("parallel",)),
    )(x_bf16, w2_t_bf16, b2)


# -----------------------------------------------------------------------------
# Parameters + forward wrapper
# -----------------------------------------------------------------------------
def init_params(key):
    ks = jax.random.split(key, 8)
    s = 0.05
    # Raw GRU weights, pre-transposed: (in, 3*hidden), gate order (r, z, n).
    w_ih_t = jax.random.normal(ks[1], (EMB, 3 * HID), jnp.float32) * s
    w_hh_t = jax.random.normal(ks[2], (HID, 3 * HID), jnp.float32) * s
    b_ih = jax.random.normal(ks[3], (1, 3 * HID), jnp.float32) * s
    b_hh = jax.random.normal(ks[4], (1, 3 * HID), jnp.float32) * s

    # Stacked GRU weight (E+H, 4H): packed input [x|h] gives
    #   cols 0:2H  -> gi_{r,z} + gh_{r,z}
    #   cols 2H:3H -> gi_n  (h rows zeroed)
    #   cols 3H:4H -> gh_n  (x rows zeroed)
    w_gru = jnp.zeros((EMB + HID, 4 * HID), jnp.float32)
    w_gru = w_gru.at[:EMB, 0:2 * HID].set(w_ih_t[:, 0:2 * HID])
    w_gru = w_gru.at[EMB:, 0:2 * HID].set(w_hh_t[:, 0:2 * HID])
    w_gru = w_gru.at[:EMB, 2 * HID:3 * HID].set(w_ih_t[:, 2 * HID:3 * HID])
    w_gru = w_gru.at[EMB:, 3 * HID:4 * HID].set(w_hh_t[:, 2 * HID:3 * HID])
    b_gru = jnp.concatenate(
        [b_ih[:, 0:2 * HID] + b_hh[:, 0:2 * HID],
         b_ih[:, 2 * HID:3 * HID],
         b_hh[:, 2 * HID:3 * HID]], axis=-1)                   # (1, 4H)

    params = {
        "embedding": jax.random.normal(ks[0], (VOCAB, EMB), jnp.float32) * s,
        "w_gru": w_gru,
        "b_gru": b_gru,
        # linear_1: (2H -> H), pre-transposed
        "w1_t": jax.random.normal(ks[5], (2 * HID, HID), jnp.float32) * s,
        "b1": jax.random.normal(ks[6], (1, HID), jnp.float32) * s,
        # linear_2: (H -> V), pre-transposed, stored bf16 (f32 accumulation in-kernel)
        "w2_t": (jax.random.normal(ks[7], (HID, VOCAB), jnp.float32) * s
                 ).astype(jnp.bfloat16),
        "b2": jnp.zeros((1, VOCAB), jnp.float32),
    }
    return params


@jax.jit
def decoder_forward(params, input_ids, last_hidden, encoder_outputs):
    """input_ids: (B,) int32; last_hidden: (1, B, H); encoder_outputs: (S, B, H).
    Returns (logits (B, VOCAB), hidden (1, B, H)) — matching the PyTorch Decoder.forward."""
    # Embedding lookup (glue, plain JAX gather).
    embedded = jnp.take(params["embedding"], input_ids, axis=0)    # (B, E)
    # Dropout(p=0.3) is identity in inference/eval mode.
    # TODO(synk): training-mode dropout (pltpu.prng_random_bits mask) not implemented.

    h_prev = last_hidden[0]                                        # (B, H)
    enc = jnp.transpose(encoder_outputs, (1, 0, 2))                # (B, S, H)
    xh = jnp.concatenate([embedded, h_prev], axis=-1)              # (B, E+H) packed input

    h_new, concat_bf16 = _decoder_step(
        xh, enc, params["w_gru"], params["b_gru"], params["w1_t"], params["b1"])

    logits = _vocab_proj(concat_bf16, params["w2_t"], params["b2"])
    hidden = h_new[None, :, :]                                     # (1, B, H)
    return logits, hidden


# -----------------------------------------------------------------------------
# Pure-JAX reference (same params / same bf16 rounding) for a sanity check.
# -----------------------------------------------------------------------------
def _reference_forward(params, input_ids, last_hidden, encoder_outputs):
    embedded = jnp.take(params["embedding"], input_ids, axis=0)
    h_prev = last_hidden[0]
    enc = jnp.transpose(encoder_outputs, (1, 0, 2))
    xh = jnp.concatenate([embedded, h_prev], axis=-1)
    g = xh @ params["w_gru"] + params["b_gru"]
    r = jax.nn.sigmoid(g[:, 0:HID])
    z = jax.nn.sigmoid(g[:, HID:2 * HID])
    n = jnp.tanh(g[:, 2 * HID:3 * HID] + r * g[:, 3 * HID:4 * HID])
    h_new = (1.0 - z) * n + z * h_prev
    scores = jnp.einsum("bh,bsh->bs", h_new, enc)
    attn = jax.nn.softmax(scores, axis=-1)
    context = jnp.einsum("bs,bsh->bh", attn, enc)
    cat = jnp.tanh(jnp.concatenate([h_new, context], axis=-1) @ params["w1_t"]
                   + params["b1"])
    cat_bf = cat.astype(jnp.bfloat16).astype(jnp.float32)
    logits = cat_bf @ params["w2_t"].astype(jnp.float32) + params["b2"]
    return logits, h_new[None, :, :]


if __name__ == "__main__":
    B, S = 8, 8          # B=8 fills the 8-sublane vregs (B=4 would be half-masked)
    key = jax.random.PRNGKey(0)
    k_param, k_in, k_h, k_enc = jax.random.split(key, 4)

    params = init_params(k_param)
    input_ids = jax.random.randint(k_in, (B,), 0, VOCAB, dtype=jnp.int32)
    last_hidden = jax.random.normal(k_h, (1, B, HID), jnp.float32)
    encoder_outputs = jax.random.normal(k_enc, (S, B, HID), jnp.float32)

    logits, hidden = decoder_forward(params, input_ids, last_hidden, encoder_outputs)
    jax.block_until_ready((logits, hidden))

    assert logits.shape == (B, VOCAB), logits.shape
    assert hidden.shape == (1, B, HID), hidden.shape

    ref_logits, ref_hidden = _reference_forward(params, input_ids, last_hidden,
                                                encoder_outputs)
    assert float(jnp.max(jnp.abs(hidden - ref_hidden))) < 1e-3
    assert float(jnp.max(jnp.abs(logits - ref_logits))) < 5e-2

    print("KERNEL_OK")
</pallas_src>

<mosaic_0001>
module attributes {stable_mosaic.version = 11 : i64} {
  func.func @_decoder_step_kernel(%arg0: memref<8x256xf32, #tpu.memory_space<vmem>>, %arg1: memref<8x8x128xf32, #tpu.memory_space<vmem>>, %arg2: memref<256x512xf32, #tpu.memory_space<vmem>>, %arg3: memref<1x512xf32, #tpu.memory_space<vmem>>, %arg4: memref<256x128xf32, #tpu.memory_space<vmem>>, %arg5: memref<1x128xf32, #tpu.memory_space<vmem>>, %arg6: memref<8x128xf32, #tpu.memory_space<vmem>>, %arg7: memref<8x128xbf16, #tpu.memory_space<vmem>>) attributes {dimension_semantics = [], scalar_prefetch = 0 : i64, scratch_operands = 0 : i64, tpu.core_type = #tpu.core_type<tc>} {
    %c0 = arith.constant 0 : index
    %c0_0 = arith.constant 0 : index
    %0 = vector.load %arg0[%c0, %c0_0] : memref<8x256xf32, #tpu.memory_space<vmem>>, vector<8x256xf32>
    %1 = vector.extract_strided_slice %0 {offsets = [0, 128], sizes = [8, 128], strides = [1, 1]} : vector<8x256xf32> to vector<8x128xf32>
    %c0_1 = arith.constant 0 : index
    %c0_2 = arith.constant 0 : index
    %2 = vector.load %arg2[%c0_1, %c0_2] : memref<256x512xf32, #tpu.memory_space<vmem>>, vector<256x512xf32>
    %cst = arith.constant dense<0.000000e+00> : vector<8x512xf32>
    %3 = tpu.matmul %0, %2, %cst {dimension_numbers = #tpu.dot_dimension_numbers<[1], [0], [0], [1], [0, 0, 1, 1], [], []>} : vector<8x256xf32>, vector<256x512xf32>, vector<8x512xf32> -> vector<8x512xf32>
    %c0_3 = arith.constant 0 : index
    %c0_4 = arith.constant 0 : index
    %4 = vector.load %arg3[%c0_3, %c0_4] : memref<1x512xf32, #tpu.memory_space<vmem>>, vector<1x512xf32>
    %5 = vector.broadcast %4 : vector<1x512xf32> to vector<8x512xf32>
    %6 = arith.addf %3, %5 : vector<8x512xf32>
    %7 = vector.extract_strided_slice %6 {offsets = [0, 0], sizes = [8, 128], strides = [1, 1]} : vector<8x512xf32> to vector<8x128xf32>
    %8 = arith.negf %7 : vector<8x128xf32>
    %9 = math.exp %8 : vector<8x128xf32>
    %cst_5 = arith.constant 1.000000e+00 : f32
    %10 = vector.broadcast %cst_5 : f32 to vector<8x128xf32>
    %11 = arith.addf %10, %9 : vector<8x128xf32>
    %12 = arith.divf %10, %11 : vector<8x128xf32>
    %13 = vector.extract_strided_slice %6 {offsets = [0, 128], sizes = [8, 128], strides = [1, 1]} : vector<8x512xf32> to vector<8x128xf32>
    %14 = arith.negf %13 : vector<8x128xf32>
    %15 = math.exp %14 : vector<8x128xf32>
    %cst_6 = arith.constant 1.000000e+00 : f32
    %16 = vector.broadcast %cst_6 : f32 to vector<8x128xf32>
    %17 = arith.addf %16, %15 : vector<8x128xf32>
    %18 = arith.divf %16, %17 : vector<8x128xf32>
    %19 = vector.extract_strided_slice %6 {offsets = [0, 256], sizes = [8, 128], strides = [1, 1]} : vector<8x512xf32> to vector<8x128xf32>
    %20 = vector.extract_strided_slice %6 {offsets = [0, 384], sizes = [8, 128], strides = [1, 1]} : vector<8x512xf32> to vector<8x128xf32>
    %21 = arith.mulf %12, %20 : vector<8x128xf32>
    %22 = arith.addf %19, %21 : vector<8x128xf32>
    %23 = math.tanh %22 : vector<8x128xf32>
    %cst_7 = arith.constant 1.000000e+00 : f32
    %24 = vector.broadcast %cst_7 : f32 to vector<8x128xf32>
    %25 = arith.subf %24, %18 : vector<8x128xf32>
    %26 = arith.mulf %25, %23 : vector<8x128xf32>
    %27 = arith.mulf %18, %1 : vector<8x128xf32>
    %28 = arith.addf %26, %27 : vector<8x128xf32>
    %c0_8 = arith.constant 0 : index
    %c0_9 = arith.constant 0 : index
    %29 = vector.load %arg6[%c0_8, %c0_9] : memref<8x128xf32, #tpu.memory_space<vmem>>, vector<8x128xf32>
    tpu.vector_store %arg6[%c0_8, %c0_9], %28 {strides = array<i32>} : memref<8x128xf32, #tpu.memory_space<vmem>>, vector<8x128xf32>,
    %c0_10 = arith.constant 0 : index
    %c0_11 = arith.constant 0 : index
    %c0_12 = arith.constant 0 : index
    %30 = vector.load %arg1[%c0_10, %c0_11, %c0_12] : memref<8x8x128xf32, #tpu.memory_space<vmem>>, vector<8x8x128xf32>
    %31 = vector.shape_cast %28 : vector<8x128xf32> to vector<8x1x128xf32>
    %32 = vector.broadcast %31 : vector<8x1x128xf32> to vector<8x8x128xf32>
    %33 = arith.mulf %32, %30 : vector<8x8x128xf32>
    %cst_13 = arith.constant dense<0.000000e+00> : vector<8x8xf32>
    %34 = vector.multi_reduction <add>, %33, %cst_13 [2] : vector<8x8x128xf32> to vector<8x8xf32>
    %cst_14 = arith.constant dense<0xFF800000> : vector<8xf32>
    %35 = vector.multi_reduction <maximumf>, %34, %cst_14 [1] : vector<8x8xf32> to vector<8xf32>
    %36 = vector.shape_cast %35 : vector<8xf32> to vector<8x1xf32>
    %37 = vector.broadcast %36 : vector<8x1xf32> to vector<8x8xf32>
    %38 = arith.subf %34, %37 : vector<8x8xf32>
    %39 = math.exp %38 : vector<8x8xf32>
    %cst_15 = arith.constant dense<0.000000e+00> : vector<8xf32>
    %40 = vector.multi_reduction <add>, %39, %cst_15 [1] : vector<8x8xf32> to vector<8xf32>
    %41 = vector.shape_cast %40 : vector<8xf32> to vector<8x1xf32>
    %42 = vector.broadcast %41 : vector<8x1xf32> to vector<8x8xf32>
    %43 = arith.divf %39, %42 : vector<8x8xf32>
    %44 = vector.shape_cast %43 : vector<8x8xf32> to vector<8x8x1xf32>
    %45 = vector.broadcast %44 : vector<8x8x1xf32> to vector<8x8x128xf32>
    %46 = arith.mulf %45, %30 : vector<8x8x128xf32>
    %cst_16 = arith.constant dense<0.000000e+00> : vector<8x128xf32>
    %47 = vector.multi_reduction <add>, %46, %cst_16 [1] : vector<8x8x128xf32> to vector<8x128xf32>
    %c0_17 = arith.constant 0 : index
    %c0_18 = arith.constant 0 : index
    %48 = vector.load %arg4[%c0_17, %c0_18] : memref<256x128xf32, #tpu.memory_space<vmem>>, vector<128x128xf32>
    %c128 = arith.constant 128 : index
    %c0_19 = arith.constant 0 : index
    %49 = vector.load %arg4[%c128, %c0_19] : memref<256x128xf32, #tpu.memory_space<vmem>>, vector<128x128xf32>
    %cst_20 = arith.constant dense<0.000000e+00> : vector<8x128xf32>
    %50 = tpu.matmul %28, %48, %cst_20 {dimension_numbers = #tpu.dot_dimension_numbers<[1], [0], [0], [1], [0, 0, 1, 1], [], []>} : vector<8x128xf32>, vector<128x128xf32>, vector<8x128xf32> -> vector<8x128xf32>
    %cst_21 = arith.constant dense<0.000000e+00> : vector<8x128xf32>
    %51 = tpu.matmul %47, %49, %cst_21 {dimension_numbers = #tpu.dot_dimension_numbers<[1], [0], [0], [1], [0, 0, 1, 1], [], []>} : vector<8x128xf32>, vector<128x128xf32>, vector<8x128xf32> -> vector<8x128xf32>
    %52 = arith.addf %50, %51 : vector<8x128xf32>
    %c0_22 = arith.constant 0 : index
    %c0_23 = arith.constant 0 : index
    %53 = vector.load %arg5[%c0_22, %c0_23] : memref<1x128xf32, #tpu.memory_space<vmem>>, vector<1x128xf32>
    %54 = vector.broadcast %53 : vector<1x128xf32> to vector<8x128xf32>
    %55 = arith.addf %52, %54 : vector<8x128xf32>
    %56 = math.tanh %55 : vector<8x128xf32>
    %57 = arith.truncf %56 : vector<8x128xf32> to vector<8x128xbf16>
    %c0_24 = arith.constant 0 : index
    %c0_25 = arith.constant 0 : index
    %58 = vector.load %arg7[%c0_24, %c0_25] : memref<8x128xbf16, #tpu.memory_space<vmem>>, vector<8x128xbf16>
    tpu.vector_store %arg7[%c0_24, %c0_25], %57 {strides = array<i32>} : memref<8x128xbf16, #tpu.memory_space<vmem>>, vector<8x128xbf16>,
    return
  }
}

module attributes {stable_mosaic.version = 11 : i64} {
  func.func @_vocab_proj_kernel(%arg0: i32, %arg1: memref<8x128xbf16, #tpu.memory_space<vmem>>, %arg2: memref<128x3072xbf16, #tpu.memory_space<vmem>>, %arg3: memref<1x3072xf32, #tpu.memory_space<vmem>>, %arg4: memref<8x3072xf32, #tpu.memory_space<vmem>>) attributes {dimension_semantics = [#tpu.dimension_semantics<parallel>], iteration_bounds = array<i64: 12>, scalar_prefetch = 0 : i64, scratch_operands = 0 : i64, tpu.core_type = #tpu.core_type<tc>, window_params = [{pipeline_mode = #tpu.pipeline_mode<synchronous>, transform_indices = @transform_0, window_bounds = array<i64: 8, 128>}, {transform_indices = @transform_1, window_bounds = array<i64: 128, 3072>}, {transform_indices = @transform_2, window_bounds = array<i64: 1, 3072>}, {transform_indices = @transform_3, window_bounds = array<i64: 8, 3072>}]} {
    %c0 = arith.constant 0 : index
    %c0_0 = arith.constant 0 : index
    %0 = vector.load %arg1[%c0, %c0_0] : memref<8x128xbf16, #tpu.memory_space<vmem>>, vector<8x128xbf16>
    %c0_1 = arith.constant 0 : index
    %c0_2 = arith.constant 0 : index
    %1 = vector.load %arg2[%c0_1, %c0_2] : memref<128x3072xbf16, #tpu.memory_space<vmem>>, vector<128x3072xbf16>
    %cst = arith.constant dense<0.000000e+00> : vector<8x3072xf32>
    %2 = tpu.matmul %0, %1, %cst {dimension_numbers = #tpu.dot_dimension_numbers<[1], [0], [0], [1], [0, 0, 1, 1], [], []>} : vector<8x128xbf16>, vector<128x3072xbf16>, vector<8x3072xf32> -> vector<8x3072xf32>
    %c0_3 = arith.constant 0 : index
    %c0_4 = arith.constant 0 : index
    %3 = vector.load %arg3[%c0_3, %c0_4] : memref<1x3072xf32, #tpu.memory_space<vmem>>, vector<1x3072xf32>
    %4 = vector.broadcast %3 : vector<1x3072xf32> to vector<8x3072xf32>
    %5 = arith.addf %2, %4 : vector<8x3072xf32>
    %c0_5 = arith.constant 0 : index
    %c0_6 = arith.constant 0 : index
    %6 = vector.load %arg4[%c0_5, %c0_6] : memref<8x3072xf32, #tpu.memory_space<vmem>>, vector<8x3072xf32>
    tpu.vector_store %arg4[%c0_5, %c0_6], %5 {strides = array<i32>} : memref<8x3072xf32, #tpu.memory_space<vmem>>, vector<8x3072xf32>,
    return
  }
  func.func @transform_0(%arg0: i32) -> (i32, i32) {
    %c0_i32 = arith.constant 0 : i32
    %c0_i32_0 = arith.constant 0 : i32
    %c0_i32_1 = arith.constant 0 : i32
    return %c0_i32, %c0_i32_0 : i32, i32
  }
  func.func @transform_1(%arg0: i32) -> (i32, i32) {
    %c0_i32 = arith.constant 0 : i32
    %c0_i32_0 = arith.constant 0 : i32
    return %c0_i32, %arg0 : i32, i32
  }
  func.func @transform_2(%arg0: i32) -> (i32, i32) {
    %c0_i32 = arith.constant 0 : i32
    %c0_i32_0 = arith.constant 0 : i32
    return %c0_i32, %arg0 : i32, i32
  }
  func.func @transform_3(%arg0: i32) -> (i32, i32) {
    %c0_i32 = arith.constant 0 : i32
    %c0_i32_0 = arith.constant 0 : i32
    return %c0_i32, %arg0 : i32, i32
  }
}

</mosaic_0001>

<bundles_post_ra>
// kernel: decoder_forward.2
= control target key start
LH: loop header
LB: loop body
LE: loop exit
PB: predicated region body
PF: predicated region fallthrough
CT: control target
= control target key end

     0   :  { %13 = vsyncpa [#allocation3], 0  ;;  %s1663_s0 = inlined_call_operand.vmem [shape: f32[8,256], index: 0, kind: input, shape index: {}]   ;;  %s1664_s1 = inlined_call_operand.vmem [shape: f32[8,8,128], index: 1, kind: input, shape index: {}]   ;;  %s1665_s2 = inlined_call_operand.hbm [shape: f32[256,512], index: 2, kind: input, shape index: {}]   ;;  %s1666_s3 = inlined_call_operand.hbm [shape: f32[1,512], index: 3, kind: input, shape index: {}]   ;;  %s1667_s4 = inlined_call_operand.hbm [shape: f32[256,128], index: 4, kind: input, shape index: {}]   ;;  %s1668_s5 = inlined_call_operand.hbm [shape: f32[1,128], index: 5, kind: input, shape index: {}]   ;;  %s1669_s6 = inlined_call_operand.hbm [shape: f32[8,128], index: 6, kind: output, shape index: {0}]   ;;  %s1670_s7 = inlined_call_operand.vmem [shape: bf16[8,128], index: 7, kind: output, shape index: {1}]  }
   0x1   :  { %14 = vsyncpa [#allocation6], 0 }
   0x2   :  { %15 = vsyncpa [#allocation9], 0 }
   0x3   :  { %16 = vsyncpa [#allocation4], 0  ;;  %s1361_s24 = smov [#allocation5]   ;;  %s1362_s26 = smov [#allocation2]  }
   0x4   :  { %s39_s25 = sshll.u32 %s1361_s24, 4  ;;  %s26_s27 = sshll.u32 %s1362_s26, 4  ;;  %s40_s25 = int_to_ptr.vmem [resolvable:$true] %s39_s25  ;;  %s27_s27 = int_to_ptr.vmem [resolvable:$true] %s26_s27 }
   0x5   :  { %s1261_s28 = scalar_lea.vmem %s40_s25, 64  ;;  %p1266_p1 = scmp.lt.s32.totalorder %s40_s25, %s40_s25 }
   0x6   :  { %p1262_p0 = scmp.ne.s32.totalorder %s40_s25, %s1261_s28  ;;  %p1267_p2 = scmp.lt.s32.totalorder %s1261_s28, %s1261_s28 }
   0x8   :  { %p1268_p3 = por %p1267_p2, %p1266_p1 }
   0xa   :  { %p1269_p4 = pnand %p1268_p3, %p1262_p0 }
   0xc   :  { %1272 = shalt.err (!%p1269_p4)
}
   0xd   :  { %42 = dma.hbm_to_vmem [thread:$0]  %s1666_s3, 64, %s40_s25, [#allocation6]  }
   0xe   :  { %s1281_s8 = scalar_lea.vmem %s27_s27, 16384  ;;  %p1286_p6 = scmp.lt.s32.totalorder %s27_s27, %s27_s27 }
   0xf   :  { %p1282_p5 = scmp.ne.s32.totalorder %s27_s27, %s1281_s8  ;;  %p1287_p7 = scmp.lt.s32.totalorder %s1281_s8, %s1281_s8 }
  0x11   :  { %p1288_p8 = por %p1287_p7, %p1286_p6 }
  0x13   :  { %p1289_p9 = pnand %p1288_p8, %p1282_p5 }
  0x15   :  { %1292 = shalt.err (!%p1289_p9)
}
  0x16   :  { %s1363_s9 = smov 512   ;;  %s1364_s10 = smov 32  }
  0x17   :  { %32 = dma.hbm_to_vmem [thread:$0]  %s1665_s2, 16384, %s27_s27, [#allocation3], %s1363_s9, %s1363_s9, %s1364_s10  }
  0x18   :  { %s1365_s13 = smov [#allocation7]  }
  0x19   :  { %s48_s14 = sshll.u32 %s1365_s13, 4  ;;  %s49_s14 = int_to_ptr.vmem [resolvable:$true] %s48_s14 }
  0x1a   :  { %s1301_s15 = scalar_lea.vmem %s49_s14, 4096  ;;  %p1306_p11 = scmp.lt.s32.totalorder %s49_s14, %s49_s14 }
  0x1b   :  { %p1302_p10 = scmp.ne.s32.totalorder %s49_s14, %s1301_s15  ;;  %p1307_p12 = scmp.lt.s32.totalorder %s1301_s15, %s1301_s15 }
  0x1d   :  { %p1308_p13 = por %p1307_p12, %p1306_p11 }
  0x1f   :  { %p1309_p0 = pnand %p1308_p13, %p1302_p10 }
  0x21   :  { %1312 = shalt.err (!%p1309_p0)
}
  0x22   :  { %s1366_s3 = smov 128   ;;  %s1367_s16 = smov 8  }
  0x23   :  { %54 = dma.hbm_to_vmem [thread:$0]  %s1667_s4, 4096, %s49_s14, [#allocation6], %s1366_s3, %s1366_s3, %s1367_s16  }
  0x24   :  { %s1368_s19 = smov [#allocation8]  }
  0x25   :  { %s61_s20 = sshll.u32 %s1368_s19, 4  ;;  %s62_s20 = int_to_ptr.vmem [resolvable:$true] %s61_s20 }
  0x26   :  { %s1321_s2 = scalar_lea.vmem %s62_s20, 16  ;;  %s1325_s21 = scalar_lea.vmem %s62_s20, 32 }
  0x27   :  { %p1322_p1 = scmp.ne.s32.totalorder %s62_s20, %s1321_s2  ;;  %p1326_p2 = scmp.lt.s32.totalorder %s62_s20, %s62_s20 }
  0x28   :  { %p1327_p3 = scmp.lt.s32.totalorder %s1325_s21, %s1321_s2 }
  0x2a   :  { %p1328_p4 = por %p1327_p3, %p1326_p2 }
  0x2c   :  { %p1329_p5 = pnand %p1328_p4, %p1322_p1 }
  0x2e   :  { %1332 = shalt.err (!%p1329_p5)
}
  0x2f   :  { %64 = dma.hbm_to_vmem [thread:$0]  %s1668_s5, 16, %s62_s20, [#allocation9]  }
  0x30   :  { %1353 = dma.done.wait [#allocation3], 16384  }
  0x31   :  { %1354 = vsyncadd [#allocation3], 4294950912 }
  0x32   :  { %1355 = dma.done.wait [#allocation6], 4160  }
  0x33   :  { %1356 = vsyncadd [#allocation6], 4294963136 }
  0x34   :  { %1357 = dma.done.wait [#allocation9], 16  }
  0x35   :  { %1358 = vsyncadd [#allocation9], 4294967280  ;;  %v140_v0 = vld [vmem:[#allocation2 + $0x1e8] sm:$0xff]  ;;  %v139_v1 = vld [vmem:[#allocation2 + $0x1e0] sm:$0xff]  ;;  %vm1370_vm0 = vmmov 0   ;;  %vm555_vm1 = vcmask 1041409  }
  0x36   :  { %v136_v2 = vld [vmem:[#allocation2 + $0x1c8] sm:$0xff]  ;;  %229 = vmatprep.subr.mxu0 %v140_v0  ;;  %v135_v3 = vld [vmem:[#allocation2 + $0x1c0] sm:$0xff]  ;;  %v142_v12 = vld [vmem:[#allocation2 + $0x1f8] sm:$0xff]  ;;  %vm557_vm2 = vcmask 1042434   ;;  %vm559_vm3 = vcmask 1043459   ;;  %vm561_vm4 = vcmask 1044484  }
  0x37   :  { %230 = vmatpush1.msra.mxu0 %v139_v1  ;;  %v132_v4 = vld [vmem:[#allocation2 + $0x1a8] sm:$0xff]  ;;  %v131_v5 = vld [vmem:[#allocation2 + $0x1a0] sm:$0xff]  ;;  %300 = vmatprep.subr.mxu1 %v142_v12  ;;  %v141_v14 = vld [vmem:[#allocation2 + $0x1f0] sm:$0xff]  ;;  %vm563_vm5 = vcmask 1045509   ;;  %vm565_vm6 = vcmask 1046534   ;;  %vm567_vm7 = vcmask 1047559  }
  0x38   :  { %231 = vmatprep.subr.mxu0 %v136_v2  ;;  %v128_v6 = vld [vmem:[#allocation2 + $0x188] sm:$0xff]  ;;  %v127_v7 = vld [vmem:[#allocation2 + $0x180] sm:$0xff]  ;;  %301 = vmatpush1.msra.mxu1 %v141_v14  ;;  %v138_v16 = vld [vmem:[#allocation2 + $0x1d8] sm:$0xff]  ;;  %vm570_vm8 = vcmask 64512  }
  0x39   :  { %232 = vmatpush1.msra.mxu0 %v135_v3  ;;  %v124_v8 = vld [vmem:[#allocation2 + $0x168] sm:$0xff]  ;;  %v123_v9 = vld [vmem:[#allocation2 + $0x160] sm:$0xff]  ;;  %v137_v17 = vld [vmem:[#allocation2 + $0x1d0] sm:$0xff]  ;;  %302 = vmatprep.subr.mxu1 %v138_v16 }
  0x3a   :  { %233 = vmatprep.subr.mxu0 %v132_v4  ;;  %v120_v10 = vld [vmem:[#allocation2 + $0x148] sm:$0xff]  ;;  %v119_v11 = vld [vmem:[#allocation2 + $0x140] sm:$0xff]  ;;  %v134_v19 = vld [vmem:[#allocation2 + $0x1b8] sm:$0xff]  ;;  %303 = vmatpush1.msra.mxu1 %v137_v17 }
  0x3b   :  { %234 = vmatpush1.msra.mxu0 %v131_v5  ;;  %v116_v13 = vld [vmem:[#allocation2 + $0x128] sm:$0xff]  ;;  %v115_v15 = vld [vmem:[#allocation2 + $0x120] sm:$0xff]  ;;  %v133_v21 = vld [vmem:[#allocation2 + $0x1b0] sm:$0xff]  ;;  %304 = vmatprep.subr.mxu1 %v134_v19 }
  0x3c   :  { %235 = vmatprep.subr.mxu0 %v128_v6  ;;  %v112_v18 = vld [vmem:[#allocation2 + $0x108] sm:$0xff]  ;;  %v111_v20 = vld [vmem:[#allocation2 + $0x100] sm:$0xff]  ;;  %v130_v22 = vld [vmem:[#allocation2 + $0x198] sm:$0xff]  ;;  %305 = vmatpush1.msra.mxu1 %v133_v21 }
  0x3d   :  { %236 = vmatpush1.msra.mxu0 %v127_v7  ;;  %v108_v23 = vld [vmem:[#allocation2 + $0xe8] sm:$0xff]  ;;  %v129_v24 = vld [vmem:[#allocation2 + $0x190] sm:$0xff]  ;;  %v107_v25 = vld [vmem:[#allocation2 + $0xe0] sm:$0xff]  ;;  %306 = vmatprep.subr.mxu1 %v130_v22 }
  0x3e   :  { %237 = vmatprep.subr.mxu0 %v124_v8  ;;  %v126_v26 = vld [vmem:[#allocation2 + $0x178] sm:$0xff]  ;;  %v104_v27 = vld [vmem:[#allocation2 + $0xc8] sm:$0xff]  ;;  %v125_v28 = vld [vmem:[#allocation2 + $0x170] sm:$0xff]  ;;  %307 = vmatpush1.msra.mxu1 %v129_v24 }
  0x3f   :  { %238 = vmatpush1.msra.mxu0 %v123_v9  ;;  %v103_v29 = vld [vmem:[#allocation2 + $0xc0] sm:$0xff]  ;;  %v122_v30 = vld [vmem:[#allocation2 + $0x158] sm:$0xff]  ;;  %v100_v31 = vld [vmem:[#allocation2 + $0xa8] sm:$0xff]  ;;  %308 = vmatprep.subr.mxu1 %v126_v26 }
  0x40   :  { %239 = vmatprep.subr.mxu0 %v120_v10  ;;  %v121_v32 = vld [vmem:[#allocation2 + $0x150] sm:$0xff]  ;;  %v99_v33 = vld [vmem:[#allocation2 + $0xa0] sm:$0xff]  ;;  %309 = vmatpush1.msra.mxu1 %v125_v28  ;;  %v118_v34 = vld [vmem:[#allocation2 + $0x138] sm:$0xff] }
  0x41   :  { %240 = vmatpush1.msra.mxu0 %v119_v11  ;;  %v96_v35 = vld [vmem:[#allocation2 + $0x88] sm:$0xff]  ;;  %310 = vmatprep.subr.mxu1 %v122_v30  ;;  %v117_v36 = vld [vmem:[#allocation2 + $0x130] sm:$0xff]  ;;  %v95_v37 = vld [vmem:[#allocation2 + $0x80] sm:$0xff] }
  0x42   :  { %241 = vmatprep.subr.mxu0 %v116_v13  ;;  %311 = vmatpush1.msra.mxu1 %v121_v32  ;;  %v114_v38 = vld [vmem:[#allocation2 + $0x118] sm:$0xff]  ;;  %v92_v39 = vld [vmem:[#allocation2 + $0x68] sm:$0xff]  ;;  %v113_v40 = vld [vmem:[#allocation2 + $0x110] sm:$0xff] }
  0x43   :  { %242 = vmatpush1.msra.mxu0 %v115_v15  ;;  %312 = vmatprep.subr.mxu1 %v118_v34  ;;  %v91_v41 = vld [vmem:[#allocation2 + $0x60] sm:$0xff]  ;;  %v110_v42 = vld [vmem:[#allocation2 + $0xf8] sm:$0xff]  ;;  %v88_v43 = vld [vmem:[#allocation2 + $0x48] sm:$0xff] }
  0x44   :  { %243 = vmatprep.subr.mxu0 %v112_v18  ;;  %313 = vmatpush1.msra.mxu1 %v117_v36  ;;  %v109_v44 = vld [vmem:[#allocation2 + $0xf0] sm:$0xff]  ;;  %v87_v45 = vld [vmem:[#allocation2 + $0x40] sm:$0xff]  ;;  %v106_v46 = vld [vmem:[#allocation2 + $0xd8] sm:$0xff] }
  0x45   :  { %244 = vmatpush1.msra.mxu0 %v111_v20  ;;  %314 = vmatprep.subr.mxu1 %v114_v38  ;;  %v84_v47 = vld [vmem:[#allocation2 + $0x28] sm:$0xff]  ;;  %v105_v48 = vld [vmem:[#allocation2 + $0xd0] sm:$0xff]  ;;  %v83_v49 = vld [vmem:[#allocation2 + $0x20] sm:$0xff] }
  0x46   :  { %245 = vmatprep.subr.mxu0 %v108_v23  ;;  %315 = vmatpush1.msra.mxu1 %v113_v40  ;;  %v102_v50 = vld [vmem:[#allocation2 + $0xb8] sm:$0xff]  ;;  %v80_v51 = vld [vmem:[#allocation2 + $0x8] sm:$0xff]  ;;  %v101_v52 = vld [vmem:[#allocation2 + $0xb0] sm:$0xff] }
  0x47   :  { %246 = vmatpush1.msra.mxu0 %v107_v25  ;;  %316 = vmatprep.subr.mxu1 %v110_v42  ;;  %v79_v53 = vld [vmem:[#allocation2] sm:$0xff]  ;;  %v98_v54 = vld [vmem:[#allocation2 + $0x98] sm:$0xff]  ;;  %v204_v55 = vld [vmem:[#allocation2 + $0x3e8] sm:$0xff] }
  0x48   :  { %247 = vmatprep.subr.mxu0 %v104_v27  ;;  %317 = vmatpush1.msra.mxu1 %v109_v44  ;;  %v97_v56 = vld [vmem:[#allocation2 + $0x90] sm:$0xff]  ;;  %v203_v57 = vld [vmem:[#allocation2 + $0x3e0] sm:$0xff]  ;;  %v94_v58 = vld [vmem:[#allocation2 + $0x78] sm:$0xff] }
  0x49   :  { %248 = vmatpush1.msra.mxu0 %v103_v29  ;;  %318 = vmatprep.subr.mxu1 %v106_v46  ;;  %v200_v59 = vld [vmem:[#allocation2 + $0x3c8] sm:$0xff]  ;;  %v93_v60 = vld [vmem:[#allocation2 + $0x70] sm:$0xff]  ;;  %v199_v61 = vld [vmem:[#allocation2 + $0x3c0] sm:$0xff] }
  0x4a   :  { %249 = vmatprep.subr.mxu0 %v100_v31  ;;  %319 = vmatpush1.msra.mxu1 %v105_v48  ;;  %v90_v62 = vld [vmem:[#allocation2 + $0x58] sm:$0xff]  ;;  %v196_v63 = vld [vmem:[#allocation2 + $0x3a8] sm:$0xff]  ;;  %v89_v0 = vld [vmem:[#allocation2 + $0x50] sm:$0xff] }
  0x4b   :  { %250 = vmatpush1.msra.mxu0 %v99_v33  ;;  %320 = vmatprep.subr.mxu1 %v102_v50  ;;  %v195_v1 = vld [vmem:[#allocation2 + $0x3a0] sm:$0xff]  ;;  %v86_v2 = vld [vmem:[#allocation2 + $0x38] sm:$0xff]  ;;  %v192_v3 = vld [vmem:[#allocation2 + $0x388] sm:$0xff] }
  0x4c   :  { %251 = vmatprep.subr.mxu0 %v96_v35  ;;  %321 = vmatpush1.msra.mxu1 %v101_v52  ;;  %v85_v4 = vld [vmem:[#allocation2 + $0x30] sm:$0xff]  ;;  %v191_v5 = vld [vmem:[#allocation2 + $0x380] sm:$0xff]  ;;  %v82_v6 = vld [vmem:[#allocation2 + $0x18] sm:$0xff] }
  0x4d   :  { %252 = vmatpush1.msra.mxu0 %v95_v37  ;;  %322 = vmatprep.subr.mxu1 %v98_v54  ;;  %v188_v7 = vld [vmem:[#allocation2 + $0x368] sm:$0xff]  ;;  %v81_v8 = vld [vmem:[#allocation2 + $0x10] sm:$0xff]  ;;  %v187_v9 = vld [vmem:[#allocation2 + $0x360] sm:$0xff] }
  0x4e   :  { %253 = vmatprep.subr.mxu0 %v92_v39  ;;  %323 = vmatpush1.msra.mxu1 %v97_v56  ;;  %v206_v10 = vld [vmem:[#allocation2 + $0x3f8] sm:$0xff]  ;;  %v184_v11 = vld [vmem:[#allocation2 + $0x348] sm:$0xff]  ;;  %v205_v12 = vld [vmem:[#allocation2 + $0x3f0] sm:$0xff] }
  0x4f   :  { %254 = vmatpush1.msra.mxu0 %v91_v41  ;;  %324 = vmatprep.subr.mxu1 %v94_v58  ;;  %v183_v13 = vld [vmem:[#allocation2 + $0x340] sm:$0xff]  ;;  %v202_v14 = vld [vmem:[#allocation2 + $0x3d8] sm:$0xff]  ;;  %v180_v15 = vld [vmem:[#allocation2 + $0x328] sm:$0xff] }
  0x50   :  { %255 = vmatprep.subr.mxu0 %v88_v43  ;;  %325 = vmatpush1.msra.mxu1 %v93_v60  ;;  %v1429_v16 = vld [vmem:[%s1663_s0 + $0x8] sm:$0xff]  ;;  %v179_v17 = vld [vmem:[#allocation2 + $0x320] sm:$0xff]  ;;  %v201_v18 = vld [vmem:[#allocation2 + $0x3d0] sm:$0xff] }
  0x51   :  { %256 = vmatpush1.msra.mxu0 %v87_v45  ;;  %326 = vmatprep.subr.mxu1 %v90_v62  ;;  %v176_v19 = vld [vmem:[#allocation2 + $0x308] sm:$0xff]  ;;  %v198_v20 = vld [vmem:[#allocation2 + $0x3b8] sm:$0xff]  ;;  %v175_v21 = vld [vmem:[#allocation2 + $0x300] sm:$0xff] }
  0x52   :  { %257 = vmatprep.subr.mxu0 %v84_v47  ;;  %327 = vmatpush1.msra.mxu1 %v89_v0  ;;  %v197_v22 = vld [vmem:[#allocation2 + $0x3b0] sm:$0xff]  ;;  %v172_v23 = vld [vmem:[#allocation2 + $0x2e8] sm:$0xff]  ;;  %v194_v24 = vld [vmem:[#allocation2 + $0x398] sm:$0xff] }
  0x53   :  { %258 = vmatpush1.msra.mxu0 %v83_v49  ;;  %328 = vmatprep.subr.mxu1 %v86_v2  ;;  %v171_v25 = vld [vmem:[#allocation2 + $0x2e0] sm:$0xff]  ;;  %v193_v26 = vld [vmem:[#allocation2 + $0x390] sm:$0xff]  ;;  %v168_v27 = vld [vmem:[#allocation2 + $0x2c8] sm:$0xff] }
  0x54   :  { %259 = vmatprep.subr.mxu0 %v80_v51  ;;  %329 = vmatpush1.msra.mxu1 %v85_v4  ;;  %v190_v28 = vld [vmem:[#allocation2 + $0x378] sm:$0xff]  ;;  %v167_v29 = vld [vmem:[#allocation2 + $0x2c0] sm:$0xff]  ;;  %v189_v30 = vld [vmem:[#allocation2 + $0x370] sm:$0xff] }
  0x55   :  { %260 = vmatpush1.msra.mxu0 %v79_v53  ;;  %330 = vmatprep.subr.mxu1 %v82_v6  ;;  %v164_v31 = vld [vmem:[#allocation2 + $0x2a8] sm:$0xff]  ;;  %v186_v32 = vld [vmem:[#allocation2 + $0x358] sm:$0xff]  ;;  %v163_v33 = vld [vmem:[#allocation2 + $0x2a0] sm:$0xff] }
  0x56   :  { %261 = vmatprep.subr.mxu0 %v204_v55  ;;  %331 = vmatpush1.msra.mxu1 %v81_v8  ;;  %v185_v34 = vld [vmem:[#allocation2 + $0x350] sm:$0xff]  ;;  %v160_v35 = vld [vmem:[#allocation2 + $0x288] sm:$0xff]  ;;  %v182_v36 = vld [vmem:[#allocation2 + $0x338] sm:$0xff] }
  0x57   :  { %262 = vmatpush2.msra.mxu0 %v203_v57  ;;  %332 = vmatprep.subr.mxu1 %v206_v10  ;;  %v159_v37 = vld [vmem:[#allocation2 + $0x280] sm:$0xff]  ;;  %v181_v38 = vld [vmem:[#allocation2 + $0x330] sm:$0xff]  ;;  %v156_v39 = vld [vmem:[#allocation2 + $0x268] sm:$0xff] }
  0x58   :  { %263 = vmatprep.subr.mxu0 %v200_v59  ;;  %333 = vmatpush2.msra.mxu1 %v205_v12  ;;  %v178_v40 = vld [vmem:[#allocation2 + $0x318] sm:$0xff]  ;;  %v155_v41 = vld [vmem:[#allocation2 + $0x260] sm:$0xff]  ;;  %v177_v42 = vld [vmem:[#allocation2 + $0x310] sm:$0xff] }
  0x59   :  { %264 = vmatpush2.msra.mxu0 %v199_v61  ;;  %334 = vmatprep.subr.mxu1 %v202_v14  ;;  %v152_v43 = vld [vmem:[#allocation2 + $0x248] sm:$0xff]  ;;  %v174_v44 = vld [vmem:[#allocation2 + $0x2f8] sm:$0xff]  ;;  %v151_v45 = vld [vmem:[#allocation2 + $0x240] sm:$0xff] }
  0x5a   :  { %265 = vmatprep.subr.mxu0 %v196_v63  ;;  %293 = vmatprep.mubr.f32.mxu0 %v1429_v16  ;;  %v173_v46 = vld [vmem:[#allocation2 + $0x2f0] sm:$0xff]  ;;  %v148_v47 = vld [vmem:[#allocation2 + $0x228] sm:$0xff]  ;;  %v170_v48 = vld [vmem:[#allocation2 + $0x2d8] sm:$0xff] }
  0x5b   :  { %266 = vmatpush2.msra.mxu0 %v195_v1  ;;  %335 = vmatpush2.msra.mxu1 %v201_v18  ;;  %v147_v49 = vld [vmem:[#allocation2 + $0x220] sm:$0xff]  ;;  %v169_v50 = vld [vmem:[#allocation2 + $0x2d0] sm:$0xff]  ;;  %v144_v51 = vld [vmem:[#allocation2 + $0x208] sm:$0xff] }
  0x5c   :  { %267 = vmatprep.subr.mxu0 %v192_v3  ;;  %336 = vmatprep.subr.mxu1 %v198_v20  ;;  %v166_v52 = vld [vmem:[#allocation2 + $0x2b8] sm:$0xff]  ;;  %v143_v53 = vld [vmem:[#allocation2 + $0x200] sm:$0xff]  ;;  %v165_v54 = vld [vmem:[#allocation2 + $0x2b0] sm:$0xff]  ;;  %v1369_v3 = vmov 0.0   ;;  %v209_v20 = vlaneseq }
  0x5d   :  { %268 = vmatpush2.msra.mxu0 %v191_v5  ;;  %337 = vmatpush2.msra.mxu1 %v197_v22  ;;  %v77_v55 = vld [vmem:[%s1663_s0] sm:$0xff]  ;;  %v162_v56 = vld [vmem:[#allocation2 + $0x298] sm:$0xff]  ;;  %v161_v57 = vld [vmem:[#allocation2 + $0x290] sm:$0xff] }
  0x5e   :  { %269 = vmatprep.subr.mxu0 %v188_v7  ;;  %338 = vmatprep.subr.mxu1 %v194_v24  ;;  %v158_v58 = vld [vmem:[#allocation2 + $0x278] sm:$0xff]  ;;  %v157_v59 = vld [vmem:[#allocation2 + $0x270] sm:$0xff]  ;;  %v879_v6 = vld [vmem:[#allocation7 + $0x60] sm:$0xff] }
  0x5f   :  { %270 = vmatpush2.msra.mxu0 %v187_v9  ;;  %339 = vmatpush2.msra.mxu1 %v193_v26  ;;  %v154_v60 = vld [vmem:[#allocation2 + $0x258] sm:$0xff]  ;;  %v153_v61 = vld [vmem:[#allocation2 + $0x250] sm:$0xff]  ;;  %v875_v10 = vld [vmem:[#allocation7 + $0x40] sm:$0xff] }
  0x60   :  { %271 = vmatprep.subr.mxu0 %v184_v11  ;;  %340 = vmatprep.subr.mxu1 %v190_v28  ;;  %v150_v62 = vld [vmem:[#allocation2 + $0x238] sm:$0xff]  ;;  %v149_v63 = vld [vmem:[#allocation2 + $0x230] sm:$0xff]  ;;  %v871_v14 = vld [vmem:[#allocation7 + $0x20] sm:$0xff] }
  0x61   :  { %272 = vmatpush2.msra.mxu0 %v183_v13  ;;  %341 = vmatpush2.msra.mxu1 %v189_v30  ;;  %v146_v0 = vld [vmem:[#allocation2 + $0x218] sm:$0xff]  ;;  %v145_v1 = vld [vmem:[#allocation2 + $0x210] sm:$0xff] }
  0x62   :  { %273 = vmatprep.subr.mxu0 %v180_v15  ;;  %342 = vmatprep.subr.mxu1 %v186_v32  ;;  %v882_v2 = vld [vmem:[#allocation7 + $0x78] sm:$0xff]  ;;  %v881_v4 = vld [vmem:[#allocation7 + $0x70] sm:$0xff]  ;;  %v880_v5 = vld [vmem:[#allocation7 + $0x68] sm:$0xff] }
  0x63   :  { %274 = vmatpush2.msra.mxu0 %v179_v17  ;;  %343 = vmatpush2.msra.mxu1 %v185_v34  ;;  %v878_v7 = vld [vmem:[#allocation7 + $0x58] sm:$0xff]  ;;  %v877_v8 = vld [vmem:[#allocation7 + $0x50] sm:$0xff]  ;;  %v876_v9 = vld [vmem:[#allocation7 + $0x48] sm:$0xff] }
  0x64   :  { %275 = vmatprep.subr.mxu0 %v176_v19  ;;  %344 = vmatprep.subr.mxu1 %v182_v36  ;;  %v874_v11 = vld [vmem:[#allocation7 + $0x38] sm:$0xff]  ;;  %v873_v12 = vld [vmem:[#allocation7 + $0x30] sm:$0xff]  ;;  %v872_v13 = vld [vmem:[#allocation7 + $0x28] sm:$0xff] }
  0x65   :  { %276 = vmatpush2.msra.mxu0 %v175_v21  ;;  %345 = vmatpush2.msra.mxu1 %v181_v38  ;;  %v870_v15 = vld [vmem:[#allocation7 + $0x18] sm:$0xff]  ;;  %v869_v17 = vld [vmem:[#allocation7 + $0x10] sm:$0xff]  ;;  %v868_v18 = vld [vmem:[#allocation7 + $0x8] sm:$0xff]  ;;  %v1456_v21 = vshrl.u32 %v209_v20, 7 }
  0x66   :  { %277 = vmatprep.subr.mxu0 %v172_v23  ;;  %346 = vmatprep.subr.mxu1 %v178_v40  ;;  %v867_v19 = vld [vmem:[#allocation7] sm:$0xff]  ;;  %v207_v23 = vld [vmem:[#allocation5] sm:$0xf] }
  0x67   :  { %278 = vmatpush2.msra.mxu0 %v171_v25  ;;  %347 = vmatpush2.msra.mxu1 %v177_v42  ;;  %v1459_v22 = vsub.s32 0, %v1456_v21  ;;  %v1463_v25 = vsub.s32 1, %v1456_v21 }
  0x68   :  { %279 = vmatprep.subr.mxu0 %v168_v27  ;;  %348 = vmatprep.subr.mxu1 %v174_v44 }
  0x69   :  { %280 = vmatpush2.msra.mxu0 %v167_v29  ;;  %349 = vmatpush2.msra.mxu1 %v173_v46  ;;  %v212_v24 = vrot.slane %v207_v23, %v1459_v22  ;;  %v216_v29 = vrot.slane %v207_v23, %v1463_v25 }
  0x6a   :  { %281 = vmatprep.subr.mxu0 %v164_v31  ;;  %350 = vmatprep.subr.mxu1 %v170_v48  ;;  %v1371_v48 = vmov 1966171168  }
  0x6b   :  { %282 = vmatpush2.msra.mxu0 %v163_v33  ;;  %351 = vmatpush2.msra.mxu1 %v169_v50 }
  0x6c   :  { %283 = vmatprep.subr.mxu0 %v160_v35  ;;  %352 = vmatprep.subr.mxu1 %v166_v52  ;;  %v1467_v35 = vsub.s32 3, %v1456_v21 }
  0x6d   :  { %284 = vmatpush2.msra.mxu0 %v159_v37  ;;  %353 = vmatpush2.msra.mxu1 %v165_v54  ;;  %v1470_v37 = vsub.s32 2, %v1456_v21 }
  0x6e   :  { %285 = vmatprep.subr.mxu0 %v156_v39  ;;  %354 = vmatprep.subr.mxu1 %v162_v56  ;;  %v224_v39 = vrot.slane %v207_v23, %v1467_v35 }
  0x6f   :  { %286 = vmatpush2.msra.mxu0 %v155_v41  ;;  %355 = vmatpush2.msra.mxu1 %v161_v57  ;;  %v220_v42 = vrot.slane %v207_v23, %v1470_v37 }
  0x70   :  { %287 = vmatprep.subr.mxu0 %v152_v43  ;;  %364 = vmatprep.mubr.f32.mxu1 %v1429_v16 }
  0x71   :  { %288 = vmatpush2.msra.mxu0 %v151_v45  ;;  %356 = vmatprep.subr.mxu1 %v158_v58 }
  0x72   :  { %289 = vmatprep.subr.mxu0 %v148_v47  ;;  %357 = vmatpush2.msra.mxu1 %v157_v59 }
  0x73   :  { %290 = vmatpush2.msra.mxu0 %v147_v49  ;;  %358 = vmatprep.subr.mxu1 %v154_v60  ;;  %v402_v49 = vunpack.c.l.s4 %v1371_v48 }
  0x74   :  { %291 = vmatprep.subr.mxu0 %v144_v51  ;;  %359 = vmatpush2.msra.mxu1 %v153_v61 }
  0x75   :  { %292 = vmatpush2.msra.mxu0 %v143_v53  ;;  %360 = vmatprep.subr.mxu1 %v150_v62  ;;  %v403_v51 = vunpack.c.0.s8 %v402_v49 }
  0x76   :  { %294 = vmatmul.mubr.f32.vlgmr.msra.gmra.mxu0 %v77_v55  ;;  %361 = vmatpush2.msra.mxu1 %v149_v63  ;;  %v1479_v63 = vld [vmem:[%s1664_s1] sm:$0xff] }
  0x77   :  { %362 = vmatprep.subr.mxu1 %v146_v0  ;;  %1124 = vmatprep.subr.mxu0 %v1369_v3  ;;  %v406_v56 = vsub.s32 %v403_v51, %v1456_v21 }
  0x78   :  { %363 = vmatpush2.msra.mxu1 %v145_v1  ;;  %1156 = vmatprep.mubr.msk.f32.mxu0 %vm1370_vm0, %v1369_v3 }
  0x79   :  { %365 = vmatmul.mubr.f32.vlgmr.msra.gmra.mxu1 %v77_v55  ;;  %1159 = vmatprep.subr.mxu1 %v1369_v3 }
  0x7a   :  { %1160 = vmatpush3.msra.mxu1 %v882_v2  ;;  %1191 = vmatprep.mubr.msk.f32.mxu1 %vm1370_vm0, %v1369_v3 }
  0x7b   :  { %1161 = vmatprep.subr.mxu1 %v1369_v3 }
  0x7c   :  { %1162 = vmatpush3.msra.mxu1 %v881_v4 }
  0x7d   :  { %1163 = vmatprep.subr.mxu1 %v1369_v3 }
  0x7e   :  { %1164 = vmatpush3.msra.mxu1 %v880_v5 }
  0x7f   :  { %1165 = vmatprep.subr.mxu1 %v1369_v3 }
  0x80   :  { %1166 = vmatpush3.msra.mxu1 %v879_v6 }
  0x81   :  { %1167 = vmatprep.subr.mxu1 %v1369_v3 }
  0x82   :  { %1168 = vmatpush3.msra.mxu1 %v878_v7 }
  0x83   :  { %1169 = vmatprep.subr.mxu1 %v1369_v3 }
  0x84   :  { %1170 = vmatpush3.msra.mxu1 %v877_v8 }
  0x85   :  { %1171 = vmatprep.subr.mxu1 %v1369_v3 }
  0x86   :  { %1172 = vmatpush3.msra.mxu1 %v876_v9 }
  0x87   :  { %1173 = vmatprep.subr.mxu1 %v1369_v3 }
  0x88   :  { %1174 = vmatpush3.msra.mxu1 %v875_v10  ;;  %v1493_v10 = vld [vmem:[%s1664_s1 + $0x8] sm:$0xff] }
  0x89   :  { %1175 = vmatprep.subr.mxu1 %v1369_v3 }
  0x8a   :  { %1176 = vmatpush3.msra.mxu1 %v874_v11 }
  0x8b   :  { %1177 = vmatprep.subr.mxu1 %v1369_v3 }
  0x8c   :  { %1178 = vmatpush3.msra.mxu1 %v873_v12 }
  0x8d   :  { %1179 = vmatprep.subr.mxu1 %v1369_v3 }
  0x8e   :  { %1180 = vmatpush3.msra.mxu1 %v872_v13 }
  0x8f   :  { %1181 = vmatprep.subr.mxu1 %v1369_v3 }
  0x90   :  { %1182 = vmatpush3.msra.mxu1 %v871_v14  ;;  %v1500_v14 = vld [vmem:[%s1664_s1 + $0x18] sm:$0xff] }
  0x91   :  { %1183 = vmatprep.subr.mxu1 %v1369_v3 }
  0x92   :  { %1184 = vmatpush3.msra.mxu1 %v870_v15 }
  0x93   :  { %1185 = vmatprep.subr.mxu1 %v1369_v3 }
  0x94   :  { %1186 = vmatpush3.msra.mxu1 %v869_v17 }
  0x95   :  { %1187 = vmatprep.subr.mxu1 %v1369_v3 }
  0x96   :  { %1188 = vmatpush3.msra.mxu1 %v868_v18 }
  0x97   :  { %1189 = vmatprep.subr.mxu1 %v1369_v3 }
  0x98   :  { %1190 = vmatpush3.msra.mxu1 %v867_v19  ;;  %v1507_v19 = vld [vmem:[%s1664_s1 + $0x20] sm:$0xff] }
 0x136   :  { %v295_v26 = vpop.f32.mrf.mxu0 }
 0x137   :  { %v296_v27 = vadd.f32 %v295_v26, %v212_v24 }
 0x138   :  { %v297_v30 = vpop.f32.mrf.mxu0 }
 0x139   :  { %v1087_v28 = vmul.f32 -1.442695, %v296_v27  ;;  %v298_v31 = vadd.f32 %v297_v30, %v216_v29  ;;  %v366_v36 = vpop.f32.mrf.mxu1  ;;  %v1514_v27 = vld [vmem:[%s1664_s1 + $0x28] sm:$0xff]  ;;  %v1521_v30 = vld [vmem:[%s1664_s1 + $0x30] sm:$0xff] }
 0x13a   :  { %v367_v45 = vadd.f32 %v366_v36, %v220_v42 }
 0x13b   :  { %1209 = vpow2.f32 %v1087_v28  ;;  %v1088_v32 = vmul.f32 -1.442695, %v298_v31  ;;  %v368_v40 = vpop.f32.mrf.mxu1 }
 0x13c   :  { %v369_v43 = vadd.f32 %v368_v40, %v224_v39 }
 0x13d   :  { %1211 = vpow2.f32 %v1088_v32 }
 0x148   :  { %v1210_v33 = vpop.eup %1209 }
 0x149   :  { %v374_v34 = vadd.f32 1.0, %v1210_v33  ;;  %v1528_v33 = vld [vmem:[%s1664_s1 + $0x38] sm:$0xff] }
 0x14a   :  { %v1212_v38 = vpop.eup %1211 }
 0x14b   :  { %1213 = vrcp.f32 %v374_v34  ;;  %v380_v41 = vadd.f32 1.0, %v1212_v38  ;;  %v522_v38 = vand.u32 127, %v209_v20 }
 0x14d   :  { %1215 = vrcp.f32 %v380_v41  ;;  %v1534_v40 = vsub.s32 %v522_v38, %v1456_v21 }
 0x158   :  { %v1214_v44 = vpop.eup %1213 }
 0x159   :  { %v383_v46 = vmul.f32 %v1214_v44, %v369_v43 }
 0x15a   :  { %v1216_v50 = vpop.eup %1215 }
 0x15b   :  { %v384_v47 = vadd.f32 %v383_v46, %v367_v45  ;;  %v386_v52 = vsub.f32 1.0, %v1216_v50  ;;  %v388_v55 = vmul.f32 %v1216_v50, %v1429_v16  ;;  %v1485_v16 = vld [vmem:[%s1664_s1 + $0x10] sm:$0xff]  ;;  %s1373_s1 = smov [#allocation10]  }
 0x15c   :  { %s1072_s17 = sshll.u32 %s1373_s1, 4  ;;  %s1073_s17 = int_to_ptr.vmem [resolvable:$true] %s1072_s17 }
 0x15d   :  { %1217 = vtanh.f32 %v384_v47  ;;  %s1333_s18 = scalar_lea.vmem %s1073_s17, 128  ;;  %p1338_p7 = scmp.lt.s32.totalorder %s1073_s17, %s1073_s17 }
 0x15e   :  { %p1334_p6 = scmp.ne.s32.totalorder %s1073_s17, %s1333_s18  ;;  %p1339_p8 = scmp.lt.s32.totalorder %s1333_s18, %s1333_s18 }
 0x160   :  { %p1340_p9 = por %p1339_p8, %p1338_p7 }
 0x162   :  { %p1341_p10 = pnand %p1340_p9, %p1334_p6 }
 0x16a   :  { %v1218_v53 = vpop.eup %1217 }
 0x16b   :  { %v387_v54 = vmul.f32 %v1218_v53, %v386_v52 }
 0x16d   :  { %v389_v57 = vadd.f32 %v388_v55, %v387_v54 }
 0x16f   :  { %1192 = vmatmul.mubr.f32.vlgmr.msra.gmra.mxu1 %v389_v57  ;;  %390 = vst [vmem:[#allocation10] sm:$0xff] %v389_v57  ;;  %v407_v58 = vrot.slane %v389_v57, %v406_v56  ;;  %v400_v59 = vcombine.high %v389_v57, %v389_v57 }
 0x171   :  { %v423_v60 = vrot.slane %v407_v58, %v406_v56  ;;  %v415_v61 = vcombine.high %v407_v58, %v407_v58  ;;  %v414_v62 = vrot.slane %v400_v59, %v406_v56 }
 0x173   :  { %v452_v0 = vrot.slane %v423_v60, %v1459_v22  ;;  %v445_v1 = vcombine.high %v423_v60, %v423_v60  ;;  %v437_v2 = vrot.slane %v415_v61, %v406_v56  ;;  %v430_v4 = vrot.slane %v414_v62, %v406_v56 }
 0x174   :  { %v416_v5 = vcombine.high %v414_v62, %v414_v62 }
 0x175   :  { %v489_v6 = vmul.f32 %v452_v0, %v1479_v63  ;;  %v460_v7 = vrot.slane %v445_v1, %v1459_v22  ;;  %v456_v8 = vrot.slane %v437_v2, %v1459_v22  ;;  %v447_v9 = vcombine.high %v437_v2, %v437_v2 }
 0x176   :  { %v444_v13 = vrot.slane %v416_v5, %v406_v56  ;;  %v468_v17 = vrot.slane %v430_v4, %v1459_v22  ;;  %v446_v18 = vcombine.high %v430_v4, %v430_v4  ;;  %v1372_v0 = vmov 0  }
 0x177   :  { %497 = vadd.xlane.f32.xlu0 %v489_v6  ;;  %v491_v11 = vmul.f32 %v460_v7, %v1485_v16  ;;  %v464_v12 = vrot.slane %v447_v9, %v1459_v22  ;;  %v490_v15 = vmul.f32 %v456_v8, %v1493_v10  ;;  %1207 = vset.pattern.permute.xlu1 %v1372_v0  ;;  %v593_v8 = vsub.s32 4, %v1456_v21 }
 0x178   :  { %v472_v24 = vrot.slane %v444_v13, %v1459_v22  ;;  %v448_v26 = vcombine.high %v444_v13, %v444_v13  ;;  %v493_v28 = vmul.f32 %v468_v17, %v1507_v19  ;;  %v476_v29 = vrot.slane %v446_v18, %v1459_v22  ;;  %1208 = vset.pattern.permute.xlu0 %v1372_v0 }
 0x179   :  { %501 = vadd.xlane.f32.xlu1 %v491_v11  ;;  %v492_v23 = vmul.f32 %v464_v12, %v1500_v14  ;;  %v597_v18 = vsub.s32 5, %v1456_v21 }
 0x17a   :  { %v494_v31 = vmul.f32 %v472_v24, %v1514_v27  ;;  %v480_v32 = vrot.slane %v448_v26, %v1459_v22  ;;  %v495_v34 = vmul.f32 %v476_v29, %v1521_v30 }
 0x17b   :  { %499 = vadd.xlane.f32.xlu0 %v490_v15 }
 0x17c   :  { %v496_v36 = vmul.f32 %v480_v32, %v1528_v33 }
 0x17d   :  { %503 = vadd.xlane.f32.xlu1 %v492_v23 }
 0x17f   :  { %505 = vadd.xlane.f32.xlu0 %v493_v28  ;;  %v601_v28 = vsub.s32 6, %v1456_v21 }
 0x181   :  { %507 = vadd.xlane.f32.xlu1 %v494_v31 }
 0x183   :  { %509 = vadd.xlane.f32.xlu0 %v495_v34  ;;  %v605_v34 = vsub.s32 7, %v1456_v21  ;;  %v897_v21 = vld [vmem:[#allocation7 + $0xf0] sm:$0xff] }
 0x185   :  { %511 = vadd.xlane.f32.xlu1 %v496_v36 }
 0x200   :  { %v498_v39 = vpop.xlane.xlu0 %497 }
 0x201   :  { %v526_v43 = vrot.slane %v498_v39, %v1534_v40 }
 0x202   :  { %v502_v41 = vpop.xlane.xlu1 %501 }
 0x203   :  { %v534_v45 = vrot.slane %v502_v41, %v1534_v40 }
 0x204   :  { %v500_v42 = vpop.xlane.xlu0 %499 }
 0x205   :  { %v530_v44 = vrot.slane %v500_v42, %v1534_v40 }
 0x206   :  { %v504_v46 = vpop.xlane.xlu1 %503 }
 0x207   :  { %v556_v47 = vsel %vm555_vm1, %v530_v44, %v526_v43  ;;  %v538_v20 = vrot.slane %v504_v46, %v1534_v40 }
 0x208   :  { %v558_v48 = vsel %vm557_vm2, %v534_v45, %v556_v47  ;;  %v506_v49 = vpop.xlane.xlu0 %505 }
 0x209   :  { %v560_v50 = vsel %vm559_vm3, %v538_v20, %v558_v48  ;;  %v542_v51 = vrot.slane %v506_v49, %v1534_v40 }
 0x20a   :  { %v508_v52 = vpop.xlane.xlu1 %507 }
 0x20b   :  { %v562_v53 = vsel %vm561_vm4, %v542_v51, %v560_v50  ;;  %v546_v54 = vrot.slane %v508_v52, %v1534_v40 }
 0x20c   :  { %v510_v55 = vpop.xlane.xlu0 %509 }
 0x20d   :  { %v550_v56 = vrot.slane %v510_v55, %v1534_v40  ;;  %v564_v57 = vsel %vm563_vm5, %v546_v54, %v562_v53 }
 0x20e   :  { %v512_v58 = vpop.xlane.xlu1 %511 }
 0x20f   :  { %v554_v59 = vrot.slane %v512_v58, %v1534_v40  ;;  %v566_v60 = vsel %vm565_vm6, %v550_v56, %v564_v57 }
 0x211   :  { %v568_v61 = vsel %vm567_vm7, %v554_v59, %v566_v60 }
 0x212   :  { %v571_v62 = vsel %vm570_vm8, %v568_v61, -inf }
 0x213   :  { %572 = vmax.xlane.f32.xlu0 %v571_v62 }
 0x22f   :  { %v1552_v1 = vpop.f32.mrf.mxu1 }
 0x231   :  { %v1193_v2 = vpop.f32.mrf.mxu1 }
 0x29c   :  { %v573_v4 = vpop.xlane.xlu0 %572 }
 0x29d   :  { %v578_v5 = vrot.slane %v573_v4, %v1459_v22  ;;  %v582_v6 = vrot.slane %v573_v4, %v1463_v25  ;;  %v586_v7 = vrot.slane %v573_v4, %v1470_v37  ;;  %v590_v9 = vrot.slane %v573_v4, %v1467_v35 }
 0x29e   :  { %v594_v23 = vrot.slane %v573_v4, %v593_v8  ;;  %v598_v29 = vrot.slane %v573_v4, %v597_v18  ;;  %v602_v36 = vrot.slane %v573_v4, %v601_v28 }
 0x29f   :  { %v615_v11 = vsub.f32 %v498_v39, %v578_v5  ;;  %v616_v12 = vsub.f32 %v500_v42, %v582_v6  ;;  %v617_v13 = vsub.f32 %v502_v41, %v586_v7  ;;  %v618_v24 = vsub.f32 %v504_v46, %v590_v9 }
 0x2a0   :  { %v619_v31 = vsub.f32 %v506_v49, %v594_v23  ;;  %v620_v38 = vsub.f32 %v508_v52, %v598_v29  ;;  %v606_v41 = vrot.slane %v573_v4, %v605_v34  ;;  %v621_v42 = vsub.f32 %v510_v55, %v602_v36 }
 0x2a1   :  { %v623_v15 = vmul.f32 1.442695, %v615_v11  ;;  %v625_v17 = vmul.f32 1.442695, %v616_v12  ;;  %v627_v26 = vmul.f32 1.442695, %v617_v13 }
 0x2a2   :  { %v629_v32 = vmul.f32 1.442695, %v618_v24  ;;  %v631_v39 = vmul.f32 1.442695, %v619_v31  ;;  %v633_v43 = vmul.f32 1.442695, %v620_v38  ;;  %v622_v46 = vsub.f32 %v512_v58, %v606_v41 }
 0x2a3   :  { %1219 = vpow2.f32 %v623_v15  ;;  %v635_v47 = vmul.f32 1.442695, %v621_v42 }
 0x2a4   :  { %1221 = vpow2.f32 %v625_v17  ;;  %v637_v48 = vmul.f32 1.442695, %v622_v46 }
 0x2a5   :  { %1223 = vpow2.f32 %v627_v26 }
 0x2a6   :  { %1225 = vpow2.f32 %v629_v32 }
 0x2a7   :  { %1227 = vpow2.f32 %v631_v39 }
 0x2a8   :  { %1229 = vpow2.f32 %v633_v43 }
 0x2a9   :  { %1231 = vpow2.f32 %v635_v47  ;;  %v898_v47 = vld [vmem:[#allocation7 + $0xf8] sm:$0xff] }
 0x2aa   :  { %1233 = vpow2.f32 %v637_v48  ;;  %1125 = vmatpush3.msra.mxu0 %v898_v47 }
 0x2ab   :  { %1126 = vmatprep.subr.mxu0 %v1369_v3 }
 0x2ac   :  { %1127 = vmatpush3.msra.mxu0 %v897_v21 }
 0x2ad   :  { %1128 = vmatprep.subr.mxu0 %v1369_v3 }
 0x2b0   :  { %v1220_v44 = vpop.eup %1219 }
 0x2b1   :  { %v1570_v45 = vpop.eup %1221  ;;  %648 = vperm.xlu1 %1207, %v1220_v44  }
 0x2b2   :  { %651 = vperm.xlu0 %1208, %v1570_v45   ;;  %v1573_v20 = vpop.eup %1223 }
 0x2b3   :  { %v1576_v49 = vpop.eup %1225 }
 0x2b4   :  { %v1579_v50 = vpop.eup %1227 }
 0x2b5   :  { %654 = vperm.xlu1 %1207, %v1573_v20   ;;  %v1582_v51 = vpop.eup %1229 }
 0x2b6   :  { %v1585_v52 = vpop.eup %1231 }
 0x2b7   :  { %v1588_v53 = vpop.eup %1233 }
 0x2b9   :  { %657 = vperm.xlu1 %1207, %v1576_v49  }
 0x2bd   :  { %660 = vperm.xlu1 %1207, %v1579_v50  }
 0x2c1   :  { %663 = vperm.xlu1 %1207, %v1582_v51  }
 0x2c5   :  { %666 = vperm.xlu1 %1207, %v1585_v52  }
 0x2c9   :  { %669 = vperm.xlu1 %1207, %v1588_v53  }
 0x32c   :  { %v649_v54 = vpop.permute.xlu1 %648 }
 0x32d   :  { %v652_v58 = vpop.permute.xlu0 %651  ;;  %v674_v61 = vrot.slane %v649_v54, %v1534_v40  ;;  %v894_v54 = vld [vmem:[#allocation7 + $0xd8] sm:$0xff] }
 0x32e   :  { %v678_v60 = vrot.slane %v652_v58, %v1534_v40  ;;  %v890_v58 = vld [vmem:[#allocation7 + $0xb8] sm:$0xff] }
 0x330   :  { %v655_v55 = vpop.permute.xlu1 %654  ;;  %v703_v5 = vsel %vm555_vm1, %v678_v60, %v674_v61  ;;  %v887_v60 = vld [vmem:[#allocation7 + $0xa0] sm:$0xff]  ;;  %v886_v61 = vld [vmem:[#allocation7 + $0x98] sm:$0xff] }
 0x331   :  { %v682_v62 = vrot.slane %v655_v55, %v1534_v40 }
 0x333   :  { %v704_v7 = vsel %vm557_vm2, %v682_v62, %v703_v5  ;;  %v885_v62 = vld [vmem:[#allocation7 + $0x90] sm:$0xff] }
 0x334   :  { %v658_v56 = vpop.permute.xlu1 %657 }
 0x335   :  { %v686_v0 = vrot.slane %v658_v56, %v1534_v40 }
 0x337   :  { %v705_v11 = vsel %vm559_vm3, %v686_v0, %v704_v7  ;;  %v884_v0 = vld [vmem:[#allocation7 + $0x88] sm:$0xff] }
 0x338   :  { %v661_v57 = vpop.permute.xlu1 %660 }
 0x339   :  { %v690_v2 = vrot.slane %v661_v57, %v1534_v40  ;;  %v892_v57 = vld [vmem:[#allocation7 + $0xc8] sm:$0xff] }
 0x33b   :  { %v706_v12 = vsel %vm561_vm4, %v690_v2, %v705_v11  ;;  %v883_v2 = vld [vmem:[#allocation7 + $0x80] sm:$0xff] }
 0x33c   :  { %v664_v59 = vpop.permute.xlu1 %663 }
 0x33d   :  { %v694_v6 = vrot.slane %v664_v59, %v1534_v40  ;;  %v889_v59 = vld [vmem:[#allocation7 + $0xb0] sm:$0xff] }
 0x33f   :  { %v707_v15 = vsel %vm563_vm5, %v694_v6, %v706_v12 }
 0x340   :  { %v667_v4 = vpop.permute.xlu1 %666 }
 0x341   :  { %v698_v9 = vrot.slane %v667_v4, %v1534_v40 }
 0x343   :  { %v708_v23 = vsel %vm565_vm6, %v698_v9, %v707_v15 }
 0x344   :  { %v670_v13 = vpop.permute.xlu1 %669 }
 0x345   :  { %v702_v17 = vrot.slane %v670_v13, %v1534_v40 }
 0x347   :  { %v709_v24 = vsel %vm567_vm7, %v702_v17, %v708_v23 }
 0x348   :  { %v711_v26 = vsel %vm570_vm8, %v709_v24, 0.0 }
 0x349   :  { %712 = vadd.xlane.f32.xlu1 %v711_v26 }
 0x3d2   :  { %v713_v29 = vpop.xlane.xlu1 %712 }
 0x3d3   :  { %v718_v31 = vrot.slane %v713_v29, %v1459_v22  ;;  %v722_v32 = vrot.slane %v713_v29, %v1463_v25  ;;  %v726_v36 = vrot.slane %v713_v29, %v1470_v37  ;;  %v730_v38 = vrot.slane %v713_v29, %v1467_v35 }
 0x3d4   :  { %v734_v40 = vrot.slane %v713_v29, %v593_v8  ;;  %v738_v41 = vrot.slane %v713_v29, %v597_v18  ;;  %v742_v25 = vrot.slane %v713_v29, %v601_v28  ;;  %v746_v8 = vrot.slane %v713_v29, %v605_v34 }
 0x3d5   :  { %1235 = vrcp.f32 %v718_v31 }
 0x3d6   :  { %1237 = vrcp.f32 %v722_v32 }
 0x3d7   :  { %1239 = vrcp.f32 %v726_v36 }
 0x3d8   :  { %1241 = vrcp.f32 %v730_v38 }
 0x3d9   :  { %1243 = vrcp.f32 %v734_v40 }
 0x3da   :  { %1245 = vrcp.f32 %v738_v41 }
 0x3db   :  { %1247 = vrcp.f32 %v742_v25 }
 0x3dc   :  { %1249 = vrcp.f32 %v746_v8 }
 0x3e2   :  { %v1236_v39 = vpop.eup %1235 }
 0x3e3   :  { %v756_v42 = vmul.f32 %v1236_v39, %v1220_v44  ;;  %v1238_v22 = vpop.eup %1237 }
 0x3e4   :  { %v758_v37 = vmul.f32 %v1238_v22, %v1570_v45  ;;  %v1240_v35 = vpop.eup %1239  ;;  %v896_v45 = vld [vmem:[#allocation7 + $0xe8] sm:$0xff] }
 0x3e5   :  { %773 = vperm.xlu0 %1208, %v756_v42   ;;  %v760_v43 = vmul.f32 %v1240_v35, %v1573_v20  ;;  %v1242_v46 = vpop.eup %1241  ;;  %1129 = vmatpush3.msra.mxu0 %v896_v45 }
 0x3e6   :  { %v762_v18 = vmul.f32 %v1242_v46, %v1576_v49  ;;  %v1244_v44 = vpop.eup %1243  ;;  %1130 = vmatprep.subr.mxu0 %v1369_v3  ;;  %v895_v49 = vld [vmem:[#allocation7 + $0xe0] sm:$0xff] }
 0x3e7   :  { %v764_v28 = vmul.f32 %v1244_v44, %v1579_v50  ;;  %v1246_v48 = vpop.eup %1245  ;;  %1131 = vmatpush3.msra.mxu0 %v895_v49 }
 0x3e8   :  { %v766_v34 = vmul.f32 %v1246_v48, %v1582_v51  ;;  %v1248_v20 = vpop.eup %1247  ;;  %1132 = vmatprep.subr.mxu0 %v1369_v3  ;;  %v893_v51 = vld [vmem:[#allocation7 + $0xd0] sm:$0xff] }
 0x3e9   :  { %778 = vperm.xlu0 %1208, %v758_v37   ;;  %v768_v50 = vmul.f32 %v1248_v20, %v1585_v52  ;;  %v1250_v55 = vpop.eup %1249  ;;  %1133 = vmatpush3.msra.mxu0 %v894_v54  ;;  %v891_v52 = vld [vmem:[#allocation7 + $0xc0] sm:$0xff] }
 0x3ea   :  { %1134 = vmatprep.subr.mxu0 %v1369_v3  ;;  %v770_v56 = vmul.f32 %v1250_v55, %v1588_v53  ;;  %v888_v53 = vld [vmem:[#allocation7 + $0xa8] sm:$0xff] }
 0x3eb   :  { %1135 = vmatpush3.msra.mxu0 %v893_v51 }
 0x3ec   :  { %1136 = vmatprep.subr.mxu0 %v1369_v3 }
 0x3ed   :  { %783 = vperm.xlu0 %1208, %v760_v43   ;;  %1137 = vmatpush3.msra.mxu0 %v892_v57 }
 0x3ee   :  { %1138 = vmatprep.subr.mxu0 %v1369_v3 }
 0x3ef   :  { %1139 = vmatpush3.msra.mxu0 %v891_v52 }
 0x3f0   :  { %1140 = vmatprep.subr.mxu0 %v1369_v3 }
 0x3f1   :  { %788 = vperm.xlu0 %1208, %v762_v18   ;;  %1141 = vmatpush3.msra.mxu0 %v890_v58 }
 0x3f2   :  { %1142 = vmatprep.subr.mxu0 %v1369_v3 }
 0x3f3   :  { %1143 = vmatpush3.msra.mxu0 %v889_v59 }
 0x3f4   :  { %1144 = vmatprep.subr.mxu0 %v1369_v3 }
 0x3f5   :  { %793 = vperm.xlu0 %1208, %v764_v28   ;;  %1145 = vmatpush3.msra.mxu0 %v888_v53 }
 0x3f6   :  { %1146 = vmatprep.subr.mxu0 %v1369_v3 }
 0x3f7   :  { %1147 = vmatpush3.msra.mxu0 %v887_v60 }
 0x3f8   :  { %1148 = vmatprep.subr.mxu0 %v1369_v3 }
 0x3f9   :  { %798 = vperm.xlu0 %1208, %v766_v34   ;;  %1149 = vmatpush3.msra.mxu0 %v886_v61 }
 0x3fa   :  { %1150 = vmatprep.subr.mxu0 %v1369_v3 }
 0x3fb   :  { %1151 = vmatpush3.msra.mxu0 %v885_v62 }
 0x3fc   :  { %1152 = vmatprep.subr.mxu0 %v1369_v3 }
 0x3fd   :  { %803 = vperm.xlu0 %1208, %v768_v50   ;;  %1153 = vmatpush3.msra.mxu0 %v884_v0 }
 0x3fe   :  { %1154 = vmatprep.subr.mxu0 %v1369_v3 }
 0x3ff   :  { %1155 = vmatpush3.msra.mxu0 %v883_v2 }
 0x401   :  { %808 = vperm.xlu0 %1208, %v770_v56  }
 0x460   :  { %v774_v4 = vpop.permute.xlu0 %773 }
 0x461   :  { %v811_v11 = vmul.f32 %v774_v4, %v1479_v63 }
 0x463   :  { %v819_v23 = vrot.slane %v811_v11, 4 }
 0x464   :  { %v779_v5 = vpop.permute.xlu0 %778 }
 0x465   :  { %v812_v7 = vmul.f32 %v779_v5, %v1493_v10  ;;  %v820_v32 = vadd.f32 %v819_v23, %v811_v11 }
 0x467   :  { %v825_v13 = vrot.slane %v812_v7, 4  ;;  %v821_v41 = vrot.slane %v820_v32, 2 }
 0x468   :  { %v784_v6 = vpop.permute.xlu0 %783 }
 0x469   :  { %v813_v9 = vmul.f32 %v784_v6, %v1485_v16  ;;  %v826_v29 = vadd.f32 %v825_v13, %v812_v7  ;;  %v822_v43 = vadd.f32 %v821_v41, %v820_v32 }
 0x46b   :  { %v831_v17 = vrot.slane %v813_v9, 4  ;;  %v827_v40 = vrot.slane %v826_v29, 2  ;;  %v823_v20 = vrot.slane %v822_v43, 1 }
 0x46c   :  { %v789_v12 = vpop.permute.xlu0 %788 }
 0x46d   :  { %v814_v15 = vmul.f32 %v789_v12, %v1500_v14  ;;  %v832_v31 = vadd.f32 %v831_v17, %v813_v9  ;;  %v828_v37 = vadd.f32 %v827_v40, %v826_v29  ;;  %v824_v58 = vadd.f32 %v823_v20, %v822_v43 }
 0x46f   :  { %v837_v24 = vrot.slane %v814_v15, 4  ;;  %v833_v39 = vrot.slane %v832_v31, 2  ;;  %v829_v48 = vrot.slane %v828_v37, 1 }
 0x470   :  { %v794_v26 = vpop.permute.xlu0 %793 }
 0x471   :  { %v815_v3 = vmul.f32 %v794_v26, %v1507_v19  ;;  %v838_v36 = vadd.f32 %v837_v24, %v814_v15  ;;  %v834_v19 = vadd.f32 %v833_v39, %v832_v31  ;;  %v830_v51 = vadd.f32 %v829_v48, %v828_v37 }
 0x473   :  { %v843_v38 = vrot.slane %v815_v3, 4  ;;  %v839_v42 = vrot.slane %v838_v36, 2  ;;  %v835_v45 = vrot.slane %v834_v19, 1  ;;  %v907_v62 = vsel %vm555_vm1, %v830_v51, %v824_v58 }
 0x474   :  { %v799_v10 = vpop.permute.xlu0 %798 }
 0x475   :  { %v844_v16 = vadd.f32 %v843_v38, %v815_v3  ;;  %v816_v63 = vmul.f32 %v799_v10, %v1514_v27  ;;  %v840_v46 = vadd.f32 %v839_v42, %v838_v36  ;;  %v836_v52 = vadd.f32 %v835_v45, %v834_v19 }
 0x477   :  { %v849_v14 = vrot.slane %v816_v63, 4  ;;  %v845_v22 = vrot.slane %v844_v16, 2  ;;  %v841_v49 = vrot.slane %v840_v46, 1  ;;  %v908_v2 = vsel %vm557_vm2, %v836_v52, %v907_v62 }
 0x478   :  { %v804_v25 = vpop.permute.xlu0 %803 }
 0x479   :  { %v850_v35 = vadd.f32 %v849_v14, %v816_v63  ;;  %v817_v8 = vmul.f32 %v804_v25, %v1521_v30  ;;  %v846_v28 = vadd.f32 %v845_v22, %v844_v16  ;;  %v842_v59 = vadd.f32 %v841_v49, %v840_v46 }
 0x47b   :  { %v851_v18 = vrot.slane %v850_v35, 2  ;;  %v855_v44 = vrot.slane %v817_v8, 4  ;;  %v847_v55 = vrot.slane %v846_v28, 1  ;;  %v909_v5 = vsel %vm559_vm3, %v842_v59, %v908_v2 }
 0x47c   :  { %v809_v47 = vpop.permute.xlu0 %808 }
 0x47d   :  { %v852_v21 = vadd.f32 %v851_v18, %v850_v35  ;;  %v856_v27 = vadd.f32 %v855_v44, %v817_v8  ;;  %v818_v34 = vmul.f32 %v809_v47, %v1528_v33  ;;  %v848_v61 = vadd.f32 %v847_v55, %v846_v28 }
 0x47f   :  { %v857_v50 = vrot.slane %v856_v27, 2  ;;  %v861_v54 = vrot.slane %v818_v34, 4  ;;  %v853_v30 = vrot.slane %v852_v21, 1  ;;  %v910_v7 = vsel %vm561_vm4, %v848_v61, %v909_v5 }
 0x481   :  { %v858_v56 = vadd.f32 %v857_v50, %v856_v27  ;;  %v862_v57 = vadd.f32 %v861_v54, %v818_v34  ;;  %v854_v0 = vadd.f32 %v853_v30, %v852_v21 }
 0x483   :  { %v859_v53 = vrot.slane %v858_v56, 1  ;;  %v863_v60 = vrot.slane %v862_v57, 2  ;;  %v911_v11 = vsel %vm563_vm5, %v854_v0, %v910_v7 }
 0x485   :  { %v864_v33 = vadd.f32 %v863_v60, %v862_v57  ;;  %v860_v4 = vadd.f32 %v859_v53, %v858_v56 }
 0x487   :  { %v865_v6 = vrot.slane %v864_v33, 1  ;;  %v912_v12 = vsel %vm565_vm6, %v860_v4, %v911_v11 }
 0x489   :  { %v866_v9 = vadd.f32 %v865_v6, %v864_v33 }
 0x48b   :  { %v913_v13 = vsel %vm567_vm7, %v866_v9, %v912_v12 }
 0x48c   :  { %1157 = vmatmul.mubr.f32.vlgmr.msra.gmra.mxu0 %v913_v13 }
 0x48d   :  { %1344 = shalt.err (!%p1341_p10)
}
 0x48e   :  { %1075 = dma.vmem_to_hbm [thread:$0]  %s1073_s17, 128, %s1669_s6, [#allocation4]   ;;  %v1089_v17 = vld [vmem:[#allocation8] ss:$0 sm:$0xff] }
 0x54c   :  { %v981_v15 = vpop.f32.mrf.mxu0 }
 0x54d   :  { %v1052_v23 = vadd.f32 %v1552_v1, %v981_v15 }
 0x54e   :  { %v1158_v24 = vpop.f32.mrf.mxu0 }
 0x54f   :  { %v1062_v26 = vadd.f32 %v1089_v17, %v1052_v23 }
 0x551   :  { %1251 = vtanh.f32 %v1062_v26 }
 0x55e   :  { %v1252_v29 = vpop.eup %1251 }
 0x55f   :  { %v1064_v3 = vpack.c.bf16 %v1252_v29, %v1252_v29 }
 0x561   :  { %1065 = vst [vmem:[%s1670_s7] sm:$0xf] %v1064_v3 }
 0x562   :  { %1359 = dma.done.wait [#allocation4], 128  }
 0x563   :  { %1360 = vsyncadd [#allocation4], 4294967168 }
 0x564   :  { %1083 = vsyncpa [#allocation3], 1 }
 0x565   :  { %1084 = vsyncpa [#allocation6], 1 }
 0x566   :  { %1085 = vsyncpa [#allocation9], 1 }
 0x567   :  { %1086 = vsyncpa [#allocation4], 1 }

// kernel: decoder_forward.3
= control target key start
LH: loop header
LB: loop body
LE: loop exit
PB: predicated region body
PF: predicated region fallthrough
CT: control target
= control target key end

     0   :  { %s4421_s0 = inlined_call_operand.vmem [shape: bf16[8,128], index: 0, kind: input, shape index: {}]   ;;  %s4422_s1 = inlined_call_operand.vmem [shape: bf16[128,36294], index: 1, kind: input, shape index: {}]   ;;  %s4423_s2 = inlined_call_operand.vmem [shape: f32[1,36294], index: 2, kind: input, shape index: {}]   ;;  %s4424_s3 = inlined_call_operand.hbm [shape: f32[8,36294], index: 3, kind: output, shape index: {}]  }
   0x1   :  { %4425 = sst [smem:[#allocation6_spill]] %s4422_s1 }
   0x2   :  { %8 = vsyncpa [#allocation4], 0 }
   0x3   :  { %10 = vsyncpa [#allocation4 + $0x1], 0  ;;  %s3344_s12 = smov 0   ;;  %s3346_s13 = smov 0  }
   0x4   :  { %s3348_s14 = smov 0   ;;  %s3350_s15 = smov 0  }
   0x5 LB: > { %s3365_s16 = sadd.s32 4294967295, %s3254_s15   ;;  %s2722_s17 = sadd.s32 4294967294, %s3254_s15   ;;  %s3254_s15 = sphi %s3350_s15, %s4448_s15   ;;  %s3250_s14 = sphi %s3348_s14, %s4447_s14   ;;  %s3246_s13 = sphi %s3346_s13, %s4446_s13   ;;  %s3242_s12 = sphi %s3344_s12, %s4445_s12  }
   0x6   : > { %s3369_s18 = sadd.s32 1, %s3254_s15   ;;  %s44_s19 = sadd.s32 1, %s3250_s14 }
   0x7   : > { %s41_s20 = ssub.s32 %s3254_s15, %s3369_s18  ;;  %p51_p0 = scmp.ne.s32.totalorder %s3250_s14, %s3246_s13 }
   0x8   : > { %p42_p1 = scmp.eq.s32.totalorder %s41_s20, 0  ;;  %p52_p2 = scmp.eq.s32.totalorder %s3254_s15, 0 }
   0x9   : > { %p107_p3 = scmp.eq.s32.totalorder %s3365_s16, 11  ;;  %p112_p4 = scmp.ne.s32.totalorder %s3246_s13, %s3242_s12 }
   0xa   : > { %s3381_s21 = scalar_select %p42_p1, %s3250_s14, %s44_s19  }
   0xb   : > { %p53_p5 = por %p52_p2, %p51_p0  ;;  %p3383_p6 = por %p107_p3, %p51_p0 }
   0xc   : > { %p113_p7 = scmp.eq.s32.totalorder %s2722_s17, 11  ;;  %p2724_p9 = scmp.ge.s32.totalorder %s3254_s15, 12 }
   0xe   : > { %p3387_p8 = por %p113_p7, %p112_p4  ;;  %132 = sbr.rel (%p2724_p9) target bundleno = 203 (0xcb), region = 20 }
  0x13   : > { %135 = sbr.rel (!%p53_p5) target bundleno = 203 (0xcb), region = 24  ;;  %s137_s24 = sand.u32 (%p53_p5), 1, %s3250_s14  }
  0x14   : > { %s140_s25 = smul.u32 (%p53_p5), 24, %s3254_s15  ;;  %s4428_s1 = sld [smem:[#allocation6_spill]] (%p53_p5) }
  0x15   : > { %s2958_s26 = smul.u32 (%p53_p5), 1536, %s137_s24 }
  0x16   : > { %s141_s27 = ssub.s32 (%p53_p5), 284, %s140_s25  ;;  %s2952_s28 = smul.u32 (%p53_p5), 96, %s3254_s15 }
  0x17   : > { %p142_p10 = scmp.lt.s32.totalorder (%p53_p5), %s141_s27, 24  ;;  %s3402_s7 = scalar_lea.vmem (%p53_p5), [#allocation2], %s2958_s26  }
  0x19   : > { %s4450_s27 = smov (!%p142_p10, %s141_s27), 24 }
  0x1a   : > { %s3398_s4 = scalar_lea.vmem %s4428_s1, %s2952_s28   ;;  %s2725_s5 = sshll.u32 %s4450_s27, 10 }
  0x1b   : > { %s3400_s6 = sshll.u32 %s4450_s27, 2  ;;  %p2729_p11 = scmp.eq.s32.totalorder %s2725_s5, 0 }
  0x1c   : > { %p152_p12 = scmp.lt.u32.totalorder (!%p2729_p11), %s3400_s6, 8 }
  0x1d   : > { %151 = sbr.rel (%p2729_p11) target bundleno = 203 (0xcb), region = 28 }
  0x22   : > { %155 = sbr.rel (%p152_p12) target bundleno = 180 (0xb4), region = 32  ;;  %s3406_s8 = sand.u32 (!%p152_p12), 7, %s3400_s6  }
  0x23   : > { %p202_p13 = scmp.eq.s32.totalorder (!%p152_p12), %s3406_s8, 0  ;;  %p2730_p0 = scmp.ne.s32.totalorder (!%p152_p12), %s3406_s8, 0 }
  0x27   : > { %205 = sbr.rel (%p2730_p0) target bundleno = 100 (0x64), region = 47  ;;  %s206_s9 = sshrl.u32 (!%p2730_p0), %s3400_s6, 3 }
  0x28   : > { %s3413_s10 = sshrl.u32 (!%p2730_p0), %s206_s9, 2 }
  0x29   : > { %p2731_p1 = scmp.le.s32.totalorder (!%p2730_p0), %s3413_s10, 0 }
  0x2c   : > { %2644 = sbr.rel (%p2731_p1) target bundleno = 82 (0x52), region = 153  ;;  %s4429_s11 = smov (!%p2731_p1), %s3402_s7 }
  0x2d   : > { %s4430_s17 = smov (!%p2731_p1), %s3398_s4  ;;  %s3422_s19 = smov (!%p2731_p1), 0  }
  0x2e   : > { %s3424_s20 = smov (!%p2731_p1), 0  }
  0x31 LB: >> { %v219_v0 = vld [vmem:[%s3262_s17] sm:$0xff]  ;;  %v221_v1 = vld [vmem:[%s3262_s17 + $0x8] sm:$0xff]  ;;  %v223_v2 = vld [vmem:[%s3262_s17 + $0x10] sm:$0xff]  ;;  %s347_s24 = sadd.s32 1, %s3266_s19  ;;  %s213_s20 = sadd.s32 1, %s3270_s20   ;;  %s3270_s20 = sphi %s3424_s20, %s213_s20   ;;  %s3266_s19 = sphi %s3422_s19, %s4433_s19   ;;  %s3262_s17 = sphi %s4430_s17, %s4432_s17   ;;  %s3258_s11 = sphi %s4429_s11, %s4431_s11  }
  0x32   : >> { %220 = vst [vmem:[%s3258_s11] sm:$0xff] %v219_v0  ;;  %222 = vst [vmem:[%s3258_s11 + $0x8] sm:$0xff] %v221_v1  ;;  %v225_v3 = vld [vmem:[%s3262_s17 + $0x18] sm:$0xff]  ;;  %v227_v4 = vld [vmem:[%s3262_s17 + $0x470] sm:$0xff]  ;;  %p348_p2 = scmp.ge.s32.totalorder %s347_s24, %s3413_s10  ;;  %p212_p3 = scmp.ge.s32.totalorder %s213_s20, %s3413_s10 }
  0x33   : >> { %224 = vst [vmem:[%s3258_s11 + $0x10] sm:$0xff] %v223_v2  ;;  %v229_v5 = vld [vmem:[%s3262_s17 + $0x478] sm:$0xff]  ;;  %226 = vst [vmem:[%s3258_s11 + $0x18] sm:$0xff] %v225_v3  ;;  %v231_v6 = vld [vmem:[%s3262_s17 + $0x480] sm:$0xff] }
  0x34   : >> { %228 = vst [vmem:[%s3258_s11 + $0x60] sm:$0xff] %v227_v4  ;;  %230 = vst [vmem:[%s3258_s11 + $0x68] sm:$0xff] %v229_v5  ;;  %v233_v7 = vld [vmem:[%s3262_s17 + $0x488] sm:$0xff]  ;;  %v235_v8 = vld [vmem:[%s3262_s17 + $0x8e0] sm:$0xff]  ;;  %s4452_s24 = smov (%p348_p2, %s347_s24), 0 }
  0x35   : >> { %232 = vst [vmem:[%s3258_s11 + $0x70] sm:$0xff] %v231_v6  ;;  %234 = vst [vmem:[%s3258_s11 + $0x78] sm:$0xff] %v233_v7  ;;  %v237_v9 = vld [vmem:[%s3262_s17 + $0x8e8] sm:$0xff]  ;;  %v239_v10 = vld [vmem:[%s3262_s17 + $0x8f0] sm:$0xff]  ;;  %s2732_s25 = sshll.u32 %s4452_s24, 5  ;;  %s4433_s19 = smov %s4452_s24 }
  0x36   : >> { %236 = vst [vmem:[%s3258_s11 + $0xc0] sm:$0xff] %v235_v8  ;;  %v241_v11 = vld [vmem:[%s3262_s17 + $0x8f8] sm:$0xff]  ;;  %238 = vst [vmem:[%s3258_s11 + $0xc8] sm:$0xff] %v237_v9  ;;  %v243_v12 = vld [vmem:[%s3262_s17 + $0xd50] sm:$0xff]  ;;  %s3480_s26 = scalar_lea.vmem %s3398_s4, %s2732_s25   ;;  %s3483_s27 = scalar_lea.vmem %s3402_s7, %s2732_s25 [#allocation2]  }
  0x37   : >> { %240 = vst [vmem:[%s3258_s11 + $0xd0] sm:$0xff] %v239_v10  ;;  %242 = vst [vmem:[%s3258_s11 + $0xd8] sm:$0xff] %v241_v11  ;;  %v245_v13 = vld [vmem:[%s3262_s17 + $0xd58] sm:$0xff]  ;;  %v247_v14 = vld [vmem:[%s3262_s17 + $0xd60] sm:$0xff] }
  0x38   : >> { %244 = vst [vmem:[%s3258_s11 + $0x120] sm:$0xff] %v243_v12  ;;  %246 = vst [vmem:[%s3258_s11 + $0x128] sm:$0xff] %v245_v13  ;;  %v249_v15 = vld [vmem:[%s3262_s17 + $0xd68] sm:$0xff]  ;;  %v251_v16 = vld [vmem:[%s3262_s17 + $0x11c0] sm:$0xff] }
  0x39   : >> { %248 = vst [vmem:[%s3258_s11 + $0x130] sm:$0xff] %v247_v14  ;;  %v253_v17 = vld [vmem:[%s3262_s17 + $0x11c8] sm:$0xff]  ;;  %250 = vst [vmem:[%s3258_s11 + $0x138] sm:$0xff] %v249_v15  ;;  %v255_v18 = vld [vmem:[%s3262_s17 + $0x11d0] sm:$0xff] }
  0x3a   : >> { %252 = vst [vmem:[%s3258_s11 + $0x180] sm:$0xff] %v251_v16  ;;  %254 = vst [vmem:[%s3258_s11 + $0x188] sm:$0xff] %v253_v17  ;;  %v257_v19 = vld [vmem:[%s3262_s17 + $0x11d8] sm:$0xff]  ;;  %v259_v20 = vld [vmem:[%s3262_s17 + $0x1630] sm:$0xff] }
  0x3b   : >> { %256 = vst [vmem:[%s3258_s11 + $0x190] sm:$0xff] %v255_v18  ;;  %258 = vst [vmem:[%s3258_s11 + $0x198] sm:$0xff] %v257_v19  ;;  %v261_v21 = vld [vmem:[%s3262_s17 + $0x1638] sm:$0xff]  ;;  %v263_v22 = vld [vmem:[%s3262_s17 + $0x1640] sm:$0xff] }
  0x3c   : >> { %260 = vst [vmem:[%s3258_s11 + $0x1e0] sm:$0xff] %v259_v20  ;;  %v265_v23 = vld [vmem:[%s3262_s17 + $0x1648] sm:$0xff]  ;;  %262 = vst [vmem:[%s3258_s11 + $0x1e8] sm:$0xff] %v261_v21  ;;  %v267_v24 = vld [vmem:[%s3262_s17 + $0x1aa0] sm:$0xff] }
  0x3d   : >> { %264 = vst [vmem:[%s3258_s11 + $0x1f0] sm:$0xff] %v263_v22  ;;  %266 = vst [vmem:[%s3258_s11 + $0x1f8] sm:$0xff] %v265_v23  ;;  %v269_v25 = vld [vmem:[%s3262_s17 + $0x1aa8] sm:$0xff]  ;;  %v271_v26 = vld [vmem:[%s3262_s17 + $0x1ab0] sm:$0xff] }
  0x3e   : >> { %268 = vst [vmem:[%s3258_s11 + $0x240] sm:$0xff] %v267_v24  ;;  %270 = vst [vmem:[%s3258_s11 + $0x248] sm:$0xff] %v269_v25  ;;  %v273_v27 = vld [vmem:[%s3262_s17 + $0x1ab8] sm:$0xff]  ;;  %v275_v28 = vld [vmem:[%s3262_s17 + $0x1f10] sm:$0xff] }
  0x3f   : >> { %272 = vst [vmem:[%s3258_s11 + $0x250] sm:$0xff] %v271_v26  ;;  %v277_v29 = vld [vmem:[%s3262_s17 + $0x1f18] sm:$0xff]  ;;  %274 = vst [vmem:[%s3258_s11 + $0x258] sm:$0xff] %v273_v27  ;;  %v279_v30 = vld [vmem:[%s3262_s17 + $0x1f20] sm:$0xff] }
  0x40   : >> { %276 = vst [vmem:[%s3258_s11 + $0x2a0] sm:$0xff] %v275_v28  ;;  %278 = vst [vmem:[%s3258_s11 + $0x2a8] sm:$0xff] %v277_v29  ;;  %v281_v31 = vld [vmem:[%s3262_s17 + $0x1f28] sm:$0xff]  ;;  %v283_v32 = vld [vmem:[%s3262_s17 + $0x2380] sm:$0xff] }
  0x41   : >> { %280 = vst [vmem:[%s3258_s11 + $0x2b0] sm:$0xff] %v279_v30  ;;  %282 = vst [vmem:[%s3258_s11 + $0x2b8] sm:$0xff] %v281_v31  ;;  %v285_v33 = vld [vmem:[%s3262_s17 + $0x2388] sm:$0xff]  ;;  %v287_v34 = vld [vmem:[%s3262_s17 + $0x2390] sm:$0xff] }
  0x42   : >> { %284 = vst [vmem:[%s3258_s11 + $0x300] sm:$0xff] %v283_v32  ;;  %v289_v35 = vld [vmem:[%s3262_s17 + $0x2398] sm:$0xff]  ;;  %286 = vst [vmem:[%s3258_s11 + $0x308] sm:$0xff] %v285_v33  ;;  %v291_v36 = vld [vmem:[%s3262_s17 + $0x27f0] sm:$0xff] }
  0x43   : >> { %288 = vst [vmem:[%s3258_s11 + $0x310] sm:$0xff] %v287_v34  ;;  %290 = vst [vmem:[%s3258_s11 + $0x318] sm:$0xff] %v289_v35  ;;  %v293_v37 = vld [vmem:[%s3262_s17 + $0x27f8] sm:$0xff]  ;;  %v295_v38 = vld [vmem:[%s3262_s17 + $0x2800] sm:$0xff] }
  0x44   : >> { %292 = vst [vmem:[%s3258_s11 + $0x360] sm:$0xff] %v291_v36  ;;  %294 = vst [vmem:[%s3258_s11 + $0x368] sm:$0xff] %v293_v37  ;;  %v297_v39 = vld [vmem:[%s3262_s17 + $0x2808] sm:$0xff]  ;;  %v299_v40 = vld [vmem:[%s3262_s17 + $0x2c60] sm:$0xff] }
  0x45   : >> { %296 = vst [vmem:[%s3258_s11 + $0x370] sm:$0xff] %v295_v38  ;;  %v301_v41 = vld [vmem:[%s3262_s17 + $0x2c68] sm:$0xff]  ;;  %298 = vst [vmem:[%s3258_s11 + $0x378] sm:$0xff] %v297_v39  ;;  %v303_v42 = vld [vmem:[%s3262_s17 + $0x2c70] sm:$0xff] }
  0x46   : >> { %300 = vst [vmem:[%s3258_s11 + $0x3c0] sm:$0xff] %v299_v40  ;;  %302 = vst [vmem:[%s3258_s11 + $0x3c8] sm:$0xff] %v301_v41  ;;  %v305_v43 = vld [vmem:[%s3262_s17 + $0x2c78] sm:$0xff]  ;;  %v307_v44 = vld [vmem:[%s3262_s17 + $0x30d0] sm:$0xff] }
  0x47   : >> { %304 = vst [vmem:[%s3258_s11 + $0x3d0] sm:$0xff] %v303_v42  ;;  %306 = vst [vmem:[%s3258_s11 + $0x3d8] sm:$0xff] %v305_v43  ;;  %v309_v45 = vld [vmem:[%s3262_s17 + $0x30d8] sm:$0xff]  ;;  %v311_v46 = vld [vmem:[%s3262_s17 + $0x30e0] sm:$0xff] }
  0x48   : >> { %308 = vst [vmem:[%s3258_s11 + $0x420] sm:$0xff] %v307_v44  ;;  %v313_v47 = vld [vmem:[%s3262_s17 + $0x30e8] sm:$0xff]  ;;  %310 = vst [vmem:[%s3258_s11 + $0x428] sm:$0xff] %v309_v45  ;;  %v315_v48 = vld [vmem:[%s3262_s17 + $0x3540] sm:$0xff] }
  0x49   : >> { %312 = vst [vmem:[%s3258_s11 + $0x430] sm:$0xff] %v311_v46  ;;  %314 = vst [vmem:[%s3258_s11 + $0x438] sm:$0xff] %v313_v47  ;;  %v317_v49 = vld [vmem:[%s3262_s17 + $0x3548] sm:$0xff]  ;;  %v319_v50 = vld [vmem:[%s3262_s17 + $0x3550] sm:$0xff] }
  0x4a   : >> { %316 = vst [vmem:[%s3258_s11 + $0x480] sm:$0xff] %v315_v48  ;;  %318 = vst [vmem:[%s3258_s11 + $0x488] sm:$0xff] %v317_v49  ;;  %v321_v51 = vld [vmem:[%s3262_s17 + $0x3558] sm:$0xff]  ;;  %v323_v52 = vld [vmem:[%s3262_s17 + $0x39b0] sm:$0xff] }
  0x4b   : >> { %320 = vst [vmem:[%s3258_s11 + $0x490] sm:$0xff] %v319_v50  ;;  %v325_v53 = vld [vmem:[%s3262_s17 + $0x39b8] sm:$0xff]  ;;  %322 = vst [vmem:[%s3258_s11 + $0x498] sm:$0xff] %v321_v51  ;;  %v327_v54 = vld [vmem:[%s3262_s17 + $0x39c0] sm:$0xff] }
  0x4c   : >> { %324 = vst [vmem:[%s3258_s11 + $0x4e0] sm:$0xff] %v323_v52  ;;  %326 = vst [vmem:[%s3258_s11 + $0x4e8] sm:$0xff] %v325_v53  ;;  %v329_v55 = vld [vmem:[%s3262_s17 + $0x39c8] sm:$0xff]  ;;  %v331_v56 = vld [vmem:[%s3262_s17 + $0x3e20] sm:$0xff] }
  0x4d   : >> { %328 = vst [vmem:[%s3258_s11 + $0x4f0] sm:$0xff] %v327_v54  ;;  %330 = vst [vmem:[%s3258_s11 + $0x4f8] sm:$0xff] %v329_v55  ;;  %v333_v57 = vld [vmem:[%s3262_s17 + $0x3e28] sm:$0xff]  ;;  %v335_v58 = vld [vmem:[%s3262_s17 + $0x3e30] sm:$0xff]  ;;  %215 = sbr.rel (!%p212_p3) target bundleno = 49 (0x31), region = 159 }
  0x4e   : >> { %332 = vst [vmem:[%s3258_s11 + $0x540] sm:$0xff] %v331_v56  ;;  %v337_v59 = vld [vmem:[%s3262_s17 + $0x3e38] sm:$0xff]  ;;  %334 = vst [vmem:[%s3258_s11 + $0x548] sm:$0xff] %v333_v57  ;;  %v339_v60 = vld [vmem:[%s3262_s17 + $0x4290] sm:$0xff] }
  0x4f   : >> { %336 = vst [vmem:[%s3258_s11 + $0x550] sm:$0xff] %v335_v58  ;;  %338 = vst [vmem:[%s3258_s11 + $0x558] sm:$0xff] %v337_v59  ;;  %v341_v61 = vld [vmem:[%s3262_s17 + $0x4298] sm:$0xff]  ;;  %v343_v62 = vld [vmem:[%s3262_s17 + $0x42a0] sm:$0xff] }
  0x50   : >> { %340 = vst [vmem:[%s3258_s11 + $0x5a0] sm:$0xff] %v339_v60  ;;  %342 = vst [vmem:[%s3258_s11 + $0x5a8] sm:$0xff] %v341_v61  ;;  %v345_v63 = vld [vmem:[%s3262_s17 + $0x42a8] sm:$0xff]  ;;  %s4432_s17 = smov %s3480_s26 }
  0x51   : >> { %344 = vst [vmem:[%s3258_s11 + $0x5b0] sm:$0xff] %v343_v62  ;;  %346 = vst [vmem:[%s3258_s11 + $0x5b8] sm:$0xff] %v345_v63  ;;  %s4431_s11 = smov %s3483_s27 }
  0x52 PF: > { %s3589_s28 = sand.u32 3, %s206_s9   ;;  %s2953_s29 = sshll.u32 %s3413_s10, 9 }
  0x53   : > { %s358_s30 = sshra.s32 %s2953_s29, 4  ;;  %p2737_p4 = scmp.le.s32.totalorder %s3589_s28, 0 }
  0x54   : > { %s3593_s5 = scalar_lea.vmem %s3398_s4, %s358_s30   ;;  %s3596_s25 = scalar_lea.vmem %s3402_s7, %s358_s30 [#allocation2]  }
  0x55   : > { %2658 = sbr.rel (%p2737_p4) target bundleno = 100 (0x64), region = 164  ;;  %s4434_s11 = smov (!%p2737_p4), %s3596_s25 }
  0x56   : > { %s4435_s17 = smov (!%p2737_p4), %s3593_s5  ;;  %s3605_s19 = smov (!%p2737_p4), 0  }
  0x57   : > { %s3607_s20 = smov (!%p2737_p4), 0  }
  0x5a LB: >> { %v374_v0 = vld [vmem:[%s3278_s17] sm:$0xff]  ;;  %v376_v1 = vld [vmem:[%s3278_s17 + $0x470] sm:$0xff]  ;;  %s406_s9 = sadd.s32 1, %s3282_s19  ;;  %s368_s20 = sadd.s32 1, %s3286_s20   ;;  %s3286_s20 = sphi %s3607_s20, %s368_s20   ;;  %s3282_s19 = sphi %s3605_s19, %s4436_s19   ;;  %s3278_s17 = sphi %s4435_s17, %s411_s17   ;;  %s3274_s11 = sphi %s4434_s11, %s412_s11  }
  0x5b   : >> { %v378_v2 = vld [vmem:[%s3278_s17 + $0x8e0] sm:$0xff]  ;;  %375 = vst [vmem:[%s3274_s11] sm:$0xff] %v374_v0  ;;  %377 = vst [vmem:[%s3274_s11 + $0x60] sm:$0xff] %v376_v1  ;;  %v380_v3 = vld [vmem:[%s3278_s17 + $0xd50] sm:$0xff]  ;;  %p407_p5 = scmp.ge.s32.totalorder %s406_s9, %s3589_s28  ;;  %p367_p7 = scmp.ge.s32.totalorder %s368_s20, %s3589_s28 }
  0x5c   : >> { %379 = vst [vmem:[%s3274_s11 + $0xc0] sm:$0xff] %v378_v2  ;;  %v382_v4 = vld [vmem:[%s3278_s17 + $0x11c0] sm:$0xff]  ;;  %v384_v5 = vld [vmem:[%s3278_s17 + $0x1630] sm:$0xff]  ;;  %381 = vst [vmem:[%s3274_s11 + $0x120] sm:$0xff] %v380_v3 }
  0x5d   : >> { %383 = vst [vmem:[%s3274_s11 + $0x180] sm:$0xff] %v382_v4  ;;  %385 = vst [vmem:[%s3274_s11 + $0x1e0] sm:$0xff] %v384_v5  ;;  %v386_v6 = vld [vmem:[%s3278_s17 + $0x1aa0] sm:$0xff]  ;;  %v388_v7 = vld [vmem:[%s3278_s17 + $0x1f10] sm:$0xff]  ;;  %s4454_s9 = smov (%p407_p5, %s406_s9), 0 }
  0x5e   : >> { %v390_v8 = vld [vmem:[%s3278_s17 + $0x2380] sm:$0xff]  ;;  %387 = vst [vmem:[%s3274_s11 + $0x240] sm:$0xff] %v386_v6  ;;  %389 = vst [vmem:[%s3274_s11 + $0x2a0] sm:$0xff] %v388_v7  ;;  %v392_v9 = vld [vmem:[%s3278_s17 + $0x27f0] sm:$0xff]  ;;  %s2738_s10 = sshll.u32 %s4454_s9, 3  ;;  %s4436_s19 = smov %s4454_s9 }
  0x5f   : >> { %391 = vst [vmem:[%s3274_s11 + $0x300] sm:$0xff] %v390_v8  ;;  %v394_v10 = vld [vmem:[%s3278_s17 + $0x2c60] sm:$0xff]  ;;  %v396_v11 = vld [vmem:[%s3278_s17 + $0x30d0] sm:$0xff]  ;;  %393 = vst [vmem:[%s3274_s11 + $0x360] sm:$0xff] %v392_v9  ;;  %370 = sbr.rel (!%p367_p7) target bundleno = 90 (0x5a), region = 170 }
  0x60   : >> { %395 = vst [vmem:[%s3274_s11 + $0x3c0] sm:$0xff] %v394_v10  ;;  %397 = vst [vmem:[%s3274_s11 + $0x420] sm:$0xff] %v396_v11  ;;  %v398_v12 = vld [vmem:[%s3278_s17 + $0x3540] sm:$0xff]  ;;  %v400_v13 = vld [vmem:[%s3278_s17 + $0x39b0] sm:$0xff] }
  0x61   : >> { %v402_v14 = vld [vmem:[%s3278_s17 + $0x3e20] sm:$0xff]  ;;  %399 = vst [vmem:[%s3274_s11 + $0x480] sm:$0xff] %v398_v12  ;;  %401 = vst [vmem:[%s3274_s11 + $0x4e0] sm:$0xff] %v400_v13  ;;  %v404_v15 = vld [vmem:[%s3278_s17 + $0x4290] sm:$0xff]  ;;  %s411_s17 = scalar_lea.vmem %s3593_s5, %s2738_s10  }
  0x62   : >> { %403 = vst [vmem:[%s3274_s11 + $0x540] sm:$0xff] %v402_v14  ;;  %405 = vst [vmem:[%s3274_s11 + $0x5a0] sm:$0xff] %v404_v15  ;;  %s412_s11 = scalar_lea.vmem %s3596_s25, %s2738_s10 [#allocation2]  }
  0x64 PF: > { %415 = sbr.rel (%p202_p13) target bundleno = 180 (0xb4), region = 65  ;;  %s417_s24 = ssub.s32 (!%p202_p13), %s3400_s6, %s3406_s8 }
  0x65   : > { %s421_s26 = sshrl.u32 (!%p202_p13), %s3400_s6, 3  ;;  %s3670_s27 = scalar_lea.vmem (!%p202_p13), %s3398_s4, %s417_s24 }
  0x66   : > { %s3673_s29 = scalar_lea.vmem (!%p202_p13), %s3402_s7, %s417_s24 [#allocation2]  ;;  %s3677_s30 = sshrl.u32 (!%p202_p13), %s421_s26, 2 }
  0x67   : > { %p2740_p9 = scmp.le.s32.totalorder (!%p202_p13), %s3677_s30, 0 }
  0x69   : > { %2672 = sbr.rel (%p2740_p9) target bundleno = 143 (0x8f), region = 175  ;;  %s4437_s28 = smov (!%p2740_p9), %s3402_s7 }
  0x6a   : > { %s4438_s5 = smov (!%p2740_p9), %s3398_s4  ;;  %s3686_s25 = smov (!%p2740_p9), 0  }
  0x6b   : > { %s3688_s11 = smov (!%p2740_p9), 0  }
  0x6e LB: >> { %v434_v16 = vld [vmem:[%s3294_s5] sm:$0xff]  ;;  %v436_v17 = vld [vmem:[%s3294_s5 + $0x8] sm:$0xff]  ;;  %v438_v18 = vld [vmem:[%s3294_s5 + $0x10] sm:$0xff]  ;;  %s562_s17 = sadd.s32 1, %s3298_s25  ;;  %s428_s11 = sadd.s32 1, %s3302_s11   ;;  %s3302_s11 = sphi %s3688_s11, %s428_s11   ;;  %s3298_s25 = sphi %s3686_s25, %s4441_s25   ;;  %s3294_s5 = sphi %s4438_s5, %s4440_s5   ;;  %s3290_s28 = sphi %s4437_s28, %s4439_s28  }
  0x6f   : >> { %435 = vst [vmem:[%s3290_s28] sm:$0xff] %v434_v16  ;;  %437 = vst [vmem:[%s3290_s28 + $0x8] sm:$0xff] %v436_v17  ;;  %v440_v19 = vld [vmem:[%s3294_s5 + $0x18] sm:$0xff]  ;;  %v442_v20 = vld [vmem:[%s3294_s5 + $0x470] sm:$0xff]  ;;  %p563_p10 = scmp.ge.s32.totalorder %s562_s17, %s3677_s30  ;;  %p427_p11 = scmp.ge.s32.totalorder %s428_s11, %s3677_s30 }
  0x70   : >> { %439 = vst [vmem:[%s3290_s28 + $0x10] sm:$0xff] %v438_v18  ;;  %v444_v21 = vld [vmem:[%s3294_s5 + $0x478] sm:$0xff]  ;;  %441 = vst [vmem:[%s3290_s28 + $0x18] sm:$0xff] %v440_v19  ;;  %v446_v22 = vld [vmem:[%s3294_s5 + $0x480] sm:$0xff] }
  0x71   : >> { %443 = vst [vmem:[%s3290_s28 + $0x60] sm:$0xff] %v442_v20  ;;  %445 = vst [vmem:[%s3290_s28 + $0x68] sm:$0xff] %v444_v21  ;;  %v448_v23 = vld [vmem:[%s3294_s5 + $0x488] sm:$0xff]  ;;  %v450_v24 = vld [vmem:[%s3294_s5 + $0x8e0] sm:$0xff]  ;;  %s4456_s17 = smov (%p563_p10, %s562_s17), 0 }
  0x72   : >> { %447 = vst [vmem:[%s3290_s28 + $0x70] sm:$0xff] %v446_v22  ;;  %449 = vst [vmem:[%s3290_s28 + $0x78] sm:$0xff] %v448_v23  ;;  %v452_v25 = vld [vmem:[%s3294_s5 + $0x8e8] sm:$0xff]  ;;  %v454_v26 = vld [vmem:[%s3294_s5 + $0x8f0] sm:$0xff]  ;;  %s2741_s19 = sshll.u32 %s4456_s17, 5  ;;  %s4441_s25 = smov %s4456_s17 }
  0x73   : >> { %451 = vst [vmem:[%s3290_s28 + $0xc0] sm:$0xff] %v450_v24  ;;  %v456_v27 = vld [vmem:[%s3294_s5 + $0x8f8] sm:$0xff]  ;;  %453 = vst [vmem:[%s3290_s28 + $0xc8] sm:$0xff] %v452_v25  ;;  %v458_v28 = vld [vmem:[%s3294_s5 + $0xd50] sm:$0xff]  ;;  %s3744_s20 = scalar_lea.vmem %s3398_s4, %s2741_s19   ;;  %s3747_s9 = scalar_lea.vmem %s3402_s7, %s2741_s19 [#allocation2]  }
  0x74   : >> { %455 = vst [vmem:[%s3290_s28 + $0xd0] sm:$0xff] %v454_v26  ;;  %457 = vst [vmem:[%s3290_s28 + $0xd8] sm:$0xff] %v456_v27  ;;  %v460_v29 = vld [vmem:[%s3294_s5 + $0xd58] sm:$0xff]  ;;  %v462_v30 = vld [vmem:[%s3294_s5 + $0xd60] sm:$0xff] }
  0x75   : >> { %459 = vst [vmem:[%s3290_s28 + $0x120] sm:$0xff] %v458_v28  ;;  %461 = vst [vmem:[%s3290_s28 + $0x128] sm:$0xff] %v460_v29  ;;  %v464_v31 = vld [vmem:[%s3294_s5 + $0xd68] sm:$0xff]  ;;  %v466_v32 = vld [vmem:[%s3294_s5 + $0x11c0] sm:$0xff] }
  0x76   : >> { %463 = vst [vmem:[%s3290_s28 + $0x130] sm:$0xff] %v462_v30  ;;  %v468_v33 = vld [vmem:[%s3294_s5 + $0x11c8] sm:$0xff]  ;;  %465 = vst [vmem:[%s3290_s28 + $0x138] sm:$0xff] %v464_v31  ;;  %v470_v34 = vld [vmem:[%s3294_s5 + $0x11d0] sm:$0xff] }
  0x77   : >> { %467 = vst [vmem:[%s3290_s28 + $0x180] sm:$0xff] %v466_v32  ;;  %469 = vst [vmem:[%s3290_s28 + $0x188] sm:$0xff] %v468_v33  ;;  %v472_v35 = vld [vmem:[%s3294_s5 + $0x11d8] sm:$0xff]  ;;  %v474_v36 = vld [vmem:[%s3294_s5 + $0x1630] sm:$0xff] }
  0x78   : >> { %471 = vst [vmem:[%s3290_s28 + $0x190] sm:$0xff] %v470_v34  ;;  %473 = vst [vmem:[%s3290_s28 + $0x198] sm:$0xff] %v472_v35  ;;  %v476_v37 = vld [vmem:[%s3294_s5 + $0x1638] sm:$0xff]  ;;  %v478_v38 = vld [vmem:[%s3294_s5 + $0x1640] sm:$0xff] }
  0x79   : >> { %475 = vst [vmem:[%s3290_s28 + $0x1e0] sm:$0xff] %v474_v36  ;;  %v480_v39 = vld [vmem:[%s3294_s5 + $0x1648] sm:$0xff]  ;;  %477 = vst [vmem:[%s3290_s28 + $0x1e8] sm:$0xff] %v476_v37  ;;  %v482_v40 = vld [vmem:[%s3294_s5 + $0x1aa0] sm:$0xff] }
  0x7a   : >> { %479 = vst [vmem:[%s3290_s28 + $0x1f0] sm:$0xff] %v478_v38  ;;  %481 = vst [vmem:[%s3290_s28 + $0x1f8] sm:$0xff] %v480_v39  ;;  %v484_v41 = vld [vmem:[%s3294_s5 + $0x1aa8] sm:$0xff]  ;;  %v486_v42 = vld [vmem:[%s3294_s5 + $0x1ab0] sm:$0xff] }
  0x7b   : >> { %483 = vst [vmem:[%s3290_s28 + $0x240] sm:$0xff] %v482_v40  ;;  %485 = vst [vmem:[%s3290_s28 + $0x248] sm:$0xff] %v484_v41  ;;  %v488_v43 = vld [vmem:[%s3294_s5 + $0x1ab8] sm:$0xff]  ;;  %v490_v44 = vld [vmem:[%s3294_s5 + $0x1f10] sm:$0xff] }
  0x7c   : >> { %487 = vst [vmem:[%s3290_s28 + $0x250] sm:$0xff] %v486_v42  ;;  %v492_v45 = vld [vmem:[%s3294_s5 + $0x1f18] sm:$0xff]  ;;  %489 = vst [vmem:[%s3290_s28 + $0x258] sm:$0xff] %v488_v43  ;;  %v494_v46 = vld [vmem:[%s3294_s5 + $0x1f20] sm:$0xff] }
  0x7d   : >> { %491 = vst [vmem:[%s3290_s28 + $0x2a0] sm:$0xff] %v490_v44  ;;  %493 = vst [vmem:[%s3290_s28 + $0x2a8] sm:$0xff] %v492_v45  ;;  %v496_v47 = vld [vmem:[%s3294_s5 + $0x1f28] sm:$0xff]  ;;  %v498_v48 = vld [vmem:[%s3294_s5 + $0x2380] sm:$0xff] }
  0x7e   : >> { %495 = vst [vmem:[%s3290_s28 + $0x2b0] sm:$0xff] %v494_v46  ;;  %497 = vst [vmem:[%s3290_s28 + $0x2b8] sm:$0xff] %v496_v47  ;;  %v500_v49 = vld [vmem:[%s3294_s5 + $0x2388] sm:$0xff]  ;;  %v502_v50 = vld [vmem:[%s3294_s5 + $0x2390] sm:$0xff] }
  0x7f   : >> { %499 = vst [vmem:[%s3290_s28 + $0x300] sm:$0xff] %v498_v48  ;;  %v504_v51 = vld [vmem:[%s3294_s5 + $0x2398] sm:$0xff]  ;;  %501 = vst [vmem:[%s3290_s28 + $0x308] sm:$0xff] %v500_v49  ;;  %v506_v52 = vld [vmem:[%s3294_s5 + $0x27f0] sm:$0xff] }
  0x80   : >> { %503 = vst [vmem:[%s3290_s28 + $0x310] sm:$0xff] %v502_v50  ;;  %505 = vst [vmem:[%s3290_s28 + $0x318] sm:$0xff] %v504_v51  ;;  %v508_v53 = vld [vmem:[%s3294_s5 + $0x27f8] sm:$0xff]  ;;  %v510_v54 = vld [vmem:[%s3294_s5 + $0x2800] sm:$0xff] }
  0x81   : >> { %507 = vst [vmem:[%s3290_s28 + $0x360] sm:$0xff] %v506_v52  ;;  %509 = vst [vmem:[%s3290_s28 + $0x368] sm:$0xff] %v508_v53  ;;  %v512_v55 = vld [vmem:[%s3294_s5 + $0x2808] sm:$0xff]  ;;  %v514_v56 = vld [vmem:[%s3294_s5 + $0x2c60] sm:$0xff] }
  0x82   : >> { %511 = vst [vmem:[%s3290_s28 + $0x370] sm:$0xff] %v510_v54  ;;  %v516_v57 = vld [vmem:[%s3294_s5 + $0x2c68] sm:$0xff]  ;;  %513 = vst [vmem:[%s3290_s28 + $0x378] sm:$0xff] %v512_v55  ;;  %v518_v58 = vld [vmem:[%s3294_s5 + $0x2c70] sm:$0xff] }
  0x83   : >> { %515 = vst [vmem:[%s3290_s28 + $0x3c0] sm:$0xff] %v514_v56  ;;  %517 = vst [vmem:[%s3290_s28 + $0x3c8] sm:$0xff] %v516_v57  ;;  %v520_v59 = vld [vmem:[%s3294_s5 + $0x2c78] sm:$0xff]  ;;  %v522_v60 = vld [vmem:[%s3294_s5 + $0x30d0] sm:$0xff] }
  0x84   : >> { %519 = vst [vmem:[%s3290_s28 + $0x3d0] sm:$0xff] %v518_v58  ;;  %521 = vst [vmem:[%s3290_s28 + $0x3d8] sm:$0xff] %v520_v59  ;;  %v524_v61 = vld [vmem:[%s3294_s5 + $0x30d8] sm:$0xff]  ;;  %v526_v62 = vld [vmem:[%s3294_s5 + $0x30e0] sm:$0xff] }
  0x85   : >> { %523 = vst [vmem:[%s3290_s28 + $0x420] sm:$0xff] %v522_v60  ;;  %v528_v63 = vld [vmem:[%s3294_s5 + $0x30e8] sm:$0xff]  ;;  %525 = vst [vmem:[%s3290_s28 + $0x428] sm:$0xff] %v524_v61  ;;  %v530_v0 = vld [vmem:[%s3294_s5 + $0x3540] sm:$0xff] }
  0x86   : >> { %527 = vst [vmem:[%s3290_s28 + $0x430] sm:$0xff] %v526_v62  ;;  %529 = vst [vmem:[%s3290_s28 + $0x438] sm:$0xff] %v528_v63  ;;  %v532_v1 = vld [vmem:[%s3294_s5 + $0x3548] sm:$0xff]  ;;  %v534_v2 = vld [vmem:[%s3294_s5 + $0x3550] sm:$0xff] }
  0x87   : >> { %531 = vst [vmem:[%s3290_s28 + $0x480] sm:$0xff] %v530_v0  ;;  %533 = vst [vmem:[%s3290_s28 + $0x488] sm:$0xff] %v532_v1  ;;  %v536_v3 = vld [vmem:[%s3294_s5 + $0x3558] sm:$0xff]  ;;  %v538_v4 = vld [vmem:[%s3294_s5 + $0x39b0] sm:$0xff] }
  0x88   : >> { %535 = vst [vmem:[%s3290_s28 + $0x490] sm:$0xff] %v534_v2  ;;  %v540_v5 = vld [vmem:[%s3294_s5 + $0x39b8] sm:$0xff]  ;;  %537 = vst [vmem:[%s3290_s28 + $0x498] sm:$0xff] %v536_v3  ;;  %v542_v6 = vld [vmem:[%s3294_s5 + $0x39c0] sm:$0xff] }
  0x89   : >> { %539 = vst [vmem:[%s3290_s28 + $0x4e0] sm:$0xff] %v538_v4  ;;  %541 = vst [vmem:[%s3290_s28 + $0x4e8] sm:$0xff] %v540_v5  ;;  %v544_v7 = vld [vmem:[%s3294_s5 + $0x39c8] sm:$0xff]  ;;  %v546_v8 = vld [vmem:[%s3294_s5 + $0x3e20] sm:$0xff] }
  0x8a   : >> { %543 = vst [vmem:[%s3290_s28 + $0x4f0] sm:$0xff] %v542_v6  ;;  %545 = vst [vmem:[%s3290_s28 + $0x4f8] sm:$0xff] %v544_v7  ;;  %v548_v9 = vld [vmem:[%s3294_s5 + $0x3e28] sm:$0xff]  ;;  %v550_v10 = vld [vmem:[%s3294_s5 + $0x3e30] sm:$0xff]  ;;  %430 = sbr.rel (!%p427_p11) target bundleno = 110 (0x6e), region = 181 }
  0x8b   : >> { %547 = vst [vmem:[%s3290_s28 + $0x540] sm:$0xff] %v546_v8  ;;  %v552_v11 = vld [vmem:[%s3294_s5 + $0x3e38] sm:$0xff]  ;;  %549 = vst [vmem:[%s3290_s28 + $0x548] sm:$0xff] %v548_v9  ;;  %v554_v12 = vld [vmem:[%s3294_s5 + $0x4290] sm:$0xff] }
  0x8c   : >> { %551 = vst [vmem:[%s3290_s28 + $0x550] sm:$0xff] %v550_v10  ;;  %553 = vst [vmem:[%s3290_s28 + $0x558] sm:$0xff] %v552_v11  ;;  %v556_v13 = vld [vmem:[%s3294_s5 + $0x4298] sm:$0xff]  ;;  %v558_v14 = vld [vmem:[%s3294_s5 + $0x42a0] sm:$0xff] }
  0x8d   : >> { %555 = vst [vmem:[%s3290_s28 + $0x5a0] sm:$0xff] %v554_v12  ;;  %557 = vst [vmem:[%s3290_s28 + $0x5a8] sm:$0xff] %v556_v13  ;;  %v560_v15 = vld [vmem:[%s3294_s5 + $0x42a8] sm:$0xff]  ;;  %s4440_s5 = smov %s3744_s20 }
  0x8e   : >> { %559 = vst [vmem:[%s3290_s28 + $0x5b0] sm:$0xff] %v558_v14  ;;  %561 = vst [vmem:[%s3290_s28 + $0x5b8] sm:$0xff] %v560_v15  ;;  %s4439_s28 = smov %s3747_s9 }
  0x8f PF: > { %s3853_s10 = sand.u32 3, %s421_s26   ;;  %s2955_s24 = sshll.u32 %s3677_s30, 9 }
  0x90   : > { %s573_s19 = sshra.s32 %s2955_s24, 4  ;;  %p2746_p12 = scmp.le.s32.totalorder %s3853_s10, 0 }
  0x91   : > { %s3857_s1 = scalar_lea.vmem %s3398_s4, %s573_s19   ;;  %s3860_s9 = scalar_lea.vmem %s3402_s7, %s573_s19 [#allocation2]  }
  0x92   : > { %2686 = sbr.rel (%p2746_p12) target bundleno = 161 (0xa1), region = 186  ;;  %s4442_s28 = smov (!%p2746_p12), %s3860_s9 }
  0x93   : > { %s4443_s5 = smov (!%p2746_p12), %s3857_s1  ;;  %s3869_s25 = smov (!%p2746_p12), 0  }
  0x94   : > { %s3871_s11 = smov (!%p2746_p12), 0  }
  0x97 LB: >> { %v589_v16 = vld [vmem:[%s3310_s5] sm:$0xff]  ;;  %v591_v17 = vld [vmem:[%s3310_s5 + $0x470] sm:$0xff]  ;;  %s621_s26 = sadd.s32 1, %s3314_s25  ;;  %s583_s11 = sadd.s32 1, %s3318_s11   ;;  %s3318_s11 = sphi %s3871_s11, %s583_s11   ;;  %s3314_s25 = sphi %s3869_s25, %s4444_s25   ;;  %s3310_s5 = sphi %s4443_s5, %s626_s5   ;;  %s3306_s28 = sphi %s4442_s28, %s627_s28  }
  0x98   : >> { %v593_v18 = vld [vmem:[%s3310_s5 + $0x8e0] sm:$0xff]  ;;  %590 = vst [vmem:[%s3306_s28] sm:$0xff] %v589_v16  ;;  %592 = vst [vmem:[%s3306_s28 + $0x60] sm:$0xff] %v591_v17  ;;  %v595_v19 = vld [vmem:[%s3310_s5 + $0xd50] sm:$0xff]  ;;  %p622_p13 = scmp.ge.s32.totalorder %s621_s26, %s3853_s10  ;;  %p582_p0 = scmp.ge.s32.totalorder %s583_s11, %s3853_s10 }
  0x99   : >> { %594 = vst [vmem:[%s3306_s28 + $0xc0] sm:$0xff] %v593_v18  ;;  %v597_v20 = vld [vmem:[%s3310_s5 + $0x11c0] sm:$0xff]  ;;  %v599_v21 = vld [vmem:[%s3310_s5 + $0x1630] sm:$0xff]  ;;  %596 = vst [vmem:[%s3306_s28 + $0x120] sm:$0xff] %v595_v19 }
  0x9a   : >> { %598 = vst [vmem:[%s3306_s28 + $0x180] sm:$0xff] %v597_v20  ;;  %600 = vst [vmem:[%s3306_s28 + $0x1e0] sm:$0xff] %v599_v21  ;;  %v601_v22 = vld [vmem:[%s3310_s5 + $0x1aa0] sm:$0xff]  ;;  %v603_v23 = vld [vmem:[%s3310_s5 + $0x1f10] sm:$0xff]  ;;  %s4458_s26 = smov (%p622_p13, %s621_s26), 0 }
  0x9b   : >> { %v605_v24 = vld [vmem:[%s3310_s5 + $0x2380] sm:$0xff]  ;;  %602 = vst [vmem:[%s3306_s28 + $0x240] sm:$0xff] %v601_v22  ;;  %604 = vst [vmem:[%s3306_s28 + $0x2a0] sm:$0xff] %v603_v23  ;;  %v607_v25 = vld [vmem:[%s3310_s5 + $0x27f0] sm:$0xff]  ;;  %s2747_s30 = sshll.u32 %s4458_s26, 3  ;;  %s4444_s25 = smov %s4458_s26 }
  0x9c   : >> { %606 = vst [vmem:[%s3306_s28 + $0x300] sm:$0xff] %v605_v24  ;;  %v609_v26 = vld [vmem:[%s3310_s5 + $0x2c60] sm:$0xff]  ;;  %v611_v27 = vld [vmem:[%s3310_s5 + $0x30d0] sm:$0xff]  ;;  %608 = vst [vmem:[%s3306_s28 + $0x360] sm:$0xff] %v607_v25  ;;  %585 = sbr.rel (!%p582_p0) target bundleno = 151 (0x97), region = 192 }
  0x9d   : >> { %610 = vst [vmem:[%s3306_s28 + $0x3c0] sm:$0xff] %v609_v26  ;;  %612 = vst [vmem:[%s3306_s28 + $0x420] sm:$0xff] %v611_v27  ;;  %v613_v28 = vld [vmem:[%s3310_s5 + $0x3540] sm:$0xff]  ;;  %v615_v29 = vld [vmem:[%s3310_s5 + $0x39b0] sm:$0xff] }
  0x9e   : >> { %v617_v30 = vld [vmem:[%s3310_s5 + $0x3e20] sm:$0xff]  ;;  %614 = vst [vmem:[%s3306_s28 + $0x480] sm:$0xff] %v613_v28  ;;  %616 = vst [vmem:[%s3306_s28 + $0x4e0] sm:$0xff] %v615_v29  ;;  %v619_v31 = vld [vmem:[%s3310_s5 + $0x4290] sm:$0xff]  ;;  %s626_s5 = scalar_lea.vmem %s3857_s1, %s2747_s30  }
  0x9f   : >> { %618 = vst [vmem:[%s3306_s28 + $0x540] sm:$0xff] %v617_v30  ;;  %620 = vst [vmem:[%s3306_s28 + $0x5a0] sm:$0xff] %v619_v31  ;;  %s627_s28 = scalar_lea.vmem %s3860_s9, %s2747_s30 [#allocation2]  }
  0xa1 PF: > { %s3320_s17 = smov 1  }
  0xa2   : > { %s628_s20 = sshll.u32 %s3320_s17, %s3406_s8 }
  0xa3   : > { %s3929_s24 = sadd.s32 4294967295, %s628_s20 }
  0xa4   : > { %v638_v32 = vld [vmem:[%s3670_s27] sm:%s3929_s24]  ;;  %v640_v33 = vld [vmem:[%s3670_s27 + $0x470] sm:%s3929_s24] }
  0xa5   : > { %639 = vst [vmem:[%s3673_s29] sm:%s3929_s24] %v638_v32  ;;  %641 = vst [vmem:[%s3673_s29 + $0x60] sm:%s3929_s24] %v640_v33 }
  0xa6   : > { %v642_v34 = vld [vmem:[%s3670_s27 + $0x8e0] sm:%s3929_s24]  ;;  %v644_v35 = vld [vmem:[%s3670_s27 + $0xd50] sm:%s3929_s24] }
  0xa7   : > { %643 = vst [vmem:[%s3673_s29 + $0xc0] sm:%s3929_s24] %v642_v34  ;;  %645 = vst [vmem:[%s3673_s29 + $0x120] sm:%s3929_s24] %v644_v35 }
  0xa8   : > { %v646_v36 = vld [vmem:[%s3670_s27 + $0x11c0] sm:%s3929_s24]  ;;  %v648_v37 = vld [vmem:[%s3670_s27 + $0x1630] sm:%s3929_s24] }
  0xa9   : > { %647 = vst [vmem:[%s3673_s29 + $0x180] sm:%s3929_s24] %v646_v36  ;;  %649 = vst [vmem:[%s3673_s29 + $0x1e0] sm:%s3929_s24] %v648_v37 }
  0xaa   : > { %v650_v38 = vld [vmem:[%s3670_s27 + $0x1aa0] sm:%s3929_s24]  ;;  %v652_v39 = vld [vmem:[%s3670_s27 + $0x1f10] sm:%s3929_s24] }
  0xab   : > { %651 = vst [vmem:[%s3673_s29 + $0x240] sm:%s3929_s24] %v650_v38  ;;  %653 = vst [vmem:[%s3673_s29 + $0x2a0] sm:%s3929_s24] %v652_v39 }
  0xac   : > { %v654_v40 = vld [vmem:[%s3670_s27 + $0x2380] sm:%s3929_s24]  ;;  %v656_v41 = vld [vmem:[%s3670_s27 + $0x27f0] sm:%s3929_s24] }
  0xad   : > { %655 = vst [vmem:[%s3673_s29 + $0x300] sm:%s3929_s24] %v654_v40  ;;  %657 = vst [vmem:[%s3673_s29 + $0x360] sm:%s3929_s24] %v656_v41 }
  0xae   : > { %v658_v42 = vld [vmem:[%s3670_s27 + $0x2c60] sm:%s3929_s24]  ;;  %v660_v43 = vld [vmem:[%s3670_s27 + $0x30d0] sm:%s3929_s24] }
  0xaf   : > { %659 = vst [vmem:[%s3673_s29 + $0x3c0] sm:%s3929_s24] %v658_v42  ;;  %661 = vst [vmem:[%s3673_s29 + $0x420] sm:%s3929_s24] %v660_v43 }
  0xb0   : > { %v662_v44 = vld [vmem:[%s3670_s27 + $0x3540] sm:%s3929_s24]  ;;  %v664_v45 = vld [vmem:[%s3670_s27 + $0x39b0] sm:%s3929_s24] }
  0xb1   : > { %663 = vst [vmem:[%s3673_s29 + $0x480] sm:%s3929_s24] %v662_v44  ;;  %665 = vst [vmem:[%s3673_s29 + $0x4e0] sm:%s3929_s24] %v664_v45 }
  0xb2   : > { %v666_v46 = vld [vmem:[%s3670_s27 + $0x3e20] sm:%s3929_s24]  ;;  %v668_v47 = vld [vmem:[%s3670_s27 + $0x4290] sm:%s3929_s24] }
  0xb3   : > { %667 = vst [vmem:[%s3673_s29 + $0x540] sm:%s3929_s24] %v666_v46  ;;  %669 = vst [vmem:[%s3673_s29 + $0x5a0] sm:%s3929_s24] %v668_v47 }
  0xb4 PF: > { %p2750_p1 = scmp.ge.u32.totalorder %s3400_s6, 8 }
  0xb5   : > { %s3321_s1 = smov (!%p2750_p1), 1  }
  0xb6   : > { %158 = sbr.rel (%p2750_p1) target bundleno = 203 (0xcb), region = 36  ;;  %s159_s8 = sshll.u32 (!%p2750_p1), %s3321_s1, %s3400_s6 }
  0xb7   : > { %s3997_s27 = sadd.s32 (!%p2750_p1), 4294967295, %s159_s8 }
  0xbb   : > { %v169_v48 = vld [vmem:[%s3398_s4] sm:%s3997_s27]  ;;  %v171_v49 = vld [vmem:[%s3398_s4 + $0x470] sm:%s3997_s27] }
  0xbc   : > { %170 = vst [vmem:[%s3402_s7] sm:%s3997_s27] %v169_v48  ;;  %172 = vst [vmem:[%s3402_s7 + $0x60] sm:%s3997_s27] %v171_v49 }
  0xbd   : > { %v173_v50 = vld [vmem:[%s3398_s4 + $0x8e0] sm:%s3997_s27]  ;;  %v175_v51 = vld [vmem:[%s3398_s4 + $0xd50] sm:%s3997_s27] }
  0xbe   : > { %174 = vst [vmem:[%s3402_s7 + $0xc0] sm:%s3997_s27] %v173_v50  ;;  %176 = vst [vmem:[%s3402_s7 + $0x120] sm:%s3997_s27] %v175_v51 }
  0xbf   : > { %v177_v52 = vld [vmem:[%s3398_s4 + $0x11c0] sm:%s3997_s27]  ;;  %v179_v53 = vld [vmem:[%s3398_s4 + $0x1630] sm:%s3997_s27] }
  0xc0   : > { %178 = vst [vmem:[%s3402_s7 + $0x180] sm:%s3997_s27] %v177_v52  ;;  %180 = vst [vmem:[%s3402_s7 + $0x1e0] sm:%s3997_s27] %v179_v53 }
  0xc1   : > { %v181_v54 = vld [vmem:[%s3398_s4 + $0x1aa0] sm:%s3997_s27]  ;;  %v183_v55 = vld [vmem:[%s3398_s4 + $0x1f10] sm:%s3997_s27] }
  0xc2   : > { %182 = vst [vmem:[%s3402_s7 + $0x240] sm:%s3997_s27] %v181_v54  ;;  %184 = vst [vmem:[%s3402_s7 + $0x2a0] sm:%s3997_s27] %v183_v55 }
  0xc3   : > { %v185_v56 = vld [vmem:[%s3398_s4 + $0x2380] sm:%s3997_s27]  ;;  %v187_v57 = vld [vmem:[%s3398_s4 + $0x27f0] sm:%s3997_s27] }
  0xc4   : > { %186 = vst [vmem:[%s3402_s7 + $0x300] sm:%s3997_s27] %v185_v56  ;;  %188 = vst [vmem:[%s3402_s7 + $0x360] sm:%s3997_s27] %v187_v57 }
  0xc5   : > { %v189_v58 = vld [vmem:[%s3398_s4 + $0x2c60] sm:%s3997_s27]  ;;  %v191_v59 = vld [vmem:[%s3398_s4 + $0x30d0] sm:%s3997_s27] }
  0xc6   : > { %190 = vst [vmem:[%s3402_s7 + $0x3c0] sm:%s3997_s27] %v189_v58  ;;  %192 = vst [vmem:[%s3402_s7 + $0x420] sm:%s3997_s27] %v191_v59 }
  0xc7   : > { %v193_v60 = vld [vmem:[%s3398_s4 + $0x3540] sm:%s3997_s27]  ;;  %v195_v61 = vld [vmem:[%s3398_s4 + $0x39b0] sm:%s3997_s27] }
  0xc8   : > { %194 = vst [vmem:[%s3402_s7 + $0x480] sm:%s3997_s27] %v193_v60  ;;  %196 = vst [vmem:[%s3402_s7 + $0x4e0] sm:%s3997_s27] %v195_v61 }
  0xc9   : > { %v197_v62 = vld [vmem:[%s3398_s4 + $0x3e20] sm:%s3997_s27]  ;;  %v199_v63 = vld [vmem:[%s3398_s4 + $0x4290] sm:%s3997_s27] }
  0xca   : > { %198 = vst [vmem:[%s3402_s7 + $0x540] sm:%s3997_s27] %v197_v62  ;;  %200 = vst [vmem:[%s3402_s7 + $0x5a0] sm:%s3997_s27] %v199_v63 }
  0xcb PF: > { %p2752_p2 = scmp.ge.s32.totalorder %s3254_s15, 1  ;;  %p688_p3 = scmp.lt.s32.totalorder %s3254_s15, 13 }
  0xcd   : > { %p689_p4 = pnand %p2752_p2, %p688_p3 }
  0xce   : > { %s4066_s6 = sand.u32 (!%p689_p4), 1, %s3246_s13   ;;  %s4293_s19 = smul.u32 (!%p689_p4), 24, %s3365_s16 }
  0xcf   : > { %692 = sbr.rel (%p689_p4) target bundleno = 633 (0x279), region = 94  ;;  %s2546_s30 = scalar_lea.sflag (!%p689_p4), [#allocation4], %s4066_s6 }
  0xd0   : > { %s2959_s29 = smul.u32 (!%p689_p4), 1536, %s4066_s6  ;;  %p736_p5 = scmp.lt.s32.totalorder (!%p689_p4), %s4293_s19, 283 }
  0xd1   : > { %s2960_s11 = smul.u32 (!%p689_p4), 192, %s4066_s6 }
  0xd2   : > { %s4071_s4 = scalar_lea.vmem (!%p689_p4), [#allocation2], %s2959_s29 }
  0xd3   : > { %s4316_s26 = scalar_lea.vmem (!%p689_p4), [#allocation3], %s2960_s11 }
  0xd4   : > { %v3322_v0 = vmov 0   ;;  %v919_v1 = vld [vmem:[%s4071_s4 + $0x540] sm:$0xff]  ;;  %v920_v3 = vld [vmem:[%s4071_s4 + $0x548] sm:$0xff]  ;;  %v921_v63 = vld [vmem:[%s4071_s4 + $0x550] sm:$0xff]  ;;  %s737_s9 = scalar_select %p736_p5, %s4293_s19, 283 }
  0xd5   : > { %2061 = vmatprep.mubr.bf16.mxu0 %v3322_v0  ;;  %2102 = vmatprep.mubr.bf16.mxu1 %v3322_v0  ;;  %v931_v2 = vld [vmem:[%s4071_s4 + $0x5a0] sm:$0xff]  ;;  %v932_v5 = vld [vmem:[%s4071_s4 + $0x5a8] sm:$0xff]  ;;  %s2554_s17 = ssub.s32 (%p3383_p6), 284, %s4293_s19 }
  0xd6   : > { %v2922_v4 = vcombine.high %v919_v1, %v931_v2  ;;  %v2921_v6 = vcombine.low %v919_v1, %v931_v2  ;;  %v895_v7 = vld [vmem:[%s4071_s4 + $0x480] sm:$0xff]  ;;  %v2924_v9 = vcombine.high %v920_v3, %v932_v5  ;;  %v2923_v10 = vcombine.low %v920_v3, %v932_v5  ;;  %v896_v12 = vld [vmem:[%s4071_s4 + $0x488] sm:$0xff]  ;;  %v933_v1 = vld [vmem:[%s4071_s4 + $0x5b0] sm:$0xff]  ;;  %s4300_s25 = scalar_lea.vmem %s4423_s2, %s737_s9  ;;  %p2555_p7 = scmp.lt.s32.totalorder (%p3383_p6), %s2554_s17, 24 }
  0xd7   : > { %v907_v8 = vld [vmem:[%s4071_s4 + $0x4e0] sm:$0xff]  ;;  %v908_v13 = vld [vmem:[%s4071_s4 + $0x4e8] sm:$0xff]  ;;  %v922_v2 = vld [vmem:[%s4071_s4 + $0x558] sm:$0xff] }
  0xd8   : > { %v2898_v11 = vcombine.high %v895_v7, %v907_v8  ;;  %v871_v14 = vld [vmem:[%s4071_s4 + $0x3c0] sm:$0xff]  ;;  %2029 = vmatprep.subr.bf16.mxu0 %v2922_v4  ;;  %v2900_v15 = vcombine.high %v896_v12, %v908_v13  ;;  %v872_v17 = vld [vmem:[%s4071_s4 + $0x3c8] sm:$0xff]  ;;  %2070 = vmatprep.subr.bf16.mxu1 %v2924_v9  ;;  %v2897_v19 = vcombine.low %v895_v7, %v907_v8  ;;  %v934_v3 = vld [vmem:[%s4071_s4 + $0x5b8] sm:$0xff] }
  0xd9   : > { %v883_v16 = vld [vmem:[%s4071_s4 + $0x420] sm:$0xff]  ;;  %v884_v18 = vld [vmem:[%s4071_s4 + $0x428] sm:$0xff]  ;;  %2030 = vmatpush1.bf16.msra.mxu0 %v2921_v6  ;;  %2071 = vmatpush1.bf16.msra.mxu1 %v2923_v10  ;;  %v2899_v20 = vcombine.low %v896_v12, %v908_v13  ;;  %v2926_v6 = vcombine.high %v921_v63, %v933_v1  ;;  %v2928_v7 = vcombine.high %v922_v2, %v934_v3  ;;  %v897_v8 = vld [vmem:[%s4071_s4 + $0x490] sm:$0xff] }
  0xda   : > { %2031 = vmatprep.subr.bf16.mxu0 %v2898_v11  ;;  %v2874_v21 = vcombine.high %v871_v14, %v883_v16  ;;  %2072 = vmatprep.subr.bf16.mxu1 %v2900_v15  ;;  %v2876_v22 = vcombine.high %v872_v17, %v884_v18  ;;  %v847_v23 = vld [vmem:[%s4071_s4 + $0x300] sm:$0xff]  ;;  %v848_v25 = vld [vmem:[%s4071_s4 + $0x308] sm:$0xff]  ;;  %v2873_v27 = vcombine.low %v871_v14, %v883_v16  ;;  %v909_v9 = vld [vmem:[%s4071_s4 + $0x4f0] sm:$0xff] }
  0xdb   : > { %v859_v24 = vld [vmem:[%s4071_s4 + $0x360] sm:$0xff]  ;;  %v860_v26 = vld [vmem:[%s4071_s4 + $0x368] sm:$0xff]  ;;  %v2875_v28 = vcombine.low %v872_v17, %v884_v18  ;;  %v898_v10 = vld [vmem:[%s4071_s4 + $0x498] sm:$0xff]  ;;  %v2925_v13 = vcombine.low %v921_v63, %v933_v1  ;;  %v2927_v14 = vcombine.low %v922_v2, %v934_v3  ;;  %v2902_v15 = vcombine.high %v897_v8, %v909_v9 }
  0xdc   : > { %v2850_v29 = vcombine.high %v847_v23, %v859_v24  ;;  %v2852_v30 = vcombine.high %v848_v25, %v860_v26  ;;  %v823_v31 = vld [vmem:[%s4071_s4 + $0x240] sm:$0xff]  ;;  %v824_v33 = vld [vmem:[%s4071_s4 + $0x248] sm:$0xff]  ;;  %v2849_v35 = vcombine.low %v847_v23, %v859_v24  ;;  %v2851_v36 = vcombine.low %v848_v25, %v860_v26  ;;  %v910_v11 = vld [vmem:[%s4071_s4 + $0x4f8] sm:$0xff] }
  0xdd   : > { %2032 = vmatpush1.bf16.msra.mxu0 %v2897_v19  ;;  %2073 = vmatpush1.bf16.msra.mxu1 %v2899_v20  ;;  %v835_v32 = vld [vmem:[%s4071_s4 + $0x2a0] sm:$0xff]  ;;  %v836_v34 = vld [vmem:[%s4071_s4 + $0x2a8] sm:$0xff]  ;;  %v2904_v16 = vcombine.high %v898_v10, %v910_v11  ;;  %v873_v17 = vld [vmem:[%s4071_s4 + $0x3d0] sm:$0xff] }
  0xde   : > { %2033 = vmatprep.subr.bf16.mxu0 %v2874_v21  ;;  %2074 = vmatprep.subr.bf16.mxu1 %v2876_v22  ;;  %v2826_v37 = vcombine.high %v823_v31, %v835_v32  ;;  %v2828_v38 = vcombine.high %v824_v33, %v836_v34  ;;  %v799_v39 = vld [vmem:[%s4071_s4 + $0x180] sm:$0xff]  ;;  %v800_v41 = vld [vmem:[%s4071_s4 + $0x188] sm:$0xff]  ;;  %v2825_v43 = vcombine.low %v823_v31, %v835_v32  ;;  %v885_v18 = vld [vmem:[%s4071_s4 + $0x430] sm:$0xff] }
  0xdf   : > { %v811_v40 = vld [vmem:[%s4071_s4 + $0x1e0] sm:$0xff]  ;;  %v812_v42 = vld [vmem:[%s4071_s4 + $0x1e8] sm:$0xff]  ;;  %v2827_v44 = vcombine.low %v824_v33, %v836_v34  ;;  %v874_v19 = vld [vmem:[%s4071_s4 + $0x3d8] sm:$0xff]  ;;  %v2901_v21 = vcombine.low %v897_v8, %v909_v9  ;;  %v2903_v22 = vcombine.low %v898_v10, %v910_v11  ;;  %v2878_v23 = vcombine.high %v873_v17, %v885_v18 }
  0xe0   : > { %v2802_v45 = vcombine.high %v799_v39, %v811_v40  ;;  %v2804_v46 = vcombine.high %v800_v41, %v812_v42  ;;  %v775_v47 = vld [vmem:[%s4071_s4 + $0xc0] sm:$0xff]  ;;  %v776_v49 = vld [vmem:[%s4071_s4 + $0xc8] sm:$0xff]  ;;  %v2801_v51 = vcombine.low %v799_v39, %v811_v40  ;;  %v2803_v52 = vcombine.low %v800_v41, %v812_v42  ;;  %v886_v20 = vld [vmem:[%s4071_s4 + $0x438] sm:$0xff] }
  0xe1   : > { %2034 = vmatpush1.bf16.msra.mxu0 %v2873_v27  ;;  %2075 = vmatpush1.bf16.msra.mxu1 %v2875_v28  ;;  %v787_v48 = vld [vmem:[%s4071_s4 + $0x120] sm:$0xff]  ;;  %v788_v50 = vld [vmem:[%s4071_s4 + $0x128] sm:$0xff]  ;;  %v2880_v24 = vcombine.high %v874_v19, %v886_v20  ;;  %v849_v25 = vld [vmem:[%s4071_s4 + $0x310] sm:$0xff] }
  0xe2   : > { %2035 = vmatprep.subr.bf16.mxu0 %v2850_v29  ;;  %2076 = vmatprep.subr.bf16.mxu1 %v2852_v30  ;;  %v2778_v53 = vcombine.high %v775_v47, %v787_v48  ;;  %v2780_v54 = vcombine.high %v776_v49, %v788_v50  ;;  %v751_v55 = vld [vmem:[%s4071_s4] sm:$0xff]  ;;  %v752_v57 = vld [vmem:[%s4071_s4 + $0x8] sm:$0xff]  ;;  %v2777_v59 = vcombine.low %v775_v47, %v787_v48  ;;  %v861_v26 = vld [vmem:[%s4071_s4 + $0x370] sm:$0xff] }
  0xe3   : > { %v763_v56 = vld [vmem:[%s4071_s4 + $0x60] sm:$0xff]  ;;  %v764_v58 = vld [vmem:[%s4071_s4 + $0x68] sm:$0xff]  ;;  %v2779_v60 = vcombine.low %v776_v49, %v788_v50  ;;  %v850_v27 = vld [vmem:[%s4071_s4 + $0x318] sm:$0xff]  ;;  %v2877_v29 = vcombine.low %v873_v17, %v885_v18  ;;  %v2879_v30 = vcombine.low %v874_v19, %v886_v20  ;;  %v2854_v31 = vcombine.high %v849_v25, %v861_v26 }
  0xe4   : > { %v2754_v61 = vcombine.high %v751_v55, %v763_v56  ;;  %v2756_v62 = vcombine.high %v752_v57, %v764_v58  ;;  %v2753_v4 = vcombine.low %v751_v55, %v763_v56  ;;  %v2755_v5 = vcombine.low %v752_v57, %v764_v58  ;;  %v4116_v12 = vld [vmem:[%s4421_s0] sm:$0xf]  ;;  %v862_v28 = vld [vmem:[%s4071_s4 + $0x378] sm:$0xff]  ;;  %v825_v33 = vld [vmem:[%s4071_s4 + $0x250] sm:$0xff] }
  0xe5   : > { %2036 = vmatpush1.bf16.msra.mxu0 %v2849_v35  ;;  %2077 = vmatpush1.bf16.msra.mxu1 %v2851_v36  ;;  %v2856_v32 = vcombine.high %v850_v27, %v862_v28  ;;  %v837_v34 = vld [vmem:[%s4071_s4 + $0x2b0] sm:$0xff]  ;;  %v826_v35 = vld [vmem:[%s4071_s4 + $0x258] sm:$0xff]  ;;  %v923_v2 = vld [vmem:[%s4071_s4 + $0x560] sm:$0xff] }
  0xe6   : > { %2037 = vmatprep.subr.bf16.mxu0 %v2826_v37  ;;  %2078 = vmatprep.subr.bf16.mxu1 %v2828_v38  ;;  %v838_v36 = vld [vmem:[%s4071_s4 + $0x2b8] sm:$0xff]  ;;  %v2853_v37 = vcombine.low %v849_v25, %v861_v26  ;;  %v2855_v38 = vcombine.low %v850_v27, %v862_v28  ;;  %v2830_v39 = vcombine.high %v825_v33, %v837_v34  ;;  %v801_v41 = vld [vmem:[%s4071_s4 + $0x190] sm:$0xff]  ;;  %v935_v3 = vld [vmem:[%s4071_s4 + $0x5c0] sm:$0xff] }
  0xe7   : > { %v2832_v40 = vcombine.high %v826_v35, %v838_v36  ;;  %v813_v42 = vld [vmem:[%s4071_s4 + $0x1f0] sm:$0xff]  ;;  %v2930_v8 = vcombine.high %v923_v2, %v935_v3  ;;  %v899_v10 = vld [vmem:[%s4071_s4 + $0x4a0] sm:$0xff] }
  0xe8   : > { %v2806_v47 = vcombine.high %v801_v41, %v813_v42  ;;  %v777_v49 = vld [vmem:[%s4071_s4 + $0xd0] sm:$0xff]  ;;  %v911_v11 = vld [vmem:[%s4071_s4 + $0x500] sm:$0xff] }
  0xe9   : > { %2038 = vmatpush1.bf16.msra.mxu0 %v2825_v43  ;;  %2079 = vmatpush1.bf16.msra.mxu1 %v2827_v44  ;;  %v802_v43 = vld [vmem:[%s4071_s4 + $0x198] sm:$0xff]  ;;  %v789_v50 = vld [vmem:[%s4071_s4 + $0x130] sm:$0xff]  ;;  %v2906_v17 = vcombine.high %v899_v10, %v911_v11  ;;  %v875_v19 = vld [vmem:[%s4071_s4 + $0x3e0] sm:$0xff] }
  0xea   : > { %2039 = vmatprep.subr.bf16.mxu0 %v2802_v45  ;;  %2080 = vmatprep.subr.bf16.mxu1 %v2804_v46  ;;  %v814_v44 = vld [vmem:[%s4071_s4 + $0x1f8] sm:$0xff]  ;;  %v2829_v45 = vcombine.low %v825_v33, %v837_v34  ;;  %v2831_v46 = vcombine.low %v826_v35, %v838_v36  ;;  %v2782_v55 = vcombine.high %v777_v49, %v789_v50  ;;  %v753_v57 = vld [vmem:[%s4071_s4 + $0x10] sm:$0xff]  ;;  %v887_v20 = vld [vmem:[%s4071_s4 + $0x440] sm:$0xff] }
  0xeb   : > { %v2808_v48 = vcombine.high %v802_v43, %v814_v44  ;;  %v765_v58 = vld [vmem:[%s4071_s4 + $0x70] sm:$0xff]  ;;  %v2882_v25 = vcombine.high %v875_v19, %v887_v20  ;;  %v851_v27 = vld [vmem:[%s4071_s4 + $0x320] sm:$0xff] }
  0xec   : > { %v2758_v63 = vcombine.high %v753_v57, %v765_v58  ;;  %v863_v28 = vld [vmem:[%s4071_s4 + $0x380] sm:$0xff] }
  0xed   : > { %2040 = vmatpush1.bf16.msra.mxu0 %v2801_v51  ;;  %2081 = vmatpush1.bf16.msra.mxu1 %v2803_v52  ;;  %v778_v51 = vld [vmem:[%s4071_s4 + $0xd8] sm:$0xff]  ;;  %v2858_v33 = vcombine.high %v851_v27, %v863_v28  ;;  %v827_v35 = vld [vmem:[%s4071_s4 + $0x260] sm:$0xff] }
  0xee   : > { %2041 = vmatprep.subr.bf16.mxu0 %v2778_v53  ;;  %2082 = vmatprep.subr.bf16.mxu1 %v2780_v54  ;;  %v790_v52 = vld [vmem:[%s4071_s4 + $0x138] sm:$0xff]  ;;  %v2805_v53 = vcombine.low %v801_v41, %v813_v42  ;;  %v2807_v54 = vcombine.low %v802_v43, %v814_v44  ;;  %v839_v36 = vld [vmem:[%s4071_s4 + $0x2c0] sm:$0xff] }
  0xef   : > { %v2784_v56 = vcombine.high %v778_v51, %v790_v52  ;;  %v2834_v41 = vcombine.high %v827_v35, %v839_v36  ;;  %v803_v43 = vld [vmem:[%s4071_s4 + $0x1a0] sm:$0xff] }
  0xf0   : > { %v815_v44 = vld [vmem:[%s4071_s4 + $0x200] sm:$0xff] }
  0xf1   : > { %2042 = vmatpush1.bf16.msra.mxu0 %v2777_v59  ;;  %2083 = vmatpush1.bf16.msra.mxu1 %v2779_v60  ;;  %v754_v59 = vld [vmem:[%s4071_s4 + $0x18] sm:$0xff] }
  0xf2   : > { %2043 = vmatprep.subr.bf16.mxu0 %v2754_v61  ;;  %2084 = vmatprep.subr.bf16.mxu1 %v2756_v62  ;;  %v766_v60 = vld [vmem:[%s4071_s4 + $0x78] sm:$0xff]  ;;  %v2781_v61 = vcombine.low %v777_v49, %v789_v50  ;;  %v2783_v62 = vcombine.low %v778_v51, %v790_v52  ;;  %v2810_v49 = vcombine.high %v803_v43, %v815_v44  ;;  %v779_v51 = vld [vmem:[%s4071_s4 + $0xe0] sm:$0xff] }
  0xf3   : > { %v2760_v1 = vcombine.high %v754_v59, %v766_v60  ;;  %v791_v52 = vld [vmem:[%s4071_s4 + $0x140] sm:$0xff] }
  0xf5   : > { %2044 = vmatpush1.bf16.msra.mxu0 %v2753_v4  ;;  %2085 = vmatpush1.bf16.msra.mxu1 %v2755_v5  ;;  %v924_v4 = vld [vmem:[%s4071_s4 + $0x568] sm:$0xff] }
  0xf6   : > { %2111 = vmatprep.subr.bf16.mxu0 %v2926_v6  ;;  %2152 = vmatprep.subr.bf16.mxu1 %v2928_v7  ;;  %v936_v5 = vld [vmem:[%s4071_s4 + $0x5c8] sm:$0xff]  ;;  %v2757_v6 = vcombine.low %v753_v57, %v765_v58  ;;  %v2759_v7 = vcombine.low %v754_v59, %v766_v60  ;;  %v2786_v57 = vcombine.high %v779_v51, %v791_v52  ;;  %v755_v59 = vld [vmem:[%s4071_s4 + $0x20] sm:$0xff] }
  0xf7   : > { %v2932_v9 = vcombine.high %v924_v4, %v936_v5  ;;  %v767_v60 = vld [vmem:[%s4071_s4 + $0x80] sm:$0xff] }
  0xf8   : > { %2062 = vmatmul.mubr.bf16.vlgmr.msra.gmra.mxu0 %v4116_v12  ;;  %2103 = vmatmul.mubr.bf16.vlgmr.msra.gmra.mxu1 %v4116_v12 }
  0xf9   : > { %2112 = vmatpush1.bf16.msra.mxu0 %v2925_v13  ;;  %2153 = vmatpush1.bf16.msra.mxu1 %v2927_v14  ;;  %v900_v13 = vld [vmem:[%s4071_s4 + $0x4a8] sm:$0xff] }
  0xfa   : > { %2113 = vmatprep.subr.bf16.mxu0 %v2902_v15  ;;  %2154 = vmatprep.subr.bf16.mxu1 %v2904_v16  ;;  %v912_v14 = vld [vmem:[%s4071_s4 + $0x508] sm:$0xff]  ;;  %v2929_v15 = vcombine.low %v923_v2, %v935_v3  ;;  %v2931_v16 = vcombine.low %v924_v4, %v936_v5  ;;  %v2762_v2 = vcombine.high %v755_v59, %v767_v60  ;;  %v925_v4 = vld [vmem:[%s4071_s4 + $0x570] sm:$0xff] }
  0xfb   : > { %2143 = vmatprep.mubr.bf16.mxu0 %v3322_v0  ;;  %2184 = vmatprep.mubr.bf16.mxu1 %v3322_v0  ;;  %v2908_v18 = vcombine.high %v900_v13, %v912_v14  ;;  %v937_v5 = vld [vmem:[%s4071_s4 + $0x5d0] sm:$0xff] }
  0xfd   : > { %2114 = vmatpush1.bf16.msra.mxu0 %v2901_v21  ;;  %2155 = vmatpush1.bf16.msra.mxu1 %v2903_v22  ;;  %v876_v21 = vld [vmem:[%s4071_s4 + $0x3e8] sm:$0xff] }
  0xfe   : > { %2115 = vmatprep.subr.bf16.mxu0 %v2878_v23  ;;  %2156 = vmatprep.subr.bf16.mxu1 %v2880_v24  ;;  %v888_v22 = vld [vmem:[%s4071_s4 + $0x448] sm:$0xff]  ;;  %v2905_v23 = vcombine.low %v899_v10, %v911_v11  ;;  %v2907_v24 = vcombine.low %v900_v13, %v912_v14  ;;  %v2934_v10 = vcombine.high %v925_v4, %v937_v5  ;;  %v901_v13 = vld [vmem:[%s4071_s4 + $0x4b0] sm:$0xff] }
  0xff   : > { %v2884_v26 = vcombine.high %v876_v21, %v888_v22  ;;  %v913_v14 = vld [vmem:[%s4071_s4 + $0x510] sm:$0xff] }
 0x101   : > { %2116 = vmatpush1.bf16.msra.mxu0 %v2877_v29  ;;  %2157 = vmatpush1.bf16.msra.mxu1 %v2879_v30  ;;  %v852_v29 = vld [vmem:[%s4071_s4 + $0x328] sm:$0xff] }
 0x102   : > { %2117 = vmatprep.subr.bf16.mxu0 %v2854_v31  ;;  %2158 = vmatprep.subr.bf16.mxu1 %v2856_v32  ;;  %v864_v30 = vld [vmem:[%s4071_s4 + $0x388] sm:$0xff]  ;;  %v2881_v31 = vcombine.low %v875_v19, %v887_v20  ;;  %v2883_v32 = vcombine.low %v876_v21, %v888_v22  ;;  %v2910_v19 = vcombine.high %v901_v13, %v913_v14  ;;  %v877_v21 = vld [vmem:[%s4071_s4 + $0x3f0] sm:$0xff] }
 0x103   : > { %v2860_v34 = vcombine.high %v852_v29, %v864_v30  ;;  %v889_v22 = vld [vmem:[%s4071_s4 + $0x450] sm:$0xff] }
 0x105   : > { %2118 = vmatpush1.bf16.msra.mxu0 %v2853_v37  ;;  %2159 = vmatpush1.bf16.msra.mxu1 %v2855_v38  ;;  %v828_v37 = vld [vmem:[%s4071_s4 + $0x268] sm:$0xff] }
 0x106   : > { %2119 = vmatprep.subr.bf16.mxu0 %v2830_v39  ;;  %2160 = vmatprep.subr.bf16.mxu1 %v2832_v40  ;;  %v840_v38 = vld [vmem:[%s4071_s4 + $0x2c8] sm:$0xff]  ;;  %v2857_v39 = vcombine.low %v851_v27, %v863_v28  ;;  %v2859_v40 = vcombine.low %v852_v29, %v864_v30  ;;  %v2886_v27 = vcombine.high %v877_v21, %v889_v22  ;;  %v853_v29 = vld [vmem:[%s4071_s4 + $0x330] sm:$0xff] }
 0x107   : > { %v2836_v42 = vcombine.high %v828_v37, %v840_v38  ;;  %v865_v30 = vld [vmem:[%s4071_s4 + $0x390] sm:$0xff] }
 0x109   : > { %2120 = vmatpush1.bf16.msra.mxu0 %v2829_v45  ;;  %2161 = vmatpush1.bf16.msra.mxu1 %v2831_v46  ;;  %v804_v45 = vld [vmem:[%s4071_s4 + $0x1a8] sm:$0xff] }
 0x10a   : > { %2121 = vmatprep.subr.bf16.mxu0 %v2806_v47  ;;  %2162 = vmatprep.subr.bf16.mxu1 %v2808_v48  ;;  %v816_v46 = vld [vmem:[%s4071_s4 + $0x208] sm:$0xff]  ;;  %v2833_v47 = vcombine.low %v827_v35, %v839_v36  ;;  %v2835_v48 = vcombine.low %v828_v37, %v840_v38  ;;  %v2862_v35 = vcombine.high %v853_v29, %v865_v30  ;;  %v829_v37 = vld [vmem:[%s4071_s4 + $0x270] sm:$0xff] }
 0x10b   : > { %v2812_v50 = vcombine.high %v804_v45, %v816_v46  ;;  %v841_v38 = vld [vmem:[%s4071_s4 + $0x2d0] sm:$0xff] }
 0x10d   : > { %2122 = vmatpush1.bf16.msra.mxu0 %v2805_v53  ;;  %2163 = vmatpush1.bf16.msra.mxu1 %v2807_v54  ;;  %v780_v53 = vld [vmem:[%s4071_s4 + $0xe8] sm:$0xff] }
 0x10e   : > { %2123 = vmatprep.subr.bf16.mxu0 %v2782_v55  ;;  %2164 = vmatprep.subr.bf16.mxu1 %v2784_v56  ;;  %v792_v54 = vld [vmem:[%s4071_s4 + $0x148] sm:$0xff]  ;;  %v2809_v55 = vcombine.low %v803_v43, %v815_v44  ;;  %v2811_v56 = vcombine.low %v804_v45, %v816_v46  ;;  %v2838_v43 = vcombine.high %v829_v37, %v841_v38  ;;  %v805_v45 = vld [vmem:[%s4071_s4 + $0x1b0] sm:$0xff] }
 0x10f   : > { %v2788_v58 = vcombine.high %v780_v53, %v792_v54  ;;  %v817_v46 = vld [vmem:[%s4071_s4 + $0x210] sm:$0xff] }
 0x111   : > { %2124 = vmatpush1.bf16.msra.mxu0 %v2781_v61  ;;  %2165 = vmatpush1.bf16.msra.mxu1 %v2783_v62  ;;  %v756_v61 = vld [vmem:[%s4071_s4 + $0x28] sm:$0xff] }
 0x112   : > { %2125 = vmatprep.subr.bf16.mxu0 %v2758_v63  ;;  %2166 = vmatprep.subr.bf16.mxu1 %v2760_v1  ;;  %v768_v62 = vld [vmem:[%s4071_s4 + $0x88] sm:$0xff]  ;;  %v2785_v63 = vcombine.low %v779_v51, %v791_v52  ;;  %v2787_v1 = vcombine.low %v780_v53, %v792_v54  ;;  %v2814_v51 = vcombine.high %v805_v45, %v817_v46  ;;  %v781_v53 = vld [vmem:[%s4071_s4 + $0xf0] sm:$0xff] }
 0x113   : > { %v2764_v3 = vcombine.high %v756_v61, %v768_v62  ;;  %v793_v54 = vld [vmem:[%s4071_s4 + $0x150] sm:$0xff] }
 0x115   : > { %2126 = vmatpush1.bf16.msra.mxu0 %v2757_v6  ;;  %2167 = vmatpush1.bf16.msra.mxu1 %v2759_v7  ;;  %v926_v6 = vld [vmem:[%s4071_s4 + $0x578] sm:$0xff] }
 0x116   : > { %2193 = vmatprep.subr.bf16.mxu0 %v2930_v8  ;;  %2234 = vmatprep.subr.bf16.mxu1 %v2932_v9  ;;  %v938_v7 = vld [vmem:[%s4071_s4 + $0x5d8] sm:$0xff]  ;;  %v2761_v8 = vcombine.low %v755_v59, %v767_v60  ;;  %v2763_v9 = vcombine.low %v756_v61, %v768_v62  ;;  %v2790_v59 = vcombine.high %v781_v53, %v793_v54  ;;  %v757_v61 = vld [vmem:[%s4071_s4 + $0x30] sm:$0xff] }
 0x117   : > { %v2936_v11 = vcombine.high %v926_v6, %v938_v7  ;;  %v769_v62 = vld [vmem:[%s4071_s4 + $0x90] sm:$0xff] }
 0x118   : > { %2144 = vmatmul.mubr.bf16.vlgmr.msra.gmra.mxu0 %v4116_v12  ;;  %2185 = vmatmul.mubr.bf16.vlgmr.msra.gmra.mxu1 %v4116_v12 }
 0x119   : > { %2194 = vmatpush1.bf16.msra.mxu0 %v2929_v15  ;;  %2235 = vmatpush1.bf16.msra.mxu1 %v2931_v16  ;;  %v902_v15 = vld [vmem:[%s4071_s4 + $0x4b8] sm:$0xff] }
 0x11a   : > { %2195 = vmatprep.subr.bf16.mxu0 %v2906_v17  ;;  %2236 = vmatprep.subr.bf16.mxu1 %v2908_v18  ;;  %v914_v16 = vld [vmem:[%s4071_s4 + $0x518] sm:$0xff]  ;;  %v2933_v17 = vcombine.low %v925_v4, %v937_v5  ;;  %v2935_v18 = vcombine.low %v926_v6, %v938_v7  ;;  %v2766_v4 = vcombine.high %v757_v61, %v769_v62  ;;  %v927_v6 = vld [vmem:[%s4071_s4 + $0x580] sm:$0xff] }
 0x11b   : > { %2225 = vmatprep.mubr.bf16.mxu0 %v3322_v0  ;;  %2266 = vmatprep.mubr.bf16.mxu1 %v3322_v0  ;;  %v2912_v20 = vcombine.high %v902_v15, %v914_v16  ;;  %v939_v7 = vld [vmem:[%s4071_s4 + $0x5e0] sm:$0xff] }
 0x11d   : > { %2196 = vmatpush1.bf16.msra.mxu0 %v2905_v23  ;;  %2237 = vmatpush1.bf16.msra.mxu1 %v2907_v24  ;;  %v878_v23 = vld [vmem:[%s4071_s4 + $0x3f8] sm:$0xff] }
 0x11e   : > { %2197 = vmatprep.subr.bf16.mxu0 %v2882_v25  ;;  %2238 = vmatprep.subr.bf16.mxu1 %v2884_v26  ;;  %v890_v24 = vld [vmem:[%s4071_s4 + $0x458] sm:$0xff]  ;;  %v2909_v25 = vcombine.low %v901_v13, %v913_v14  ;;  %v2911_v26 = vcombine.low %v902_v15, %v914_v16  ;;  %v2938_v13 = vcombine.high %v927_v6, %v939_v7  ;;  %v903_v15 = vld [vmem:[%s4071_s4 + $0x4c0] sm:$0xff] }
 0x11f   : > { %v2888_v28 = vcombine.high %v878_v23, %v890_v24  ;;  %v915_v16 = vld [vmem:[%s4071_s4 + $0x520] sm:$0xff] }
 0x121   : > { %2198 = vmatpush1.bf16.msra.mxu0 %v2881_v31  ;;  %2239 = vmatpush1.bf16.msra.mxu1 %v2883_v32  ;;  %v854_v31 = vld [vmem:[%s4071_s4 + $0x338] sm:$0xff] }
 0x122   : > { %2199 = vmatprep.subr.bf16.mxu0 %v2858_v33  ;;  %2240 = vmatprep.subr.bf16.mxu1 %v2860_v34  ;;  %v866_v32 = vld [vmem:[%s4071_s4 + $0x398] sm:$0xff]  ;;  %v2885_v33 = vcombine.low %v877_v21, %v889_v22  ;;  %v2887_v34 = vcombine.low %v878_v23, %v890_v24  ;;  %v2914_v21 = vcombine.high %v903_v15, %v915_v16  ;;  %v879_v23 = vld [vmem:[%s4071_s4 + $0x400] sm:$0xff] }
 0x123   : > { %v2864_v36 = vcombine.high %v854_v31, %v866_v32  ;;  %v891_v24 = vld [vmem:[%s4071_s4 + $0x460] sm:$0xff] }
 0x125   : > { %2200 = vmatpush1.bf16.msra.mxu0 %v2857_v39  ;;  %2241 = vmatpush1.bf16.msra.mxu1 %v2859_v40  ;;  %v830_v39 = vld [vmem:[%s4071_s4 + $0x278] sm:$0xff] }
 0x126   : > { %2201 = vmatprep.subr.bf16.mxu0 %v2834_v41  ;;  %2242 = vmatprep.subr.bf16.mxu1 %v2836_v42  ;;  %v842_v40 = vld [vmem:[%s4071_s4 + $0x2d8] sm:$0xff]  ;;  %v2861_v41 = vcombine.low %v853_v29, %v865_v30  ;;  %v2863_v42 = vcombine.low %v854_v31, %v866_v32  ;;  %v2890_v29 = vcombine.high %v879_v23, %v891_v24  ;;  %v855_v31 = vld [vmem:[%s4071_s4 + $0x340] sm:$0xff] }
 0x127   : > { %v2840_v44 = vcombine.high %v830_v39, %v842_v40  ;;  %v867_v32 = vld [vmem:[%s4071_s4 + $0x3a0] sm:$0xff] }
 0x129   : > { %2202 = vmatpush1.bf16.msra.mxu0 %v2833_v47  ;;  %2243 = vmatpush1.bf16.msra.mxu1 %v2835_v48  ;;  %v806_v47 = vld [vmem:[%s4071_s4 + $0x1b8] sm:$0xff] }
 0x12a   : > { %2203 = vmatprep.subr.bf16.mxu0 %v2810_v49  ;;  %2244 = vmatprep.subr.bf16.mxu1 %v2812_v50  ;;  %v818_v48 = vld [vmem:[%s4071_s4 + $0x218] sm:$0xff]  ;;  %v2837_v49 = vcombine.low %v829_v37, %v841_v38  ;;  %v2839_v50 = vcombine.low %v830_v39, %v842_v40  ;;  %v2866_v37 = vcombine.high %v855_v31, %v867_v32  ;;  %v831_v39 = vld [vmem:[%s4071_s4 + $0x280] sm:$0xff] }
 0x12b   : > { %v2816_v52 = vcombine.high %v806_v47, %v818_v48  ;;  %v843_v40 = vld [vmem:[%s4071_s4 + $0x2e0] sm:$0xff] }
 0x12d   : > { %2204 = vmatpush1.bf16.msra.mxu0 %v2809_v55  ;;  %2245 = vmatpush1.bf16.msra.mxu1 %v2811_v56  ;;  %v782_v55 = vld [vmem:[%s4071_s4 + $0xf8] sm:$0xff] }
 0x12e   : > { %2205 = vmatprep.subr.bf16.mxu0 %v2786_v57  ;;  %2246 = vmatprep.subr.bf16.mxu1 %v2788_v58  ;;  %v794_v56 = vld [vmem:[%s4071_s4 + $0x158] sm:$0xff]  ;;  %v2813_v57 = vcombine.low %v805_v45, %v817_v46  ;;  %v2815_v58 = vcombine.low %v806_v47, %v818_v48  ;;  %v2842_v45 = vcombine.high %v831_v39, %v843_v40  ;;  %v807_v47 = vld [vmem:[%s4071_s4 + $0x1c0] sm:$0xff] }
 0x12f   : > { %v2792_v60 = vcombine.high %v782_v55, %v794_v56  ;;  %v819_v48 = vld [vmem:[%s4071_s4 + $0x220] sm:$0xff] }
 0x131   : > { %2206 = vmatpush1.bf16.msra.mxu0 %v2785_v63  ;;  %2247 = vmatpush1.bf16.msra.mxu1 %v2787_v1  ;;  %v758_v63 = vld [vmem:[%s4071_s4 + $0x38] sm:$0xff] }
 0x132   : > { %2207 = vmatprep.subr.bf16.mxu0 %v2762_v2  ;;  %2248 = vmatprep.subr.bf16.mxu1 %v2764_v3  ;;  %v770_v1 = vld [vmem:[%s4071_s4 + $0x98] sm:$0xff]  ;;  %v2789_v2 = vcombine.low %v781_v53, %v793_v54  ;;  %v2791_v3 = vcombine.low %v782_v55, %v794_v56  ;;  %v2818_v53 = vcombine.high %v807_v47, %v819_v48  ;;  %v783_v55 = vld [vmem:[%s4071_s4 + $0x100] sm:$0xff] }
 0x133   : > { %v2768_v5 = vcombine.high %v758_v63, %v770_v1  ;;  %v795_v56 = vld [vmem:[%s4071_s4 + $0x160] sm:$0xff] }
 0x135   : > { %2208 = vmatpush1.bf16.msra.mxu0 %v2761_v8  ;;  %2249 = vmatpush1.bf16.msra.mxu1 %v2763_v9  ;;  %v928_v8 = vld [vmem:[%s4071_s4 + $0x588] sm:$0xff] }
 0x136   : > { %2275 = vmatprep.subr.bf16.mxu0 %v2934_v10  ;;  %2316 = vmatprep.subr.bf16.mxu1 %v2936_v11  ;;  %v940_v9 = vld [vmem:[%s4071_s4 + $0x5e8] sm:$0xff]  ;;  %v2765_v10 = vcombine.low %v757_v61, %v769_v62  ;;  %v2767_v11 = vcombine.low %v758_v63, %v770_v1  ;;  %v2794_v61 = vcombine.high %v783_v55, %v795_v56  ;;  %v759_v63 = vld [vmem:[%s4071_s4 + $0x40] sm:$0xff] }
 0x137   : > { %v2940_v14 = vcombine.high %v928_v8, %v940_v9  ;;  %v771_v1 = vld [vmem:[%s4071_s4 + $0xa0] sm:$0xff] }
 0x138   : > { %2226 = vmatmul.mubr.bf16.vlgmr.msra.gmra.mxu0 %v4116_v12  ;;  %2267 = vmatmul.mubr.bf16.vlgmr.msra.gmra.mxu1 %v4116_v12 }
 0x139   : > { %2276 = vmatpush1.bf16.msra.mxu0 %v2933_v17  ;;  %2317 = vmatpush1.bf16.msra.mxu1 %v2935_v18  ;;  %v904_v17 = vld [vmem:[%s4071_s4 + $0x4c8] sm:$0xff] }
 0x13a   : > { %2277 = vmatprep.subr.bf16.mxu0 %v2910_v19  ;;  %2318 = vmatprep.subr.bf16.mxu1 %v2912_v20  ;;  %v916_v18 = vld [vmem:[%s4071_s4 + $0x528] sm:$0xff]  ;;  %v2937_v19 = vcombine.low %v927_v6, %v939_v7  ;;  %v2939_v20 = vcombine.low %v928_v8, %v940_v9  ;;  %v2770_v6 = vcombine.high %v759_v63, %v771_v1  ;;  %v929_v8 = vld [vmem:[%s4071_s4 + $0x590] sm:$0xff] }
 0x13b   : > { %2307 = vmatprep.mubr.bf16.mxu0 %v3322_v0  ;;  %2348 = vmatprep.mubr.bf16.mxu1 %v3322_v0  ;;  %v2916_v22 = vcombine.high %v904_v17, %v916_v18  ;;  %v941_v9 = vld [vmem:[%s4071_s4 + $0x5f0] sm:$0xff] }
 0x13d   : > { %2278 = vmatpush1.bf16.msra.mxu0 %v2909_v25  ;;  %2319 = vmatpush1.bf16.msra.mxu1 %v2911_v26  ;;  %v880_v25 = vld [vmem:[%s4071_s4 + $0x408] sm:$0xff] }
 0x13e   : > { %2279 = vmatprep.subr.bf16.mxu0 %v2886_v27  ;;  %2320 = vmatprep.subr.bf16.mxu1 %v2888_v28  ;;  %v892_v26 = vld [vmem:[%s4071_s4 + $0x468] sm:$0xff]  ;;  %v2913_v27 = vcombine.low %v903_v15, %v915_v16  ;;  %v2915_v28 = vcombine.low %v904_v17, %v916_v18  ;;  %v2942_v15 = vcombine.high %v929_v8, %v941_v9  ;;  %v905_v17 = vld [vmem:[%s4071_s4 + $0x4d0] sm:$0xff] }
 0x13f   : > { %v2892_v30 = vcombine.high %v880_v25, %v892_v26  ;;  %v917_v18 = vld [vmem:[%s4071_s4 + $0x530] sm:$0xff] }
 0x141   : > { %2280 = vmatpush1.bf16.msra.mxu0 %v2885_v33  ;;  %2321 = vmatpush1.bf16.msra.mxu1 %v2887_v34  ;;  %v856_v33 = vld [vmem:[%s4071_s4 + $0x348] sm:$0xff] }
 0x142   : > { %2281 = vmatprep.subr.bf16.mxu0 %v2862_v35  ;;  %2322 = vmatprep.subr.bf16.mxu1 %v2864_v36  ;;  %v868_v34 = vld [vmem:[%s4071_s4 + $0x3a8] sm:$0xff]  ;;  %v2889_v35 = vcombine.low %v879_v23, %v891_v24  ;;  %v2891_v36 = vcombine.low %v880_v25, %v892_v26  ;;  %v2918_v23 = vcombine.high %v905_v17, %v917_v18  ;;  %v881_v25 = vld [vmem:[%s4071_s4 + $0x410] sm:$0xff] }
 0x143   : > { %v2868_v38 = vcombine.high %v856_v33, %v868_v34  ;;  %v893_v26 = vld [vmem:[%s4071_s4 + $0x470] sm:$0xff] }
 0x145   : > { %2282 = vmatpush1.bf16.msra.mxu0 %v2861_v41  ;;  %2323 = vmatpush1.bf16.msra.mxu1 %v2863_v42  ;;  %v832_v41 = vld [vmem:[%s4071_s4 + $0x288] sm:$0xff] }
 0x146   : > { %2283 = vmatprep.subr.bf16.mxu0 %v2838_v43  ;;  %2324 = vmatprep.subr.bf16.mxu1 %v2840_v44  ;;  %v844_v42 = vld [vmem:[%s4071_s4 + $0x2e8] sm:$0xff]  ;;  %v2865_v43 = vcombine.low %v855_v31, %v867_v32  ;;  %v2867_v44 = vcombine.low %v856_v33, %v868_v34  ;;  %v2894_v31 = vcombine.high %v881_v25, %v893_v26  ;;  %v857_v33 = vld [vmem:[%s4071_s4 + $0x350] sm:$0xff] }
 0x147   : > { %v2844_v46 = vcombine.high %v832_v41, %v844_v42  ;;  %v869_v34 = vld [vmem:[%s4071_s4 + $0x3b0] sm:$0xff] }
 0x149   : > { %2284 = vmatpush1.bf16.msra.mxu0 %v2837_v49  ;;  %2325 = vmatpush1.bf16.msra.mxu1 %v2839_v50  ;;  %v808_v49 = vld [vmem:[%s4071_s4 + $0x1c8] sm:$0xff] }
 0x14a   : > { %2285 = vmatprep.subr.bf16.mxu0 %v2814_v51  ;;  %2326 = vmatprep.subr.bf16.mxu1 %v2816_v52  ;;  %v820_v50 = vld [vmem:[%s4071_s4 + $0x228] sm:$0xff]  ;;  %v2841_v51 = vcombine.low %v831_v39, %v843_v40  ;;  %v2843_v52 = vcombine.low %v832_v41, %v844_v42  ;;  %v2870_v39 = vcombine.high %v857_v33, %v869_v34  ;;  %v833_v41 = vld [vmem:[%s4071_s4 + $0x290] sm:$0xff] }
 0x14b   : > { %v2820_v54 = vcombine.high %v808_v49, %v820_v50  ;;  %v845_v42 = vld [vmem:[%s4071_s4 + $0x2f0] sm:$0xff] }
 0x14d   : > { %2286 = vmatpush1.bf16.msra.mxu0 %v2813_v57  ;;  %2327 = vmatpush1.bf16.msra.mxu1 %v2815_v58  ;;  %v784_v57 = vld [vmem:[%s4071_s4 + $0x108] sm:$0xff] }
 0x14e   : > { %2287 = vmatprep.subr.bf16.mxu0 %v2790_v59  ;;  %2328 = vmatprep.subr.bf16.mxu1 %v2792_v60  ;;  %v796_v58 = vld [vmem:[%s4071_s4 + $0x168] sm:$0xff]  ;;  %v2817_v59 = vcombine.low %v807_v47, %v819_v48  ;;  %v2819_v60 = vcombine.low %v808_v49, %v820_v50  ;;  %v809_v48 = vld [vmem:[%s4071_s4 + $0x1d0] sm:$0xff]  ;;  %v810_v50 = vld [vmem:[%s4071_s4 + $0x1d8] sm:$0xff] }
 0x14f   : > { %v2796_v62 = vcombine.high %v784_v57, %v796_v58  ;;  %v821_v49 = vld [vmem:[%s4071_s4 + $0x230] sm:$0xff] }
 0x151   : > { %2288 = vmatpush1.bf16.msra.mxu0 %v2789_v2  ;;  %2329 = vmatpush1.bf16.msra.mxu1 %v2791_v3  ;;  %v760_v2 = vld [vmem:[%s4071_s4 + $0x48] sm:$0xff] }
 0x152   : > { %2289 = vmatprep.subr.bf16.mxu0 %v2766_v4  ;;  %2330 = vmatprep.subr.bf16.mxu1 %v2768_v5  ;;  %v772_v3 = vld [vmem:[%s4071_s4 + $0xa8] sm:$0xff]  ;;  %v2793_v4 = vcombine.low %v783_v55, %v795_v56  ;;  %v2795_v5 = vcombine.low %v784_v57, %v796_v58  ;;  %v785_v56 = vld [vmem:[%s4071_s4 + $0x110] sm:$0xff]  ;;  %v786_v58 = vld [vmem:[%s4071_s4 + $0x118] sm:$0xff] }
 0x153   : > { %v2772_v7 = vcombine.high %v760_v2, %v772_v3  ;;  %v797_v57 = vld [vmem:[%s4071_s4 + $0x170] sm:$0xff] }
 0x155   : > { %2290 = vmatpush1.bf16.msra.mxu0 %v2765_v10  ;;  %2331 = vmatpush1.bf16.msra.mxu1 %v2767_v11  ;;  %v930_v10 = vld [vmem:[%s4071_s4 + $0x598] sm:$0xff] }
 0x156   : > { %2357 = vmatprep.subr.bf16.mxu0 %v2938_v13  ;;  %2398 = vmatprep.subr.bf16.mxu1 %v2940_v14  ;;  %v942_v11 = vld [vmem:[%s4071_s4 + $0x5f8] sm:$0xff]  ;;  %v2769_v13 = vcombine.low %v759_v63, %v771_v1  ;;  %v2771_v14 = vcombine.low %v760_v2, %v772_v3  ;;  %v761_v1 = vld [vmem:[%s4071_s4 + $0x50] sm:$0xff] }
 0x157   : > { %v2944_v16 = vcombine.high %v930_v10, %v942_v11  ;;  %v773_v2 = vld [vmem:[%s4071_s4 + $0xb0] sm:$0xff]  ;;  %v762_v3 = vld [vmem:[%s4071_s4 + $0x58] sm:$0xff] }
 0x158   : > { %2308 = vmatmul.mubr.bf16.vlgmr.msra.gmra.mxu0 %v4116_v12  ;;  %2349 = vmatmul.mubr.bf16.vlgmr.msra.gmra.mxu1 %v4116_v12 }
 0x159   : > { %2358 = vmatpush1.bf16.msra.mxu0 %v2937_v19  ;;  %2399 = vmatpush1.bf16.msra.mxu1 %v2939_v20  ;;  %v906_v19 = vld [vmem:[%s4071_s4 + $0x4d8] sm:$0xff] }
 0x15a   : > { %2359 = vmatprep.subr.bf16.mxu0 %v2914_v21  ;;  %2400 = vmatprep.subr.bf16.mxu1 %v2916_v22  ;;  %v918_v20 = vld [vmem:[%s4071_s4 + $0x538] sm:$0xff]  ;;  %v2941_v21 = vcombine.low %v929_v8, %v941_v9  ;;  %v2943_v22 = vcombine.low %v930_v10, %v942_v11  ;;  %v2773_v9 = vcombine.low %v761_v1, %v773_v2  ;;  %v949_v11 = vlaneseq }
 0x15b   : > { %2389 = vmatprep.mubr.bf16.mxu0 %v3322_v0  ;;  %2430 = vmatprep.mubr.bf16.mxu1 %v3322_v0  ;;  %v2920_v24 = vcombine.high %v906_v19, %v918_v20 }
 0x15d   : > { %2360 = vmatpush1.bf16.msra.mxu0 %v2913_v27  ;;  %2401 = vmatpush1.bf16.msra.mxu1 %v2915_v28  ;;  %v882_v27 = vld [vmem:[%s4071_s4 + $0x418] sm:$0xff] }
 0x15e   : > { %2361 = vmatprep.subr.bf16.mxu0 %v2890_v29  ;;  %2402 = vmatprep.subr.bf16.mxu1 %v2892_v30  ;;  %v894_v28 = vld [vmem:[%s4071_s4 + $0x478] sm:$0xff]  ;;  %v2917_v29 = vcombine.low %v905_v17, %v917_v18  ;;  %v2919_v30 = vcombine.low %v906_v19, %v918_v20 }
 0x15f   : > { %v2896_v32 = vcombine.high %v882_v27, %v894_v28 }
 0x161   : > { %2362 = vmatpush1.bf16.msra.mxu0 %v2889_v35  ;;  %2403 = vmatpush1.bf16.msra.mxu1 %v2891_v36  ;;  %v858_v35 = vld [vmem:[%s4071_s4 + $0x358] sm:$0xff] }
 0x162   : > { %2363 = vmatprep.subr.bf16.mxu0 %v2866_v37  ;;  %2404 = vmatprep.subr.bf16.mxu1 %v2868_v38  ;;  %v870_v36 = vld [vmem:[%s4071_s4 + $0x3b8] sm:$0xff]  ;;  %v2893_v37 = vcombine.low %v881_v25, %v893_v26  ;;  %v2895_v38 = vcombine.low %v882_v27, %v894_v28 }
 0x163   : > { %v2872_v40 = vcombine.high %v858_v35, %v870_v36 }
 0x165   : > { %2364 = vmatpush1.bf16.msra.mxu0 %v2865_v43  ;;  %2405 = vmatpush1.bf16.msra.mxu1 %v2867_v44  ;;  %v834_v43 = vld [vmem:[%s4071_s4 + $0x298] sm:$0xff] }
 0x166   : > { %2365 = vmatprep.subr.bf16.mxu0 %v2842_v45  ;;  %2406 = vmatprep.subr.bf16.mxu1 %v2844_v46  ;;  %v846_v44 = vld [vmem:[%s4071_s4 + $0x2f8] sm:$0xff]  ;;  %v2869_v45 = vcombine.low %v857_v33, %v869_v34  ;;  %v2846_v46 = vcombine.high %v833_v41, %v845_v42 }
 0x167   : > { %v2848_v47 = vcombine.high %v834_v43, %v846_v44 }
 0x169   : > { %2366 = vmatpush1.bf16.msra.mxu0 %v2841_v51  ;;  %2407 = vmatpush1.bf16.msra.mxu1 %v2843_v52  ;;  %v822_v51 = vld [vmem:[%s4071_s4 + $0x238] sm:$0xff]  ;;  %v2845_v52 = vcombine.low %v833_v41, %v845_v42 }
 0x16a   : > { %2367 = vmatprep.subr.bf16.mxu0 %v2818_v53  ;;  %2408 = vmatprep.subr.bf16.mxu1 %v2820_v54  ;;  %v2847_v53 = vcombine.low %v834_v43, %v846_v44  ;;  %v2822_v54 = vcombine.high %v809_v48, %v821_v49  ;;  %v2824_v55 = vcombine.high %v810_v50, %v822_v51 }
 0x16d   : > { %2368 = vmatpush1.bf16.msra.mxu0 %v2817_v59  ;;  %2409 = vmatpush1.bf16.msra.mxu1 %v2819_v60  ;;  %v798_v59 = vld [vmem:[%s4071_s4 + $0x178] sm:$0xff]  ;;  %v2821_v60 = vcombine.low %v809_v48, %v821_v49 }
 0x16e   : > { %2369 = vmatprep.subr.bf16.mxu0 %v2794_v61  ;;  %2410 = vmatprep.subr.bf16.mxu1 %v2796_v62  ;;  %v2823_v61 = vcombine.low %v810_v50, %v822_v51  ;;  %v2798_v62 = vcombine.high %v785_v56, %v797_v57  ;;  %v2800_v63 = vcombine.high %v786_v58, %v798_v59 }
 0x171   : > { %2370 = vmatpush1.bf16.msra.mxu0 %v2793_v4  ;;  %2411 = vmatpush1.bf16.msra.mxu1 %v2795_v5  ;;  %v774_v4 = vld [vmem:[%s4071_s4 + $0xb8] sm:$0xff]  ;;  %v2797_v5 = vcombine.low %v785_v56, %v797_v57 }
 0x172   : > { %2371 = vmatprep.subr.bf16.mxu0 %v2770_v6  ;;  %2412 = vmatprep.subr.bf16.mxu1 %v2772_v7  ;;  %v2799_v6 = vcombine.low %v786_v58, %v798_v59  ;;  %v2774_v7 = vcombine.high %v761_v1, %v773_v2  ;;  %v2776_v8 = vcombine.high %v762_v3, %v774_v4 }
 0x173   : > { %v2775_v10 = vcombine.low %v762_v3, %v774_v4 }
 0x175   : > { %2372 = vmatpush1.bf16.msra.mxu0 %v2769_v13  ;;  %2413 = vmatpush1.bf16.msra.mxu1 %v2771_v14  ;;  %v950_v13 = vshrl.u32 %v949_v11, 7 }
 0x176   : > { %2439 = vmatprep.subr.bf16.mxu0 %v2942_v15  ;;  %2480 = vmatprep.subr.bf16.mxu1 %v2944_v16  ;;  %v943_v15 = vld [vmem:[%s4300_s25] sm:$0xff] }
 0x177   : > { %v4302_v14 = vsub.s32 0, %v950_v13  ;;  %v4305_v16 = vsub.s32 2, %v950_v13  ;;  %v4310_v17 = vsub.s32 3, %v950_v13  ;;  %v4322_v34 = vsub.s32 4, %v950_v13 }
 0x178   : > { %2390 = vmatmul.mubr.bf16.vlgmr.msra.gmra.mxu0 %v4116_v12  ;;  %2431 = vmatmul.mubr.bf16.vlgmr.msra.gmra.mxu1 %v4116_v12 }
 0x179   : > { %2440 = vmatpush1.bf16.msra.mxu0 %v2941_v21  ;;  %2481 = vmatpush1.bf16.msra.mxu1 %v2943_v22  ;;  %v952_v18 = vrot.slane %v943_v15, %v4302_v14  ;;  %v960_v19 = vrot.slane %v943_v15, %v4305_v16  ;;  %v964_v22 = vrot.slane %v943_v15, %v4310_v17 }
 0x17a   : > { %2441 = vmatprep.subr.bf16.mxu0 %v2918_v23  ;;  %2482 = vmatprep.subr.bf16.mxu1 %v2920_v24 }
 0x17b   : > { %2471 = vmatprep.mubr.bf16.mxu0 %v3322_v0  ;;  %2512 = vmatprep.mubr.bf16.mxu1 %v3322_v0  ;;  %v2871_v0 = vcombine.low %v858_v35, %v870_v36  ;;  %v4324_v35 = vsub.s32 6, %v950_v13  ;;  %v4326_v36 = vsub.s32 5, %v950_v13 }
 0x17d   : > { %2442 = vmatpush1.bf16.msra.mxu0 %v2917_v29  ;;  %2483 = vmatpush1.bf16.msra.mxu1 %v2919_v30 }
 0x17e   : > { %2443 = vmatprep.subr.bf16.mxu0 %v2894_v31  ;;  %2484 = vmatprep.subr.bf16.mxu1 %v2896_v32 }
 0x181   : > { %2444 = vmatpush1.bf16.msra.mxu0 %v2893_v37  ;;  %2485 = vmatpush1.bf16.msra.mxu1 %v2895_v38  ;;  %v4328_v37 = vsub.s32 7, %v950_v13  ;;  %v968_v38 = vrot.slane %v943_v15, %v4322_v34 }
 0x182   : > { %2445 = vmatprep.subr.bf16.mxu0 %v2870_v39  ;;  %2486 = vmatprep.subr.bf16.mxu1 %v2872_v40  ;;  %v976_v39 = vrot.slane %v943_v15, %v4324_v35  ;;  %v972_v40 = vrot.slane %v943_v15, %v4326_v36 }
 0x183   : > { %v980_v42 = vrot.slane %v943_v15, %v4328_v37 }
 0x185   : > { %2446 = vmatpush1.bf16.msra.mxu0 %v2869_v45  ;;  %2487 = vmatpush1.bf16.msra.mxu1 %v2871_v0 }
 0x186   : > { %2447 = vmatprep.subr.bf16.mxu0 %v2846_v46  ;;  %2488 = vmatprep.subr.bf16.mxu1 %v2848_v47 }
 0x189   : > { %2448 = vmatpush1.bf16.msra.mxu0 %v2845_v52  ;;  %2489 = vmatpush1.bf16.msra.mxu1 %v2847_v53  ;;  %v944_v53 = vld [vmem:[%s4300_s25 + $0x8] sm:$0xff] }
 0x18a   : > { %2449 = vmatprep.subr.bf16.mxu0 %v2822_v54  ;;  %2490 = vmatprep.subr.bf16.mxu1 %v2824_v55  ;;  %v984_v54 = vrot.slane %v944_v53, %v4302_v14  ;;  %v992_v55 = vrot.slane %v944_v53, %v4305_v16  ;;  %v996_v58 = vrot.slane %v944_v53, %v4310_v17 }
 0x18b   : > { %v1012_v11 = vrot.slane %v944_v53, %v4328_v37 }
 0x18d   : > { %2450 = vmatpush1.bf16.msra.mxu0 %v2821_v60  ;;  %2491 = vmatpush1.bf16.msra.mxu1 %v2823_v61 }
 0x18e   : > { %2451 = vmatprep.subr.bf16.mxu0 %v2798_v62  ;;  %2492 = vmatprep.subr.bf16.mxu1 %v2800_v63 }
 0x191   : > { %2452 = vmatpush1.bf16.msra.mxu0 %v2797_v5  ;;  %2493 = vmatpush1.bf16.msra.mxu1 %v2799_v6 }
 0x192   : > { %2453 = vmatprep.subr.bf16.mxu0 %v2774_v7  ;;  %2494 = vmatprep.subr.bf16.mxu1 %v2776_v8  ;;  %v1000_v7 = vrot.slane %v944_v53, %v4322_v34  ;;  %v1008_v8 = vrot.slane %v944_v53, %v4324_v35 }
 0x195   : > { %2454 = vmatpush1.bf16.msra.mxu0 %v2773_v9  ;;  %2495 = vmatpush1.bf16.msra.mxu1 %v2775_v10  ;;  %v1004_v9 = vrot.slane %v944_v53, %v4326_v36 }
 0x198   : > { %2472 = vmatmul.mubr.bf16.vlgmr.msra.gmra.mxu0 %v4116_v12  ;;  %2513 = vmatmul.mubr.bf16.vlgmr.msra.gmra.mxu1 %v4116_v12  ;;  %v4307_v12 = vsub.s32 1, %v950_v13 }
 0x19a   : > { %v956_v20 = vrot.slane %v943_v15, %v4307_v12  ;;  %v988_v56 = vrot.slane %v944_v53, %v4307_v12 }
 0x1b8   : > { %v2063_v21 = vpop.f32.mrf.mxu0  ;;  %v2104_v24 = vpop.f32.mrf.mxu1 }
 0x1b9   : > { %v2064_v23 = vadd.f32 %v2063_v21, %v952_v18  ;;  %v2105_v25 = vadd.f32 %v2104_v24, %v960_v19 }
 0x1ba   : > { %v2065_v26 = vpop.f32.mrf.mxu0  ;;  %v2106_v28 = vpop.f32.mrf.mxu1 }
 0x1bb   : > { %2521 = vst [vmem:[%s4316_s26] sm:$0xff] %v2064_v23  ;;  %v2066_v27 = vadd.f32 %v2065_v26, %v956_v20  ;;  %2523 = vst [vmem:[%s4316_s26 + $0x10] sm:$0xff] %v2105_v25  ;;  %v2107_v29 = vadd.f32 %v2106_v28, %v964_v22 }
 0x1bc   : > { %v2067_v30 = vpop.f32.mrf.mxu0  ;;  %v2108_v31 = vpop.f32.mrf.mxu1 }
 0x1bd   : > { %2522 = vst [vmem:[%s4316_s26 + $0x8] sm:$0xff] %v2066_v27  ;;  %2524 = vst [vmem:[%s4316_s26 + $0x18] sm:$0xff] %v2107_v29  ;;  %v945_v27 = vld [vmem:[%s4300_s25 + $0x10] sm:$0xff] }
 0x1be   : > { %v2068_v32 = vpop.f32.mrf.mxu0  ;;  %v2109_v33 = vpop.f32.mrf.mxu1  ;;  %v1016_v28 = vrot.slane %v945_v27, %v4302_v14  ;;  %v1024_v29 = vrot.slane %v945_v27, %v4305_v16  ;;  %v1020_v30 = vrot.slane %v945_v27, %v4307_v12 }
 0x1bf   : > { %v1028_v32 = vrot.slane %v945_v27, %v4310_v17  ;;  %v1032_v17 = vrot.slane %v945_v27, %v4322_v34 }
 0x1d8   : > { %v2145_v41 = vpop.f32.mrf.mxu0  ;;  %v2186_v44 = vpop.f32.mrf.mxu1 }
 0x1d9   : > { %v2146_v43 = vadd.f32 %v2145_v41, %v968_v38  ;;  %v2187_v45 = vadd.f32 %v2186_v44, %v976_v39 }
 0x1da   : > { %v2147_v0 = vpop.f32.mrf.mxu0  ;;  %v2188_v47 = vpop.f32.mrf.mxu1 }
 0x1db   : > { %2525 = vst [vmem:[%s4316_s26 + $0x20] sm:$0xff] %v2146_v43  ;;  %v2148_v46 = vadd.f32 %v2147_v0, %v972_v40  ;;  %2527 = vst [vmem:[%s4316_s26 + $0x30] sm:$0xff] %v2187_v45  ;;  %v2189_v48 = vadd.f32 %v2188_v47, %v980_v42  ;;  %v1040_v45 = vrot.slane %v945_v27, %v4324_v35 }
 0x1dc   : > { %v2149_v49 = vpop.f32.mrf.mxu0  ;;  %v2190_v50 = vpop.f32.mrf.mxu1  ;;  %v1036_v0 = vrot.slane %v945_v27, %v4326_v36  ;;  %v1044_v47 = vrot.slane %v945_v27, %v4328_v37 }
 0x1dd   : > { %2526 = vst [vmem:[%s4316_s26 + $0x28] sm:$0xff] %v2148_v46  ;;  %2528 = vst [vmem:[%s4316_s26 + $0x38] sm:$0xff] %v2189_v48 }
 0x1de   : > { %v2150_v51 = vpop.f32.mrf.mxu0  ;;  %v2191_v52 = vpop.f32.mrf.mxu1 }
 0x1f8   : > { %v2227_v57 = vpop.f32.mrf.mxu0  ;;  %v2268_v60 = vpop.f32.mrf.mxu1 }
 0x1f9   : > { %v2228_v59 = vadd.f32 %v2227_v57, %v984_v54  ;;  %v2269_v61 = vadd.f32 %v2268_v60, %v992_v55 }
 0x1fa   : > { %v2229_v62 = vpop.f32.mrf.mxu0  ;;  %v2270_v1 = vpop.f32.mrf.mxu1 }
 0x1fb   : > { %2529 = vst [vmem:[%s4316_s26 + $0x40] sm:$0xff] %v2228_v59  ;;  %v2230_v63 = vadd.f32 %v2229_v62, %v988_v56  ;;  %2531 = vst [vmem:[%s4316_s26 + $0x50] sm:$0xff] %v2269_v61  ;;  %v2271_v2 = vadd.f32 %v2270_v1, %v996_v58 }
 0x1fc   : > { %v2231_v3 = vpop.f32.mrf.mxu0  ;;  %v2272_v4 = vpop.f32.mrf.mxu1 }
 0x1fd   : > { %2530 = vst [vmem:[%s4316_s26 + $0x48] sm:$0xff] %v2230_v63  ;;  %2532 = vst [vmem:[%s4316_s26 + $0x58] sm:$0xff] %v2271_v2 }
 0x1fe   : > { %v2232_v5 = vpop.f32.mrf.mxu0  ;;  %v2273_v6 = vpop.f32.mrf.mxu1 }
 0x218   : > { %v2309_v10 = vpop.f32.mrf.mxu0  ;;  %v2350_v15 = vpop.f32.mrf.mxu1 }
 0x219   : > { %v2310_v13 = vadd.f32 %v2309_v10, %v1000_v7  ;;  %v2351_v18 = vadd.f32 %v2350_v15, %v1008_v8 }
 0x21a   : > { %v2311_v19 = vpop.f32.mrf.mxu0  ;;  %v2352_v21 = vpop.f32.mrf.mxu1 }
 0x21b   : > { %2533 = vst [vmem:[%s4316_s26 + $0x60] sm:$0xff] %v2310_v13  ;;  %v2312_v20 = vadd.f32 %v2311_v19, %v1004_v9  ;;  %2535 = vst [vmem:[%s4316_s26 + $0x70] sm:$0xff] %v2351_v18  ;;  %v2353_v22 = vadd.f32 %v2352_v21, %v1012_v11 }
 0x21c   : > { %v2313_v23 = vpop.f32.mrf.mxu0  ;;  %v2354_v24 = vpop.f32.mrf.mxu1 }
 0x21d   : > { %2534 = vst [vmem:[%s4316_s26 + $0x68] sm:$0xff] %v2312_v20  ;;  %2536 = vst [vmem:[%s4316_s26 + $0x78] sm:$0xff] %v2353_v22 }
 0x21e   : > { %v2314_v25 = vpop.f32.mrf.mxu0  ;;  %v2355_v26 = vpop.f32.mrf.mxu1 }
 0x238   : > { %v2391_v31 = vpop.f32.mrf.mxu0  ;;  %v2432_v38 = vpop.f32.mrf.mxu1 }
 0x239   : > { %v2392_v33 = vadd.f32 %v2391_v31, %v1016_v28  ;;  %v2433_v39 = vadd.f32 %v2432_v38, %v1024_v29 }
 0x23a   : > { %v2393_v40 = vpop.f32.mrf.mxu0  ;;  %v2434_v42 = vpop.f32.mrf.mxu1 }
 0x23b   : > { %2537 = vst [vmem:[%s4316_s26 + $0x80] sm:$0xff] %v2392_v33  ;;  %v2394_v41 = vadd.f32 %v2393_v40, %v1020_v30  ;;  %2539 = vst [vmem:[%s4316_s26 + $0x90] sm:$0xff] %v2433_v39  ;;  %v2435_v43 = vadd.f32 %v2434_v42, %v1028_v32 }
 0x23c   : > { %v2395_v44 = vpop.f32.mrf.mxu0  ;;  %v2436_v14 = vpop.f32.mrf.mxu1 }
 0x23d   : > { %2538 = vst [vmem:[%s4316_s26 + $0x88] sm:$0xff] %v2394_v41  ;;  %2540 = vst [vmem:[%s4316_s26 + $0x98] sm:$0xff] %v2435_v43 }
 0x23e   : > { %v2396_v16 = vpop.f32.mrf.mxu0  ;;  %v2437_v12 = vpop.f32.mrf.mxu1 }
 0x258   : > { %v2473_v46 = vpop.f32.mrf.mxu0  ;;  %v2514_v49 = vpop.f32.mrf.mxu1 }
 0x259   : > { %v2474_v48 = vadd.f32 %v2473_v46, %v1032_v17  ;;  %v2515_v50 = vadd.f32 %v2514_v49, %v1040_v45 }
 0x25a   : > { %v2475_v51 = vpop.f32.mrf.mxu0  ;;  %v2516_v53 = vpop.f32.mrf.mxu1  ;;  %2552 = sbr.rel (!%p3383_p6) target bundleno = 633 (0x279), region = 102 }
 0x25b   : > { %2541 = vst [vmem:[%s4316_s26 + $0xa0] sm:$0xff] %v2474_v48  ;;  %v2476_v52 = vadd.f32 %v2475_v51, %v1036_v0  ;;  %2543 = vst [vmem:[%s4316_s26 + $0xb0] sm:$0xff] %v2515_v50  ;;  %v2517_v54 = vadd.f32 %v2516_v53, %v1044_v47 }
 0x25c   : > { %v2477_v55 = vpop.f32.mrf.mxu0  ;;  %v2518_v34 = vpop.f32.mrf.mxu1 }
 0x25d   : > { %2542 = vst [vmem:[%s4316_s26 + $0xa8] sm:$0xff] %v2476_v52  ;;  %2544 = vst [vmem:[%s4316_s26 + $0xb8] sm:$0xff] %v2517_v54 }
 0x25e   : > { %v2478_v35 = vpop.f32.mrf.mxu0  ;;  %v2519_v56 = vpop.f32.mrf.mxu1 }
 0x25f   : > { %s4460_s17 = smov (!%p2555_p7, %s2554_s17), 24 }
 0x260   : > { %s4376_s20 = sshll.u32 %s4460_s17, 7 }
 0x261   : > { %s2559_s24 = ssub.s32 3072, %s4376_s20 }
 0x262   : > { %2560 = vsyncadd %s2546_s30, %s2559_s24  ;;  %p2946_p9 = scmp.ne.s32.totalorder %s4376_s20, 0  ;;  %s2957_s1 = smul.u32 3072, %s3365_s16 }
 0x263   : > { %s2566_s22 = sshll.u32 %s4316_s26, 4  ;;  %s3323_s7 = smov [#allocation3]   ;;  %s2567_s22 = int_to_ptr.vmem [resolvable:$true] %s2566_s22 }
 0x264   : > { %s2563_s29 = scalar_lea.hbm %s4424_s3, %s2957_s1  ;;  %s3130_s4 = scalar_lea.vmem %s2567_s22, %s4376_s20 }
 0x265   : > { %p3131_p6 = scmp.ne.s32.totalorder %s2567_s22, %s3130_s4  ;;  %s3134_s10 = sshll.u32 %s3323_s7, 4  ;;  %s3135_s10 = int_to_ptr.vmem [resolvable:$false] %s3134_s10 }
 0x266   : > { %s3136_s19 = scalar_lea.vmem %s3135_s10, 6144  ;;  %p3137_p12 = scmp.lt.s32.totalorder %s2567_s22, %s3135_s10 }
 0x267   : > { %p3132_p10 = pnand %p3131_p6, %p2946_p9  ;;  %p3138_p13 = scmp.lt.s32.totalorder %s3136_s19, %s3130_s4 }
 0x269   : > { %p3133_p11 = pneg %p3132_p10  ;;  %p3139_p0 = por %p3138_p13, %p3137_p12 }
 0x26b   : > { %p3140_p1 = pnand %p3139_p0, %p3133_p11 }
 0x26d   : > { %3143 = shalt.err (!%p3140_p1)
}
 0x26e   : > { %s3144_s16 = scalar_lea.hbm %s2563_s29, %s4376_s20  ;;  %s3148_s5 = scalar_lea.hbm %s4424_s3, 36352 }
 0x26f   : > { %p3145_p2 = scmp.ne.s32.totalorder %s2563_s29, %s3144_s16  ;;  %p3149_p5 = scmp.lt.s32.totalorder %s2563_s29, %s4424_s3 }
 0x270   : > { %p3150_p7 = scmp.lt.s32.totalorder %s3148_s5, %s3144_s16 }
 0x271   : > { %p3146_p3 = pnand %p3145_p2, %p2946_p9 }
 0x272   : > { %p3151_p6 = por %p3150_p7, %p3149_p5 }
 0x273   : > { %p3147_p4 = pneg %p3146_p3 }
 0x275   : > { %p3152_p10 = pnand %p3151_p6, %p3147_p4 }
 0x277   : > { %3155 = shalt.err (!%p3152_p10)
}
 0x278   : > { %2569 = dma.vmem_to_hbm [thread:$0]  (%p2946_p9), %s2567_s22, %s4376_s20, %s2563_s29, %s2546_s30  }
 0x279 PF: > { %p2966_p11 = scmp.ge.s32.totalorder %s3254_s15, 2  ;;  %s2578_s26 = sand.u32 1, %s3242_s12  }
 0x27a   : > { %s2579_s17 = scalar_lea.sflag [#allocation4], %s2578_s26 }
 0x27b   : > { %p2963_p12 = pnand %p2966_p11, %p3387_p8 }
 0x27d   : > { %p2964_p13 = pneg %p2963_p12 }
 0x27f   : > { %3237 = dma.done.wait (%p2964_p13), %s2579_s17, 3072  }
 0x280   : > { %3239 = vsyncadd (%p2964_p13), %s2579_s17, 4294964224  ;;  %p13_p0 = scmp.ge.s32.totalorder %s3369_s18, 14   ;;  %s4445_s12 = smov %s3246_s13 }
 0x281   : > { %s4446_s13 = smov %s3250_s14  ;;  %s4447_s14 = smov %s3381_s21 }
 0x282   : > { %s4448_s15 = smov %s3369_s18  ;;  %15 = sbr.rel (!%p13_p0) target bundleno = 5 (0x5), region = 203 }
 0x287   :  { %2584 = vsyncpa [#allocation4], 1 }
 0x288   :  { %2586 = vsyncpa [#allocation4 + $0x1], 1 }

</bundles_post_ra>
